<compile_context>
chip_gen: v6e
topology: v6e:2x2x1
jax: 0.10.0
libtpu: 0.0.40
codegen_flags: <defaults>
</compile_context>

<pallas_src>
import functools

import jax
import jax.numpy as jnp
from jax.experimental import pallas as pl
from jax.experimental.pallas import tpu as pltpu


# ----------------------------------------------------------------------------
# shared GRU gate math (PyTorch gate order: r, z, n) given the precomputed
# input projection gi = x @ Wih + bih
# ----------------------------------------------------------------------------
def _gru_from_gi(gi, h, whh, bhh):
    H = h.shape[-1]
    gh = jnp.dot(h, whh, preferred_element_type=jnp.float32) + bhh
    r = jax.nn.sigmoid(gi[:, :H] + gh[:, :H])
    z = jax.nn.sigmoid(gi[:, H:2 * H] + gh[:, H:2 * H])
    n = jnp.tanh(gi[:, 2 * H:] + r * gh[:, 2 * H:])
    return (1.0 - z) * n + z * h


# ----------------------------------------------------------------------------
# generic fused linear kernel  (x @ W + b)  -- used for one-time precomputes
# ----------------------------------------------------------------------------
def linear_kernel(x_ref, w_ref, b_ref, o_ref):
    o_ref[...] = (jnp.dot(x_ref[...], w_ref[...],
                          preferred_element_type=jnp.float32) + b_ref[...])


def linear(x, w, b):
    M = x.shape[0]
    N = w.shape[1]
    return pl.pallas_call(
        linear_kernel,
        out_shape=jax.ShapeDtypeStruct((M, N), jnp.float32),
    )(x, w, b.reshape(1, N))


# ----------------------------------------------------------------------------
# encoder: fused (compress linear + GRU input projection) for all time steps
# ----------------------------------------------------------------------------
def encoder_pre_kernel(x_ref, wc_ref, bc_ref, wih_ref, bih_ref, gi_ref):
    xc = (jnp.dot(x_ref[...], wc_ref[...],
                  preferred_element_type=jnp.float32) + bc_ref[...])
    gi_ref[...] = (jnp.dot(xc, wih_ref[...],
                           preferred_element_type=jnp.float32) + bih_ref[...])


def encoder_precompute(x_flat, wc, bc, wih, bih):
    M = x_flat.shape[0]
    H3 = wih.shape[1]
    return pl.pallas_call(
        encoder_pre_kernel,
        out_shape=jax.ShapeDtypeStruct((M, H3), jnp.float32),
    )(x_flat, wc, bc.reshape(1, -1), wih, bih.reshape(1, -1))


# ----------------------------------------------------------------------------
# encoder recurrent GRU: single pallas_call, internal fori_loop over time;
# only the h @ Whh half of the matmul work sits on the serial chain.
# ----------------------------------------------------------------------------
def encoder_gru_kernel(gi_ref, whh_ref, bhh_ref, out_ref, hlast_ref):
    T, B, H3 = gi_ref.shape
    H = H3 // 3
    whh = whh_ref[...]
    bhh = bhh_ref[...]

    def body(t, h):
        h_new = _gru_from_gi(gi_ref[t], h, whh, bhh)
        out_ref[t] = h_new
        return h_new

    h_last = jax.lax.fori_loop(0, T, body,
                               jnp.zeros((B, H), jnp.float32), unroll=True)
    hlast_ref[...] = h_last


def encoder_gru(gi_tb3h, whh, bhh):
    T, B, H3 = gi_tb3h.shape
    H = whh.shape[0]
    return pl.pallas_call(
        encoder_gru_kernel,
        out_shape=(jax.ShapeDtypeStruct((T, B, H), jnp.float32),
                   jax.ShapeDtypeStruct((B, H), jnp.float32)),
    )(gi_tb3h, whh, bhh.reshape(1, -1))


# ----------------------------------------------------------------------------
# fused decoder step: attention + GRU cell + vocab projection + log_softmax
# ----------------------------------------------------------------------------
def _fused_decoder_step(h, gi_word, enc, x1e, w1h, v_row, wih_ctx, whh, bhh,
                        ow, ob):
    B, T, H = enc.shape
    # --- attention ---
    # linear2 + to_weight folded into v_row = W2 @ wt; the constant b2·wt is
    # dropped because it shifts every logit equally (softmax over T unchanged).
    # b1 and enc@W1[:H] are pre-folded into x1e outside the loop.
    x1h = jnp.dot(h, w1h, preferred_element_type=jnp.float32)       # (B, H)
    x1 = x1e + x1h[:, None, :]                                      # (B, T, H)
    att = jnp.sum(x1 * v_row.reshape(1, 1, H), axis=-1)             # (B, T)
    att = att - jnp.max(att, axis=1, keepdims=True)
    w = jnp.exp(att)
    w = w / jnp.sum(w, axis=1, keepdims=True)
    ctx = jnp.sum(w[..., None] * enc, axis=1)                       # (B, H)
    # --- GRU cell (word-embedding input projection pre-hoisted into gi_word) ---
    gi = gi_word + jnp.dot(ctx, wih_ctx, preferred_element_type=jnp.float32)
    h_new = _gru_from_gi(gi, h, whh, bhh)
    # --- vocab projection + log_softmax ---
    logits = jnp.dot(h_new, ow, preferred_element_type=jnp.float32) + ob
    m = jnp.max(logits, axis=-1, keepdims=True)
    s = logits - m
    lse = jnp.log(jnp.sum(jnp.exp(s), axis=-1, keepdims=True))
    return h_new, s - lse


# --- teacher-forced (train) decode loop, one pallas_call over L-1 steps ------
def decode_train_kernel(gi_word_ref, h0_ref, enc_ref, x1e_ref, w1h_ref, v_ref,
                        wih_ctx_ref, whh_ref, bhh_ref, ow_ref, ob_ref,
                        lp_ref, h_scr):
    i = pl.program_id(0)

    @pl.when(i == 0)
    def _():
        h_scr[...] = h0_ref[...]

    h = h_scr[...]
    h_new, lp = _fused_decoder_step(
        h, gi_word_ref[0], enc_ref[...], x1e_ref[...], w1h_ref[...],
        v_ref[...], wih_ctx_ref[...], whh_ref[...], bhh_ref[...],
        ow_ref[...], ob_ref[...])
    h_scr[...] = h_new
    lp_ref[0] = lp


def decode_train_fused(gi_word, h0, enc_out, x1e, w1h, v_attn, wih_ctx,
                       whh, bhh, ow, ob):
    Lm1, B, H3 = gi_word.shape
    H = h0.shape[1]
    T = enc_out.shape[1]
    V = ow.shape[1]
    return pl.pallas_call(
        decode_train_kernel,
        out_shape=jax.ShapeDtypeStruct((Lm1, B, V), jnp.float32),
        grid_spec=pltpu.PrefetchScalarGridSpec(
            num_scalar_prefetch=0,
            grid=(Lm1,),
            in_specs=[
                pl.BlockSpec((1, B, H3), lambda i: (i, 0, 0)),   # gi_word (per step)
                pl.BlockSpec((B, H), lambda i: (0, 0)),          # h0
                pl.BlockSpec((B, T, H), lambda i: (0, 0, 0)),    # enc_out
                pl.BlockSpec((B, T, H), lambda i: (0, 0, 0)),    # x1e (attn hoist)
                pl.BlockSpec((H, H), lambda i: (0, 0)),          # w1h
                pl.BlockSpec((1, H), lambda i: (0, 0)),          # v = W2@wt
                pl.BlockSpec((H, H3), lambda i: (0, 0)),         # dec_wih (ctx rows)
                pl.BlockSpec((H, H3), lambda i: (0, 0)),         # dec_whh
                pl.BlockSpec((1, H3), lambda i: (0, 0)),         # dec_bhh
                pl.BlockSpec((H, V), lambda i: (0, 0)),          # out_w
                pl.BlockSpec((1, V), lambda i: (0, 0)),          # out_b
            ],
            out_specs=pl.BlockSpec((1, B, V), lambda i: (i, 0, 0)),
            scratch_shapes=[pltpu.VMEM((B, H), jnp.float32)]),
        compiler_params=pltpu.CompilerParams(
            dimension_semantics=("arbitrary",)),
    )(gi_word, h0, enc_out, x1e, w1h, v_attn, wih_ctx, whh,
      bhh.reshape(1, -1), ow, ob.reshape(1, -1))


# --- greedy (inference) decode loop, one pallas_call over L-1 steps ----------
def decode_generate_kernel(h0_ref, enc_ref, x1e_ref, w1h_ref, v_ref,
                           emb_proj_ref, wih_ctx_ref, whh_ref, bhh_ref,
                           ow_ref, ob_ref, lp_ref, h_scr, lp_scr):
    i = pl.program_id(0)
    B, V = lp_scr.shape
    iota_v = jax.lax.broadcasted_iota(jnp.int32, (B, V), 1)

    @pl.when(i == 0)
    def _():
        h_scr[...] = h0_ref[...]
        # Seed "previous log-probs" with a one-hot at <BOS>=1 so the greedy
        # feedback below selects the BOS embedding on the first step.
        lp_scr[...] = (iota_v == 1).astype(jnp.float32)

    h = h_scr[...]
    prev = lp_scr[...]
    # greedy argmax of previous step (first-occurrence tie-break, == torch.argmax)
    m = jnp.max(prev, axis=-1, keepdims=True)
    idx = jnp.min(jnp.where(prev == m, iota_v, V), axis=-1, keepdims=True)
    onehot = (iota_v == idx).astype(jnp.float32)                     # (B, V)
    # embedding lookup + word input-projection fused: onehot @ (E@Wih[:Wd] + bih)
    gi_word = jnp.dot(onehot, emb_proj_ref[...],
                      preferred_element_type=jnp.float32)

    h_new, lp = _fused_decoder_step(
        h, gi_word, enc_ref[...], x1e_ref[...], w1h_ref[...], v_ref[...],
        wih_ctx_ref[...], whh_ref[...], bhh_ref[...], ow_ref[...], ob_ref[...])
    h_scr[...] = h_new
    lp_scr[...] = lp
    lp_ref[0] = lp


def decode_generate_fused(h0, enc_out, x1e, w1h, v_attn, emb_proj, wih_ctx,
                          whh, bhh, ow, ob, max_len):
    B, T, H = enc_out.shape
    H3 = whh.shape[1]
    V = ow.shape[1]
    Lm1 = max_len - 1
    return pl.pallas_call(
        decode_generate_kernel,
        out_shape=jax.ShapeDtypeStruct((Lm1, B, V), jnp.float32),
        grid_spec=pltpu.PrefetchScalarGridSpec(
            num_scalar_prefetch=0,
            grid=(Lm1,),
            in_specs=[
                pl.BlockSpec((B, H), lambda i: (0, 0)),          # h0
                pl.BlockSpec((B, T, H), lambda i: (0, 0, 0)),    # enc_out
                pl.BlockSpec((B, T, H), lambda i: (0, 0, 0)),    # x1e
                pl.BlockSpec((H, H), lambda i: (0, 0)),          # w1h
                pl.BlockSpec((1, H), lambda i: (0, 0)),          # v = W2@wt
                pl.BlockSpec((V, H3), lambda i: (0, 0)),         # E@Wih[:Wd]+bih
                pl.BlockSpec((H, H3), lambda i: (0, 0)),         # dec_wih (ctx rows)
                pl.BlockSpec((H, H3), lambda i: (0, 0)),         # dec_whh
                pl.BlockSpec((1, H3), lambda i: (0, 0)),         # dec_bhh
                pl.BlockSpec((H, V), lambda i: (0, 0)),          # out_w
                pl.BlockSpec((1, V), lambda i: (0, 0)),          # out_b
            ],
            out_specs=pl.BlockSpec((1, B, V), lambda i: (i, 0, 0)),
            scratch_shapes=[pltpu.VMEM((B, H), jnp.float32),
                            pltpu.VMEM((B, V), jnp.float32)]),
        compiler_params=pltpu.CompilerParams(
            dimension_semantics=("arbitrary",)),
    )(h0, enc_out, x1e, w1h, v_attn, emb_proj, wih_ctx, whh,
      bhh.reshape(1, -1), ow, ob.reshape(1, -1))


# ----------------------------------------------------------------------------
# Model glue (plain JAX): parameters, layout plumbing, one-time precomputes
# ----------------------------------------------------------------------------
def init_params(key, feat_dim, hidden, word_dim, vocab):
    ks = jax.random.split(key, 18)
    n = lambda k, s: (0.1 * jax.random.normal(k, s, jnp.float32))
    return dict(
        enc_compress_w=n(ks[0], (feat_dim, hidden)),
        enc_compress_b=n(ks[1], (hidden,)),
        enc_wih=n(ks[2], (hidden, 3 * hidden)),
        enc_whh=n(ks[3], (hidden, 3 * hidden)),
        enc_bih=n(ks[4], (3 * hidden,)),
        enc_bhh=n(ks[5], (3 * hidden,)),
        embedding=n(ks[6], (vocab, word_dim)),
        dec_wih=n(ks[7], (word_dim + hidden, 3 * hidden)),
        dec_whh=n(ks[8], (hidden, 3 * hidden)),
        dec_bih=n(ks[9], (3 * hidden,)),
        dec_bhh=n(ks[10], (3 * hidden,)),
        attn_w1=n(ks[11], (2 * hidden, hidden)),
        attn_b1=n(ks[12], (hidden,)),
        attn_w2=n(ks[13], (hidden, hidden)),
        attn_b2=n(ks[14], (hidden,)),
        attn_wt=n(ks[15], (hidden, 1)),
        out_w=n(ks[16], (hidden, vocab)),
        out_b=n(ks[17], (vocab,)),
    )


def encode(params, input_feature):
    B, T, F = input_feature.shape
    H = params["enc_whh"].shape[0]
    # TODO(synk): nn.Dropout omitted (stochastic, train-only; eval determinism).
    x_tbf = jnp.transpose(input_feature, (1, 0, 2)).reshape(T * B, F)
    gi = encoder_precompute(x_tbf, params["enc_compress_w"],
                            params["enc_compress_b"],
                            params["enc_wih"], params["enc_bih"])
    gi = gi.reshape(T, B, 3 * H)                       # time-major input proj
    enc_out_tbh, enc_last_h = encoder_gru(gi, params["enc_whh"],
                                          params["enc_bhh"])
    return jnp.transpose(enc_out_tbh, (1, 0, 2)), enc_last_h   # (B,T,H), (B,H)


def _prepare_decoder(params, enc_out):
    """One-time (h-independent) precomputes hoisted out of the decode loop."""
    B, T, H = enc_out.shape
    Wd = params["embedding"].shape[1]
    w1 = params["attn_w1"]
    w1e, w1h = w1[:H], w1[H:]
    # fold linear2 + to_weight: (x@W2 + b2)@wt == x@(W2@wt) + b2·wt; the scalar
    # b2·wt cancels in the softmax over time, so it is dropped (exact).
    v_attn = jnp.dot(params["attn_w2"], params["attn_wt"]).reshape(1, H)
    # hoist the h-independent half of attention linear1 (plus its bias):
    x1e = linear(enc_out.reshape(B * T, H), w1e,
                 params["attn_b1"]).reshape(B, T, H)
    wih_word = params["dec_wih"][:Wd]
    wih_ctx = params["dec_wih"][Wd:]
    return x1e, w1h, v_attn, wih_word, wih_ctx


def decode_train(params, enc_last_h, enc_out, target_seq):
    # TODO(synk): stochastic teacher-forcing coin flip replaced by always
    # teacher-forcing (deterministic; matches ratio -> 1.0 behaviour).
    B, T, H = enc_out.shape
    L = target_seq.shape[1]
    x1e, w1h, v_attn, wih_word, wih_ctx = _prepare_decoder(params, enc_out)
    emb_in = params["embedding"][target_seq[:, :L - 1]]          # (B, L-1, Wd)
    Wd = emb_in.shape[-1]
    # hoist the word-embedding GRU input projection out of the recurrence:
    gi_word = linear(emb_in.reshape(B * (L - 1), Wd), wih_word,
                     params["dec_bih"])
    gi_word = jnp.transpose(gi_word.reshape(B, L - 1, 3 * H), (1, 0, 2))
    lp = decode_train_fused(gi_word, enc_last_h, enc_out, x1e, w1h, v_attn,
                            wih_ctx, params["dec_whh"], params["dec_bhh"],
                            params["out_w"], params["out_b"])
    seq_log_prob = jnp.transpose(lp, (1, 0, 2))                  # (B, L-1, V)
    seq_predictions = jnp.argmax(seq_log_prob, axis=2)           # (B, L-1)
    return seq_log_prob, seq_predictions


def decode_generate(params, enc_last_h, enc_out, max_len):
    B, T, H = enc_out.shape
    x1e, w1h, v_attn, wih_word, wih_ctx = _prepare_decoder(params, enc_out)
    # embedding table folded through the word input projection (V, 3H):
    emb_proj = linear(params["embedding"], wih_word, params["dec_bih"])
    lp = decode_generate_fused(enc_last_h, enc_out, x1e, w1h, v_attn, emb_proj,
                               wih_ctx, params["dec_whh"], params["dec_bhh"],
                               params["out_w"], params["out_b"], max_len)
    seq_log_prob = jnp.transpose(lp, (1, 0, 2))                  # (B, L-1, V)
    seq_predictions = jnp.argmax(seq_log_prob, axis=2).astype(jnp.int32)
    return seq_log_prob, seq_predictions


def seq2seq_forward(params, input_feature, mode, target_seq=None,
                    teacher_forcing_ratio=None, max_len=6):
    enc_out, enc_last_h = encode(params, input_feature)
    if mode == "train":
        return decode_train(params, enc_last_h, enc_out, target_seq)
    elif mode == "inference":
        return decode_generate(params, enc_last_h, enc_out, max_len)
    raise ValueError(mode)


# ----------------------------------------------------------------------------
if __name__ == "__main__":
    # small but hardware-friendly shapes: B=8 (sublane), H/Wd/3H/V lane-dense.
    B, T, FEAT, H, WD, V, L = 8, 8, 128, 128, 128, 256, 6

    key = jax.random.PRNGKey(0)
    k_params, k_feat, k_tgt = jax.random.split(key, 3)
    params = init_params(k_params, FEAT, H, WD, V)
    input_feature = jax.random.normal(k_feat, (B, T, FEAT), jnp.float32)
    target_seq = jax.random.randint(k_tgt, (B, L), 0, V, dtype=jnp.int32)

    train_fwd = jax.jit(functools.partial(seq2seq_forward, mode="train"))
    infer_fwd = jax.jit(functools.partial(seq2seq_forward, mode="inference",
                                          max_len=L))

    seq_log_prob, seq_predictions = train_fwd(params, input_feature,
                                              target_seq=target_seq)
    jax.block_until_ready((seq_log_prob, seq_predictions))
    assert seq_log_prob.shape == (B, L - 1, V)
    assert seq_predictions.shape == (B, L - 1)

    gen_log_prob, gen_predictions = infer_fwd(params, input_feature)
    jax.block_until_ready((gen_log_prob, gen_predictions))
    assert gen_log_prob.shape == (B, L - 1, V)
    assert gen_predictions.shape == (B, L - 1)

    print("KERNEL_OK")
</pallas_src>

<mosaic_0001>
module attributes {stable_mosaic.version = 11 : i64} {
  func.func @linear_kernel(%arg0: memref<40x128xf32, #tpu.memory_space<vmem>>, %arg1: memref<128x384xf32, #tpu.memory_space<vmem>>, %arg2: memref<1x384xf32, #tpu.memory_space<vmem>>, %arg3: memref<40x384xf32, #tpu.memory_space<vmem>>) attributes {dimension_semantics = [], scalar_prefetch = 0 : i64, scratch_operands = 0 : i64, tpu.core_type = #tpu.core_type<tc>} {
    %c0 = arith.constant 0 : index
    %c0_0 = arith.constant 0 : index
    %0 = vector.load %arg0[%c0, %c0_0] : memref<40x128xf32, #tpu.memory_space<vmem>>, vector<40x128xf32>
    %c0_1 = arith.constant 0 : index
    %c0_2 = arith.constant 0 : index
    %1 = vector.load %arg1[%c0_1, %c0_2] : memref<128x384xf32, #tpu.memory_space<vmem>>, vector<128x384xf32>
    %cst = arith.constant dense<0.000000e+00> : vector<40x384xf32>
    %2 = tpu.matmul %0, %1, %cst {dimension_numbers = #tpu.dot_dimension_numbers<[1], [0], [0], [1], [0, 0, 1, 1], [], []>} : vector<40x128xf32>, vector<128x384xf32>, vector<40x384xf32> -> vector<40x384xf32>
    %c0_3 = arith.constant 0 : index
    %c0_4 = arith.constant 0 : index
    %3 = vector.load %arg2[%c0_3, %c0_4] : memref<1x384xf32, #tpu.memory_space<vmem>>, vector<1x384xf32>
    %4 = vector.broadcast %3 : vector<1x384xf32> to vector<40x384xf32>
    %5 = arith.addf %2, %4 : vector<40x384xf32>
    %c0_5 = arith.constant 0 : index
    %c0_6 = arith.constant 0 : index
    %6 = vector.load %arg3[%c0_5, %c0_6] : memref<40x384xf32, #tpu.memory_space<vmem>>, vector<40x384xf32>
    tpu.vector_store %arg3[%c0_5, %c0_6], %5 {strides = array<i32>} : memref<40x384xf32, #tpu.memory_space<vmem>>, vector<40x384xf32>,
    return
  }
}

module attributes {stable_mosaic.version = 11 : i64} {
  func.func @encoder_pre_kernel(%arg0: memref<64x128xf32, #tpu.memory_space<vmem>>, %arg1: memref<128x128xf32, #tpu.memory_space<vmem>>, %arg2: memref<1x128xf32, #tpu.memory_space<vmem>>, %arg3: memref<128x384xf32, #tpu.memory_space<vmem>>, %arg4: memref<1x384xf32, #tpu.memory_space<vmem>>, %arg5: memref<64x384xf32, #tpu.memory_space<vmem>>) attributes {dimension_semantics = [], scalar_prefetch = 0 : i64, scratch_operands = 0 : i64, tpu.core_type = #tpu.core_type<tc>} {
    %c0 = arith.constant 0 : index
    %c0_0 = arith.constant 0 : index
    %0 = vector.load %arg0[%c0, %c0_0] : memref<64x128xf32, #tpu.memory_space<vmem>>, vector<64x128xf32>
    %c0_1 = arith.constant 0 : index
    %c0_2 = arith.constant 0 : index
    %1 = vector.load %arg1[%c0_1, %c0_2] : memref<128x128xf32, #tpu.memory_space<vmem>>, vector<128x128xf32>
    %cst = arith.constant dense<0.000000e+00> : vector<64x128xf32>
    %2 = tpu.matmul %0, %1, %cst {dimension_numbers = #tpu.dot_dimension_numbers<[1], [0], [0], [1], [0, 0, 1, 1], [], []>} : vector<64x128xf32>, vector<128x128xf32>, vector<64x128xf32> -> vector<64x128xf32>
    %c0_3 = arith.constant 0 : index
    %c0_4 = arith.constant 0 : index
    %3 = vector.load %arg2[%c0_3, %c0_4] : memref<1x128xf32, #tpu.memory_space<vmem>>, vector<1x128xf32>
    %4 = vector.broadcast %3 : vector<1x128xf32> to vector<64x128xf32>
    %5 = arith.addf %2, %4 : vector<64x128xf32>
    %c0_5 = arith.constant 0 : index
    %c0_6 = arith.constant 0 : index
    %6 = vector.load %arg3[%c0_5, %c0_6] : memref<128x384xf32, #tpu.memory_space<vmem>>, vector<128x384xf32>
    %cst_7 = arith.constant dense<0.000000e+00> : vector<64x384xf32>
    %7 = tpu.matmul %5, %6, %cst_7 {dimension_numbers = #tpu.dot_dimension_numbers<[1], [0], [0], [1], [0, 0, 1, 1], [], []>} : vector<64x128xf32>, vector<128x384xf32>, vector<64x384xf32> -> vector<64x384xf32>
    %c0_8 = arith.constant 0 : index
    %c0_9 = arith.constant 0 : index
    %8 = vector.load %arg4[%c0_8, %c0_9] : memref<1x384xf32, #tpu.memory_space<vmem>>, vector<1x384xf32>
    %9 = vector.broadcast %8 : vector<1x384xf32> to vector<64x384xf32>
    %10 = arith.addf %7, %9 : vector<64x384xf32>
    %c0_10 = arith.constant 0 : index
    %c0_11 = arith.constant 0 : index
    %11 = vector.load %arg5[%c0_10, %c0_11] : memref<64x384xf32, #tpu.memory_space<vmem>>, vector<64x384xf32>
    tpu.vector_store %arg5[%c0_10, %c0_11], %10 {strides = array<i32>} : memref<64x384xf32, #tpu.memory_space<vmem>>, vector<64x384xf32>,
    return
  }
}

module attributes {stable_mosaic.version = 11 : i64} {
  func.func @linear_kernel(%arg0: memref<64x128xf32, #tpu.memory_space<vmem>>, %arg1: memref<128x128xf32, #tpu.memory_space<vmem>>, %arg2: memref<1x128xf32, #tpu.memory_space<vmem>>, %arg3: memref<64x128xf32, #tpu.memory_space<vmem>>) attributes {dimension_semantics = [], scalar_prefetch = 0 : i64, scratch_operands = 0 : i64, tpu.core_type = #tpu.core_type<tc>} {
    %c0 = arith.constant 0 : index
    %c0_0 = arith.constant 0 : index
    %0 = vector.load %arg0[%c0, %c0_0] : memref<64x128xf32, #tpu.memory_space<vmem>>, vector<64x128xf32>
    %c0_1 = arith.constant 0 : index
    %c0_2 = arith.constant 0 : index
    %1 = vector.load %arg1[%c0_1, %c0_2] : memref<128x128xf32, #tpu.memory_space<vmem>>, vector<128x128xf32>
    %cst = arith.constant dense<0.000000e+00> : vector<64x128xf32>
    %2 = tpu.matmul %0, %1, %cst {dimension_numbers = #tpu.dot_dimension_numbers<[1], [0], [0], [1], [0, 0, 1, 1], [], []>} : vector<64x128xf32>, vector<128x128xf32>, vector<64x128xf32> -> vector<64x128xf32>
    %c0_3 = arith.constant 0 : index
    %c0_4 = arith.constant 0 : index
    %3 = vector.load %arg2[%c0_3, %c0_4] : memref<1x128xf32, #tpu.memory_space<vmem>>, vector<1x128xf32>
    %4 = vector.broadcast %3 : vector<1x128xf32> to vector<64x128xf32>
    %5 = arith.addf %2, %4 : vector<64x128xf32>
    %c0_5 = arith.constant 0 : index
    %c0_6 = arith.constant 0 : index
    %6 = vector.load %arg3[%c0_5, %c0_6] : memref<64x128xf32, #tpu.memory_space<vmem>>, vector<64x128xf32>
    tpu.vector_store %arg3[%c0_5, %c0_6], %5 {strides = array<i32>} : memref<64x128xf32, #tpu.memory_space<vmem>>, vector<64x128xf32>,
    return
  }
}

module attributes {stable_mosaic.version = 11 : i64} {
  func.func @encoder_gru_kernel(%arg0: memref<8x8x384xf32, #tpu.memory_space<vmem>>, %arg1: memref<128x384xf32, #tpu.memory_space<vmem>>, %arg2: memref<1x384xf32, #tpu.memory_space<vmem>>, %arg3: memref<8x8x128xf32, #tpu.memory_space<vmem>>, %arg4: memref<8x128xf32, #tpu.memory_space<vmem>>) attributes {dimension_semantics = [], scalar_prefetch = 0 : i64, scratch_operands = 0 : i64, tpu.core_type = #tpu.core_type<tc>} {
    %c0 = arith.constant 0 : index
    %c0_0 = arith.constant 0 : index
    %0 = vector.load %arg1[%c0, %c0_0] : memref<128x384xf32, #tpu.memory_space<vmem>>, vector<128x384xf32>
    %c0_1 = arith.constant 0 : index
    %c0_2 = arith.constant 0 : index
    %1 = vector.load %arg2[%c0_1, %c0_2] : memref<1x384xf32, #tpu.memory_space<vmem>>, vector<1x384xf32>
    %cst = arith.constant 0.000000e+00 : f32
    %2 = vector.broadcast %cst : f32 to vector<8x128xf32>
    %c0_i32 = arith.constant 0 : i32
    %3 = arith.index_cast %c0_i32 : i32 to index
    %c0_3 = arith.constant 0 : index
    %c0_4 = arith.constant 0 : index
    %4 = vector.load %arg0[%3, %c0_3, %c0_4] : memref<8x8x384xf32, #tpu.memory_space<vmem>>, vector<1x8x384xf32>
    %5 = vector.shape_cast %4 : vector<1x8x384xf32> to vector<8x384xf32>
    %cst_5 = arith.constant dense<0.000000e+00> : vector<8x384xf32>
    %6 = tpu.matmul %2, %0, %cst_5 {dimension_numbers = #tpu.dot_dimension_numbers<[1], [0], [0], [1], [0, 0, 1, 1], [], []>} : vector<8x128xf32>, vector<128x384xf32>, vector<8x384xf32> -> vector<8x384xf32>
    %7 = vector.broadcast %1 : vector<1x384xf32> to vector<8x384xf32>
    %8 = arith.addf %6, %7 : vector<8x384xf32>
    %9 = vector.extract_strided_slice %5 {offsets = [0, 0], sizes = [8, 128], strides = [1, 1]} : vector<8x384xf32> to vector<8x128xf32>
    %10 = vector.extract_strided_slice %8 {offsets = [0, 0], sizes = [8, 128], strides = [1, 1]} : vector<8x384xf32> to vector<8x128xf32>
    %11 = arith.addf %9, %10 : vector<8x128xf32>
    %12 = arith.negf %11 : vector<8x128xf32>
    %13 = math.exp %12 : vector<8x128xf32>
    %cst_6 = arith.constant 1.000000e+00 : f32
    %14 = vector.broadcast %cst_6 : f32 to vector<8x128xf32>
    %15 = arith.addf %14, %13 : vector<8x128xf32>
    %16 = arith.divf %14, %15 : vector<8x128xf32>
    %17 = vector.extract_strided_slice %5 {offsets = [0, 128], sizes = [8, 128], strides = [1, 1]} : vector<8x384xf32> to vector<8x128xf32>
    %18 = vector.extract_strided_slice %8 {offsets = [0, 128], sizes = [8, 128], strides = [1, 1]} : vector<8x384xf32> to vector<8x128xf32>
    %19 = arith.addf %17, %18 : vector<8x128xf32>
    %20 = arith.negf %19 : vector<8x128xf32>
    %21 = math.exp %20 : vector<8x128xf32>
    %cst_7 = arith.constant 1.000000e+00 : f32
    %22 = vector.broadcast %cst_7 : f32 to vector<8x128xf32>
    %23 = arith.addf %22, %21 : vector<8x128xf32>
    %24 = arith.divf %22, %23 : vector<8x128xf32>
    %25 = vector.extract_strided_slice %5 {offsets = [0, 256], sizes = [8, 128], strides = [1, 1]} : vector<8x384xf32> to vector<8x128xf32>
    %26 = vector.extract_strided_slice %8 {offsets = [0, 256], sizes = [8, 128], strides = [1, 1]} : vector<8x384xf32> to vector<8x128xf32>
    %27 = arith.mulf %16, %26 : vector<8x128xf32>
    %28 = arith.addf %25, %27 : vector<8x128xf32>
    %29 = math.tanh %28 : vector<8x128xf32>
    %cst_8 = arith.constant 1.000000e+00 : f32
    %30 = vector.broadcast %cst_8 : f32 to vector<8x128xf32>
    %31 = arith.subf %30, %24 : vector<8x128xf32>
    %32 = arith.mulf %31, %29 : vector<8x128xf32>
    %33 = arith.mulf %24, %2 : vector<8x128xf32>
    %34 = arith.addf %32, %33 : vector<8x128xf32>
    %35 = arith.index_cast %c0_i32 : i32 to index
    %c0_9 = arith.constant 0 : index
    %c0_10 = arith.constant 0 : index
    %36 = vector.load %arg3[%35, %c0_9, %c0_10] : memref<8x8x128xf32, #tpu.memory_space<vmem>>, vector<1x8x128xf32>
    %37 = vector.shape_cast %36 : vector<1x8x128xf32> to vector<8x128xf32>
    %38 = vector.shape_cast %34 : vector<8x128xf32> to vector<1x8x128xf32>
    tpu.vector_store %arg3[%35, %c0_9, %c0_10], %38 {strides = array<i32>} : memref<8x8x128xf32, #tpu.memory_space<vmem>>, vector<1x8x128xf32>,
    %c1_i32 = arith.constant 1 : i32
    %39 = arith.index_cast %c1_i32 : i32 to index
    %c0_11 = arith.constant 0 : index
    %c0_12 = arith.constant 0 : index
    %40 = vector.load %arg0[%39, %c0_11, %c0_12] : memref<8x8x384xf32, #tpu.memory_space<vmem>>, vector<1x8x384xf32>
    %41 = vector.shape_cast %40 : vector<1x8x384xf32> to vector<8x384xf32>
    %cst_13 = arith.constant dense<0.000000e+00> : vector<8x384xf32>
    %42 = tpu.matmul %34, %0, %cst_13 {dimension_numbers = #tpu.dot_dimension_numbers<[1], [0], [0], [1], [0, 0, 1, 1], [], []>} : vector<8x128xf32>, vector<128x384xf32>, vector<8x384xf32> -> vector<8x384xf32>
    %43 = vector.broadcast %1 : vector<1x384xf32> to vector<8x384xf32>
    %44 = arith.addf %42, %43 : vector<8x384xf32>
    %45 = vector.extract_strided_slice %41 {offsets = [0, 0], sizes = [8, 128], strides = [1, 1]} : vector<8x384xf32> to vector<8x128xf32>
    %46 = vector.extract_strided_slice %44 {offsets = [0, 0], sizes = [8, 128], strides = [1, 1]} : vector<8x384xf32> to vector<8x128xf32>
    %47 = arith.addf %45, %46 : vector<8x128xf32>
    %48 = arith.negf %47 : vector<8x128xf32>
    %49 = math.exp %48 : vector<8x128xf32>
    %cst_14 = arith.constant 1.000000e+00 : f32
    %50 = vector.broadcast %cst_14 : f32 to vector<8x128xf32>
    %51 = arith.addf %50, %49 : vector<8x128xf32>
    %52 = arith.divf %50, %51 : vector<8x128xf32>
    %53 = vector.extract_strided_slice %41 {offsets = [0, 128], sizes = [8, 128], strides = [1, 1]} : vector<8x384xf32> to vector<8x128xf32>
    %54 = vector.extract_strided_slice %44 {offsets = [0, 128], sizes = [8, 128], strides = [1, 1]} : vector<8x384xf32> to vector<8x128xf32>
    %55 = arith.addf %53, %54 : vector<8x128xf32>
    %56 = arith.negf %55 : vector<8x128xf32>
    %57 = math.exp %56 : vector<8x128xf32>
    %cst_15 = arith.constant 1.000000e+00 : f32
    %58 = vector.broadcast %cst_15 : f32 to vector<8x128xf32>
    %59 = arith.addf %58, %57 : vector<8x128xf32>
    %60 = arith.divf %58, %59 : vector<8x128xf32>
    %61 = vector.extract_strided_slice %41 {offsets = [0, 256], sizes = [8, 128], strides = [1, 1]} : vector<8x384xf32> to vector<8x128xf32>
    %62 = vector.extract_strided_slice %44 {offsets = [0, 256], sizes = [8, 128], strides = [1, 1]} : vector<8x384xf32> to vector<8x128xf32>
    %63 = arith.mulf %52, %62 : vector<8x128xf32>
    %64 = arith.addf %61, %63 : vector<8x128xf32>
    %65 = math.tanh %64 : vector<8x128xf32>
    %cst_16 = arith.constant 1.000000e+00 : f32
    %66 = vector.broadcast %cst_16 : f32 to vector<8x128xf32>
    %67 = arith.subf %66, %60 : vector<8x128xf32>
    %68 = arith.mulf %67, %65 : vector<8x128xf32>
    %69 = arith.mulf %60, %34 : vector<8x128xf32>
    %70 = arith.addf %68, %69 : vector<8x128xf32>
    %71 = arith.index_cast %c1_i32 : i32 to index
    %c0_17 = arith.constant 0 : index
    %c0_18 = arith.constant 0 : index
    %72 = vector.load %arg3[%71, %c0_17, %c0_18] : memref<8x8x128xf32, #tpu.memory_space<vmem>>, vector<1x8x128xf32>
    %73 = vector.shape_cast %72 : vector<1x8x128xf32> to vector<8x128xf32>
    %74 = vector.shape_cast %70 : vector<8x128xf32> to vector<1x8x128xf32>
    tpu.vector_store %arg3[%71, %c0_17, %c0_18], %74 {strides = array<i32>} : memref<8x8x128xf32, #tpu.memory_space<vmem>>, vector<1x8x128xf32>,
    %c2_i32 = arith.constant 2 : i32
    %75 = arith.index_cast %c2_i32 : i32 to index
    %c0_19 = arith.constant 0 : index
    %c0_20 = arith.constant 0 : index
    %76 = vector.load %arg0[%75, %c0_19, %c0_20] : memref<8x8x384xf32, #tpu.memory_space<vmem>>, vector<1x8x384xf32>
    %77 = vector.shape_cast %76 : vector<1x8x384xf32> to vector<8x384xf32>
    %cst_21 = arith.constant dense<0.000000e+00> : vector<8x384xf32>
    %78 = tpu.matmul %70, %0, %cst_21 {dimension_numbers = #tpu.dot_dimension_numbers<[1], [0], [0], [1], [0, 0, 1, 1], [], []>} : vector<8x128xf32>, vector<128x384xf32>, vector<8x384xf32> -> vector<8x384xf32>
    %79 = vector.broadcast %1 : vector<1x384xf32> to vector<8x384xf32>
    %80 = arith.addf %78, %79 : vector<8x384xf32>
    %81 = vector.extract_strided_slice %77 {offsets = [0, 0], sizes = [8, 128], strides = [1, 1]} : vector<8x384xf32> to vector<8x128xf32>
    %82 = vector.extract_strided_slice %80 {offsets = [0, 0], sizes = [8, 128], strides = [1, 1]} : vector<8x384xf32> to vector<8x128xf32>
    %83 = arith.addf %81, %82 : vector<8x128xf32>
    %84 = arith.negf %83 : vector<8x128xf32>
    %85 = math.exp %84 : vector<8x128xf32>
    %cst_22 = arith.constant 1.000000e+00 : f32
    %86 = vector.broadcast %cst_22 : f32 to vector<8x128xf32>
    %87 = arith.addf %86, %85 : vector<8x128xf32>
    %88 = arith.divf %86, %87 : vector<8x128xf32>
    %89 = vector.extract_strided_slice %77 {offsets = [0, 128], sizes = [8, 128], strides = [1, 1]} : vector<8x384xf32> to vector<8x128xf32>
    %90 = vector.extract_strided_slice %80 {offsets = [0, 128], sizes = [8, 128], strides = [1, 1]} : vector<8x384xf32> to vector<8x128xf32>
    %91 = arith.addf %89, %90 : vector<8x128xf32>
    %92 = arith.negf %91 : vector<8x128xf32>
    %93 = math.exp %92 : vector<8x128xf32>
    %cst_23 = arith.constant 1.000000e+00 : f32
    %94 = vector.broadcast %cst_23 : f32 to vector<8x128xf32>
    %95 = arith.addf %94, %93 : vector<8x128xf32>
    %96 = arith.divf %94, %95 : vector<8x128xf32>
    %97 = vector.extract_strided_slice %77 {offsets = [0, 256], sizes = [8, 128], strides = [1, 1]} : vector<8x384xf32> to vector<8x128xf32>
    %98 = vector.extract_strided_slice %80 {offsets = [0, 256], sizes = [8, 128], strides = [1, 1]} : vector<8x384xf32> to vector<8x128xf32>
    %99 = arith.mulf %88, %98 : vector<8x128xf32>
    %100 = arith.addf %97, %99 : vector<8x128xf32>
    %101 = math.tanh %100 : vector<8x128xf32>
    %cst_24 = arith.constant 1.000000e+00 : f32
    %102 = vector.broadcast %cst_24 : f32 to vector<8x128xf32>
    %103 = arith.subf %102, %96 : vector<8x128xf32>
    %104 = arith.mulf %103, %101 : vector<8x128xf32>
    %105 = arith.mulf %96, %70 : vector<8x128xf32>
    %106 = arith.addf %104, %105 : vector<8x128xf32>
    %107 = arith.index_cast %c2_i32 : i32 to index
    %c0_25 = arith.constant 0 : index
    %c0_26 = arith.constant 0 : index
    %108 = vector.load %arg3[%107, %c0_25, %c0_26] : memref<8x8x128xf32, #tpu.memory_space<vmem>>, vector<1x8x128xf32>
    %109 = vector.shape_cast %108 : vector<1x8x128xf32> to vector<8x128xf32>
    %110 = vector.shape_cast %106 : vector<8x128xf32> to vector<1x8x128xf32>
    tpu.vector_store %arg3[%107, %c0_25, %c0_26], %110 {strides = array<i32>} : memref<8x8x128xf32, #tpu.memory_space<vmem>>, vector<1x8x128xf32>,
    %c3_i32 = arith.constant 3 : i32
    %111 = arith.index_cast %c3_i32 : i32 to index
    %c0_27 = arith.constant 0 : index
    %c0_28 = arith.constant 0 : index
    %112 = vector.load %arg0[%111, %c0_27, %c0_28] : memref<8x8x384xf32, #tpu.memory_space<vmem>>, vector<1x8x384xf32>
    %113 = vector.shape_cast %112 : vector<1x8x384xf32> to vector<8x384xf32>
    %cst_29 = arith.constant dense<0.000000e+00> : vector<8x384xf32>
    %114 = tpu.matmul %106, %0, %cst_29 {dimension_numbers = #tpu.dot_dimension_numbers<[1], [0], [0], [1], [0, 0, 1, 1], [], []>} : vector<8x128xf32>, vector<128x384xf32>, vector<8x384xf32> -> vector<8x384xf32>
    %115 = vector.broadcast %1 : vector<1x384xf32> to vector<8x384xf32>
    %116 = arith.addf %114, %115 : vector<8x384xf32>
    %117 = vector.extract_strided_slice %113 {offsets = [0, 0], sizes = [8, 128], strides = [1, 1]} : vector<8x384xf32> to vector<8x128xf32>
    %118 = vector.extract_strided_slice %116 {offsets = [0, 0], sizes = [8, 128], strides = [1, 1]} : vector<8x384xf32> to vector<8x128xf32>
    %119 = arith.addf %117, %118 : vector<8x128xf32>
    %120 = arith.negf %119 : vector<8x128xf32>
    %121 = math.exp %120 : vector<8x128xf32>
    %cst_30 = arith.constant 1.000000e+00 : f32
    %122 = vector.broadcast %cst_30 : f32 to vector<8x128xf32>
    %123 = arith.addf %122, %121 : vector<8x128xf32>
    %124 = arith.divf %122, %123 : vector<8x128xf32>
    %125 = vector.extract_strided_slice %113 {offsets = [0, 128], sizes = [8, 128], strides = [1, 1]} : vector<8x384xf32> to vector<8x128xf32>
    %126 = vector.extract_strided_slice %116 {offsets = [0, 128], sizes = [8, 128], strides = [1, 1]} : vector<8x384xf32> to vector<8x128xf32>
    %127 = arith.addf %125, %126 : vector<8x128xf32>
    %128 = arith.negf %127 : vector<8x128xf32>
    %129 = math.exp %128 : vector<8x128xf32>
    %cst_31 = arith.constant 1.000000e+00 : f32
    %130 = vector.broadcast %cst_31 : f32 to vector<8x128xf32>
    %131 = arith.addf %130, %129 : vector<8x128xf32>
    %132 = arith.divf %130, %131 : vector<8x128xf32>
    %133 = vector.extract_strided_slice %113 {offsets = [0, 256], sizes = [8, 128], strides = [1, 1]} : vector<8x384xf32> to vector<8x128xf32>
    %134 = vector.extract_strided_slice %116 {offsets = [0, 256], sizes = [8, 128], strides = [1, 1]} : vector<8x384xf32> to vector<8x128xf32>
    %135 = arith.mulf %124, %134 : vector<8x128xf32>
    %136 = arith.addf %133, %135 : vector<8x128xf32>
    %137 = math.tanh %136 : vector<8x128xf32>
    %cst_32 = arith.constant 1.000000e+00 : f32
    %138 = vector.broadcast %cst_32 : f32 to vector<8x128xf32>
    %139 = arith.subf %138, %132 : vector<8x128xf32>
    %140 = arith.mulf %139, %137 : vector<8x128xf32>
    %141 = arith.mulf %132, %106 : vector<8x128xf32>
    %142 = arith.addf %140, %141 : vector<8x128xf32>
    %143 = arith.index_cast %c3_i32 : i32 to index
    %c0_33 = arith.constant 0 : index
    %c0_34 = arith.constant 0 : index
    %144 = vector.load %arg3[%143, %c0_33, %c0_34] : memref<8x8x128xf32, #tpu.memory_space<vmem>>, vector<1x8x128xf32>
    %145 = vector.shape_cast %144 : vector<1x8x128xf32> to vector<8x128xf32>
    %146 = vector.shape_cast %142 : vector<8x128xf32> to vector<1x8x128xf32>
    tpu.vector_store %arg3[%143, %c0_33, %c0_34], %146 {strides = array<i32>} : memref<8x8x128xf32, #tpu.memory_space<vmem>>, vector<1x8x128xf32>,
    %c4_i32 = arith.constant 4 : i32
    %147 = arith.index_cast %c4_i32 : i32 to index
    %c0_35 = arith.constant 0 : index
    %c0_36 = arith.constant 0 : index
    %148 = vector.load %arg0[%147, %c0_35, %c0_36] : memref<8x8x384xf32, #tpu.memory_space<vmem>>, vector<1x8x384xf32>
    %149 = vector.shape_cast %148 : vector<1x8x384xf32> to vector<8x384xf32>
    %cst_37 = arith.constant dense<0.000000e+00> : vector<8x384xf32>
    %150 = tpu.matmul %142, %0, %cst_37 {dimension_numbers = #tpu.dot_dimension_numbers<[1], [0], [0], [1], [0, 0, 1, 1], [], []>} : vector<8x128xf32>, vector<128x384xf32>, vector<8x384xf32> -> vector<8x384xf32>
    %151 = vector.broadcast %1 : vector<1x384xf32> to vector<8x384xf32>
    %152 = arith.addf %150, %151 : vector<8x384xf32>
    %153 = vector.extract_strided_slice %149 {offsets = [0, 0], sizes = [8, 128], strides = [1, 1]} : vector<8x384xf32> to vector<8x128xf32>
    %154 = vector.extract_strided_slice %152 {offsets = [0, 0], sizes = [8, 128], strides = [1, 1]} : vector<8x384xf32> to vector<8x128xf32>
    %155 = arith.addf %153, %154 : vector<8x128xf32>
    %156 = arith.negf %155 : vector<8x128xf32>
    %157 = math.exp %156 : vector<8x128xf32>
    %cst_38 = arith.constant 1.000000e+00 : f32
    %158 = vector.broadcast %cst_38 : f32 to vector<8x128xf32>
    %159 = arith.addf %158, %157 : vector<8x128xf32>
    %160 = arith.divf %158, %159 : vector<8x128xf32>
    %161 = vector.extract_strided_slice %149 {offsets = [0, 128], sizes = [8, 128], strides = [1, 1]} : vector<8x384xf32> to vector<8x128xf32>
    %162 = vector.extract_strided_slice %152 {offsets = [0, 128], sizes = [8, 128], strides = [1, 1]} : vector<8x384xf32> to vector<8x128xf32>
    %163 = arith.addf %161, %162 : vector<8x128xf32>
    %164 = arith.negf %163 : vector<8x128xf32>
    %165 = math.exp %164 : vector<8x128xf32>
    %cst_39 = arith.constant 1.000000e+00 : f32
    %166 = vector.broadcast %cst_39 : f32 to vector<8x128xf32>
    %167 = arith.addf %166, %165 : vector<8x128xf32>
    %168 = arith.divf %166, %167 : vector<8x128xf32>
    %169 = vector.extract_strided_slice %149 {offsets = [0, 256], sizes = [8, 128], strides = [1, 1]} : vector<8x384xf32> to vector<8x128xf32>
    %170 = vector.extract_strided_slice %152 {offsets = [0, 256], sizes = [8, 128], strides = [1, 1]} : vector<8x384xf32> to vector<8x128xf32>
    %171 = arith.mulf %160, %170 : vector<8x128xf32>
    %172 = arith.addf %169, %171 : vector<8x128xf32>
    %173 = math.tanh %172 : vector<8x128xf32>
    %cst_40 = arith.constant 1.000000e+00 : f32
    %174 = vector.broadcast %cst_40 : f32 to vector<8x128xf32>
    %175 = arith.subf %174, %168 : vector<8x128xf32>
    %176 = arith.mulf %175, %173 : vector<8x128xf32>
    %177 = arith.mulf %168, %142 : vector<8x128xf32>
    %178 = arith.addf %176, %177 : vector<8x128xf32>
    %179 = arith.index_cast %c4_i32 : i32 to index
    %c0_41 = arith.constant 0 : index
    %c0_42 = arith.constant 0 : index
    %180 = vector.load %arg3[%179, %c0_41, %c0_42] : memref<8x8x128xf32, #tpu.memory_space<vmem>>, vector<1x8x128xf32>
    %181 = vector.shape_cast %180 : vector<1x8x128xf32> to vector<8x128xf32>
    %182 = vector.shape_cast %178 : vector<8x128xf32> to vector<1x8x128xf32>
    tpu.vector_store %arg3[%179, %c0_41, %c0_42], %182 {strides = array<i32>} : memref<8x8x128xf32, #tpu.memory_space<vmem>>, vector<1x8x128xf32>,
    %c5_i32 = arith.constant 5 : i32
    %183 = arith.index_cast %c5_i32 : i32 to index
    %c0_43 = arith.constant 0 : index
    %c0_44 = arith.constant 0 : index
    %184 = vector.load %arg0[%183, %c0_43, %c0_44] : memref<8x8x384xf32, #tpu.memory_space<vmem>>, vector<1x8x384xf32>
    %185 = vector.shape_cast %184 : vector<1x8x384xf32> to vector<8x384xf32>
    %cst_45 = arith.constant dense<0.000000e+00> : vector<8x384xf32>
    %186 = tpu.matmul %178, %0, %cst_45 {dimension_numbers = #tpu.dot_dimension_numbers<[1], [0], [0], [1], [0, 0, 1, 1], [], []>} : vector<8x128xf32>, vector<128x384xf32>, vector<8x384xf32> -> vector<8x384xf32>
    %187 = vector.broadcast %1 : vector<1x384xf32> to vector<8x384xf32>
    %188 = arith.addf %186, %187 : vector<8x384xf32>
    %189 = vector.extract_strided_slice %185 {offsets = [0, 0], sizes = [8, 128], strides = [1, 1]} : vector<8x384xf32> to vector<8x128xf32>
    %190 = vector.extract_strided_slice %188 {offsets = [0, 0], sizes = [8, 128], strides = [1, 1]} : vector<8x384xf32> to vector<8x128xf32>
    %191 = arith.addf %189, %190 : vector<8x128xf32>
    %192 = arith.negf %191 : vector<8x128xf32>
    %193 = math.exp %192 : vector<8x128xf32>
    %cst_46 = arith.constant 1.000000e+00 : f32
    %194 = vector.broadcast %cst_46 : f32 to vector<8x128xf32>
    %195 = arith.addf %194, %193 : vector<8x128xf32>
    %196 = arith.divf %194, %195 : vector<8x128xf32>
    %197 = vector.extract_strided_slice %185 {offsets = [0, 128], sizes = [8, 128], strides = [1, 1]} : vector<8x384xf32> to vector<8x128xf32>
    %198 = vector.extract_strided_slice %188 {offsets = [0, 128], sizes = [8, 128], strides = [1, 1]} : vector<8x384xf32> to vector<8x128xf32>
    %199 = arith.addf %197, %198 : vector<8x128xf32>
    %200 = arith.negf %199 : vector<8x128xf32>
    %201 = math.exp %200 : vector<8x128xf32>
    %cst_47 = arith.constant 1.000000e+00 : f32
    %202 = vector.broadcast %cst_47 : f32 to vector<8x128xf32>
    %203 = arith.addf %202, %201 : vector<8x128xf32>
    %204 = arith.divf %202, %203 : vector<8x128xf32>
    %205 = vector.extract_strided_slice %185 {offsets = [0, 256], sizes = [8, 128], strides = [1, 1]} : vector<8x384xf32> to vector<8x128xf32>
    %206 = vector.extract_strided_slice %188 {offsets = [0, 256], sizes = [8, 128], strides = [1, 1]} : vector<8x384xf32> to vector<8x128xf32>
    %207 = arith.mulf %196, %206 : vector<8x128xf32>
    %208 = arith.addf %205, %207 : vector<8x128xf32>
    %209 = math.tanh %208 : vector<8x128xf32>
    %cst_48 = arith.constant 1.000000e+00 : f32
    %210 = vector.broadcast %cst_48 : f32 to vector<8x128xf32>
    %211 = arith.subf %210, %204 : vector<8x128xf32>
    %212 = arith.mulf %211, %209 : vector<8x128xf32>
    %213 = arith.mulf %204, %178 : vector<8x128xf32>
    %214 = arith.addf %212, %213 : vector<8x128xf32>
    %215 = arith.index_cast %c5_i32 : i32 to index
    %c0_49 = arith.constant 0 : index
    %c0_50 = arith.constant 0 : index
    %216 = vector.load %arg3[%215, %c0_49, %c0_50] : memref<8x8x128xf32, #tpu.memory_space<vmem>>, vector<1x8x128xf32>
    %217 = vector.shape_cast %216 : vector<1x8x128xf32> to vector<8x128xf32>
    %218 = vector.shape_cast %214 : vector<8x128xf32> to vector<1x8x128xf32>
    tpu.vector_store %arg3[%215, %c0_49, %c0_50], %218 {strides = array<i32>} : memref<8x8x128xf32, #tpu.memory_space<vmem>>, vector<1x8x128xf32>,
    %c6_i32 = arith.constant 6 : i32
    %219 = arith.index_cast %c6_i32 : i32 to index
    %c0_51 = arith.constant 0 : index
    %c0_52 = arith.constant 0 : index
    %220 = vector.load %arg0[%219, %c0_51, %c0_52] : memref<8x8x384xf32, #tpu.memory_space<vmem>>, vector<1x8x384xf32>
    %221 = vector.shape_cast %220 : vector<1x8x384xf32> to vector<8x384xf32>
    %cst_53 = arith.constant dense<0.000000e+00> : vector<8x384xf32>
    %222 = tpu.matmul %214, %0, %cst_53 {dimension_numbers = #tpu.dot_dimension_numbers<[1], [0], [0], [1], [0, 0, 1, 1], [], []>} : vector<8x128xf32>, vector<128x384xf32>, vector<8x384xf32> -> vector<8x384xf32>
    %223 = vector.broadcast %1 : vector<1x384xf32> to vector<8x384xf32>
    %224 = arith.addf %222, %223 : vector<8x384xf32>
    %225 = vector.extract_strided_slice %221 {offsets = [0, 0], sizes = [8, 128], strides = [1, 1]} : vector<8x384xf32> to vector<8x128xf32>
    %226 = vector.extract_strided_slice %224 {offsets = [0, 0], sizes = [8, 128], strides = [1, 1]} : vector<8x384xf32> to vector<8x128xf32>
    %227 = arith.addf %225, %226 : vector<8x128xf32>
    %228 = arith.negf %227 : vector<8x128xf32>
    %229 = math.exp %228 : vector<8x128xf32>
    %cst_54 = arith.constant 1.000000e+00 : f32
    %230 = vector.broadcast %cst_54 : f32 to vector<8x128xf32>
    %231 = arith.addf %230, %229 : vector<8x128xf32>
    %232 = arith.divf %230, %231 : vector<8x128xf32>
    %233 = vector.extract_strided_slice %221 {offsets = [0, 128], sizes = [8, 128], strides = [1, 1]} : vector<8x384xf32> to vector<8x128xf32>
    %234 = vector.extract_strided_slice %224 {offsets = [0, 128], sizes = [8, 128], strides = [1, 1]} : vector<8x384xf32> to vector<8x128xf32>
    %235 = arith.addf %233, %234 : vector<8x128xf32>
    %236 = arith.negf %235 : vector<8x128xf32>
    %237 = math.exp %236 : vector<8x128xf32>
    %cst_55 = arith.constant 1.000000e+00 : f32
    %238 = vector.broadcast %cst_55 : f32 to vector<8x128xf32>
    %239 = arith.addf %238, %237 : vector<8x128xf32>
    %240 = arith.divf %238, %239 : vector<8x128xf32>
    %241 = vector.extract_strided_slice %221 {offsets = [0, 256], sizes = [8, 128], strides = [1, 1]} : vector<8x384xf32> to vector<8x128xf32>
    %242 = vector.extract_strided_slice %224 {offsets = [0, 256], sizes = [8, 128], strides = [1, 1]} : vector<8x384xf32> to vector<8x128xf32>
    %243 = arith.mulf %232, %242 : vector<8x128xf32>
    %244 = arith.addf %241, %243 : vector<8x128xf32>
    %245 = math.tanh %244 : vector<8x128xf32>
    %cst_56 = arith.constant 1.000000e+00 : f32
    %246 = vector.broadcast %cst_56 : f32 to vector<8x128xf32>
    %247 = arith.subf %246, %240 : vector<8x128xf32>
    %248 = arith.mulf %247, %245 : vector<8x128xf32>
    %249 = arith.mulf %240, %214 : vector<8x128xf32>
    %250 = arith.addf %248, %249 : vector<8x128xf32>
    %251 = arith.index_cast %c6_i32 : i32 to index
    %c0_57 = arith.constant 0 : index
    %c0_58 = arith.constant 0 : index
    %252 = vector.load %arg3[%251, %c0_57, %c0_58] : memref<8x8x128xf32, #tpu.memory_space<vmem>>, vector<1x8x128xf32>
    %253 = vector.shape_cast %252 : vector<1x8x128xf32> to vector<8x128xf32>
    %254 = vector.shape_cast %250 : vector<8x128xf32> to vector<1x8x128xf32>
    tpu.vector_store %arg3[%251, %c0_57, %c0_58], %254 {strides = array<i32>} : memref<8x8x128xf32, #tpu.memory_space<vmem>>, vector<1x8x128xf32>,
    %c7_i32 = arith.constant 7 : i32
    %255 = arith.index_cast %c7_i32 : i32 to index
    %c0_59 = arith.constant 0 : index
    %c0_60 = arith.constant 0 : index
    %256 = vector.load %arg0[%255, %c0_59, %c0_60] : memref<8x8x384xf32, #tpu.memory_space<vmem>>, vector<1x8x384xf32>
    %257 = vector.shape_cast %256 : vector<1x8x384xf32> to vector<8x384xf32>
    %cst_61 = arith.constant dense<0.000000e+00> : vector<8x384xf32>
    %258 = tpu.matmul %250, %0, %cst_61 {dimension_numbers = #tpu.dot_dimension_numbers<[1], [0], [0], [1], [0, 0, 1, 1], [], []>} : vector<8x128xf32>, vector<128x384xf32>, vector<8x384xf32> -> vector<8x384xf32>
    %259 = vector.broadcast %1 : vector<1x384xf32> to vector<8x384xf32>
    %260 = arith.addf %258, %259 : vector<8x384xf32>
    %261 = vector.extract_strided_slice %257 {offsets = [0, 0], sizes = [8, 128], strides = [1, 1]} : vector<8x384xf32> to vector<8x128xf32>
    %262 = vector.extract_strided_slice %260 {offsets = [0, 0], sizes = [8, 128], strides = [1, 1]} : vector<8x384xf32> to vector<8x128xf32>
    %263 = arith.addf %261, %262 : vector<8x128xf32>
    %264 = arith.negf %263 : vector<8x128xf32>
    %265 = math.exp %264 : vector<8x128xf32>
    %cst_62 = arith.constant 1.000000e+00 : f32
    %266 = vector.broadcast %cst_62 : f32 to vector<8x128xf32>
    %267 = arith.addf %266, %265 : vector<8x128xf32>
    %268 = arith.divf %266, %267 : vector<8x128xf32>
    %269 = vector.extract_strided_slice %257 {offsets = [0, 128], sizes = [8, 128], strides = [1, 1]} : vector<8x384xf32> to vector<8x128xf32>
    %270 = vector.extract_strided_slice %260 {offsets = [0, 128], sizes = [8, 128], strides = [1, 1]} : vector<8x384xf32> to vector<8x128xf32>
    %271 = arith.addf %269, %270 : vector<8x128xf32>
    %272 = arith.negf %271 : vector<8x128xf32>
    %273 = math.exp %272 : vector<8x128xf32>
    %cst_63 = arith.constant 1.000000e+00 : f32
    %274 = vector.broadcast %cst_63 : f32 to vector<8x128xf32>
    %275 = arith.addf %274, %273 : vector<8x128xf32>
    %276 = arith.divf %274, %275 : vector<8x128xf32>
    %277 = vector.extract_strided_slice %257 {offsets = [0, 256], sizes = [8, 128], strides = [1, 1]} : vector<8x384xf32> to vector<8x128xf32>
    %278 = vector.extract_strided_slice %260 {offsets = [0, 256], sizes = [8, 128], strides = [1, 1]} : vector<8x384xf32> to vector<8x128xf32>
    %279 = arith.mulf %268, %278 : vector<8x128xf32>
    %280 = arith.addf %277, %279 : vector<8x128xf32>
    %281 = math.tanh %280 : vector<8x128xf32>
    %cst_64 = arith.constant 1.000000e+00 : f32
    %282 = vector.broadcast %cst_64 : f32 to vector<8x128xf32>
    %283 = arith.subf %282, %276 : vector<8x128xf32>
    %284 = arith.mulf %283, %281 : vector<8x128xf32>
    %285 = arith.mulf %276, %250 : vector<8x128xf32>
    %286 = arith.addf %284, %285 : vector<8x128xf32>
    %287 = arith.index_cast %c7_i32 : i32 to index
    %c0_65 = arith.constant 0 : index
    %c0_66 = arith.constant 0 : index
    %288 = vector.load %arg3[%287, %c0_65, %c0_66] : memref<8x8x128xf32, #tpu.memory_space<vmem>>, vector<1x8x128xf32>
    %289 = vector.shape_cast %288 : vector<1x8x128xf32> to vector<8x128xf32>
    %290 = vector.shape_cast %286 : vector<8x128xf32> to vector<1x8x128xf32>
    tpu.vector_store %arg3[%287, %c0_65, %c0_66], %290 {strides = array<i32>} : memref<8x8x128xf32, #tpu.memory_space<vmem>>, vector<1x8x128xf32>,
    %c8_i32 = arith.constant 8 : i32
    %c0_67 = arith.constant 0 : index
    %c0_68 = arith.constant 0 : index
    %291 = vector.load %arg4[%c0_67, %c0_68] : memref<8x128xf32, #tpu.memory_space<vmem>>, vector<8x128xf32>
    tpu.vector_store %arg4[%c0_67, %c0_68], %286 {strides = array<i32>} : memref<8x128xf32, #tpu.memory_space<vmem>>, vector<8x128xf32>,
    return
  }
}

module attributes {stable_mosaic.version = 11 : i64} {
  func.func @decode_train_kernel(%arg0: i32, %arg1: memref<1x8x384xf32, #tpu.memory_space<vmem>>, %arg2: memref<8x128xf32, #tpu.memory_space<vmem>>, %arg3: memref<8x8x128xf32, #tpu.memory_space<vmem>>, %arg4: memref<8x8x128xf32, #tpu.memory_space<vmem>>, %arg5: memref<128x128xf32, #tpu.memory_space<vmem>>, %arg6: memref<1x128xf32, #tpu.memory_space<vmem>>, %arg7: memref<128x384xf32, #tpu.memory_space<vmem>>, %arg8: memref<128x384xf32, #tpu.memory_space<vmem>>, %arg9: memref<1x384xf32, #tpu.memory_space<vmem>>, %arg10: memref<128x256xf32, #tpu.memory_space<vmem>>, %arg11: memref<1x256xf32, #tpu.memory_space<vmem>>, %arg12: memref<1x8x256xf32, #tpu.memory_space<vmem>>, %arg13: memref<8x128xf32, #tpu.memory_space<vmem>>) attributes {dimension_semantics = [#tpu.dimension_semantics<arbitrary>], iteration_bounds = array<i64: 5>, scalar_prefetch = 0 : i64, scratch_operands = 1 : i64, tpu.core_type = #tpu.core_type<tc>, window_params = [{transform_indices = @transform_0, window_bounds = array<i64: 1, 8, 384>}, {pipeline_mode = #tpu.pipeline_mode<synchronous>, transform_indices = @transform_1, window_bounds = array<i64: 8, 128>}, {pipeline_mode = #tpu.pipeline_mode<synchronous>, transform_indices = @transform_2, window_bounds = array<i64: 8, 8, 128>}, {pipeline_mode = #tpu.pipeline_mode<synchronous>, transform_indices = @transform_3, window_bounds = array<i64: 8, 8, 128>}, {pipeline_mode = #tpu.pipeline_mode<synchronous>, transform_indices = @transform_4, window_bounds = array<i64: 128, 128>}, {pipeline_mode = #tpu.pipeline_mode<synchronous>, transform_indices = @transform_5, window_bounds = array<i64: 1, 128>}, {pipeline_mode = #tpu.pipeline_mode<synchronous>, transform_indices = @transform_6, window_bounds = array<i64: 128, 384>}, {pipeline_mode = #tpu.pipeline_mode<synchronous>, transform_indices = @transform_7, window_bounds = array<i64: 128, 384>}, {pipeline_mode = #tpu.pipeline_mode<synchronous>, transform_indices = @transform_8, window_bounds = array<i64: 1, 384>}, {pipeline_mode = #tpu.pipeline_mode<synchronous>, transform_indices = @transform_9, window_bounds = array<i64: 128, 256>}, {pipeline_mode = #tpu.pipeline_mode<synchronous>, transform_indices = @transform_10, window_bounds = array<i64: 1, 256>}, {transform_indices = @transform_11, window_bounds = array<i64: 1, 8, 256>}]} {
    %c0_i32 = arith.constant 0 : i32
    %0 = arith.cmpi eq, %arg0, %c0_i32 : i32
    %1 = arith.extui %0 : i1 to i32
    %c0_i32_0 = arith.constant 0 : i32
    %2 = arith.cmpi ne, %1, %c0_i32_0 : i32
    scf.if %2 {
      %c0_42 = arith.constant 0 : index
      %c0_43 = arith.constant 0 : index
      %84 = vector.load %arg2[%c0_42, %c0_43] : memref<8x128xf32, #tpu.memory_space<vmem>>, vector<8x128xf32>
      %c0_44 = arith.constant 0 : index
      %c0_45 = arith.constant 0 : index
      %85 = vector.load %arg13[%c0_44, %c0_45] : memref<8x128xf32, #tpu.memory_space<vmem>>, vector<8x128xf32>
      tpu.vector_store %arg13[%c0_44, %c0_45], %84 {strides = array<i32>} : memref<8x128xf32, #tpu.memory_space<vmem>>, vector<8x128xf32>,
    } else {
    }
    %c0 = arith.constant 0 : index
    %c0_1 = arith.constant 0 : index
    %3 = vector.load %arg13[%c0, %c0_1] : memref<8x128xf32, #tpu.memory_space<vmem>>, vector<8x128xf32>
    %c0_2 = arith.constant 0 : index
    %c0_3 = arith.constant 0 : index
    %c0_4 = arith.constant 0 : index
    %4 = vector.load %arg1[%c0_2, %c0_3, %c0_4] : memref<1x8x384xf32, #tpu.memory_space<vmem>>, vector<1x8x384xf32>
    %5 = vector.shape_cast %4 : vector<1x8x384xf32> to vector<8x384xf32>
    %c0_5 = arith.constant 0 : index
    %c0_6 = arith.constant 0 : index
    %c0_7 = arith.constant 0 : index
    %6 = vector.load %arg3[%c0_5, %c0_6, %c0_7] : memref<8x8x128xf32, #tpu.memory_space<vmem>>, vector<8x8x128xf32>
    %c0_8 = arith.constant 0 : index
    %c0_9 = arith.constant 0 : index
    %c0_10 = arith.constant 0 : index
    %7 = vector.load %arg4[%c0_8, %c0_9, %c0_10] : memref<8x8x128xf32, #tpu.memory_space<vmem>>, vector<8x8x128xf32>
    %c0_11 = arith.constant 0 : index
    %c0_12 = arith.constant 0 : index
    %8 = vector.load %arg5[%c0_11, %c0_12] : memref<128x128xf32, #tpu.memory_space<vmem>>, vector<128x128xf32>
    %c0_13 = arith.constant 0 : index
    %c0_14 = arith.constant 0 : index
    %9 = vector.load %arg6[%c0_13, %c0_14] : memref<1x128xf32, #tpu.memory_space<vmem>>, vector<1x128xf32>
    %c0_15 = arith.constant 0 : index
    %c0_16 = arith.constant 0 : index
    %10 = vector.load %arg7[%c0_15, %c0_16] : memref<128x384xf32, #tpu.memory_space<vmem>>, vector<128x384xf32>
    %c0_17 = arith.constant 0 : index
    %c0_18 = arith.constant 0 : index
    %11 = vector.load %arg8[%c0_17, %c0_18] : memref<128x384xf32, #tpu.memory_space<vmem>>, vector<128x384xf32>
    %c0_19 = arith.constant 0 : index
    %c0_20 = arith.constant 0 : index
    %12 = vector.load %arg9[%c0_19, %c0_20] : memref<1x384xf32, #tpu.memory_space<vmem>>, vector<1x384xf32>
    %c0_21 = arith.constant 0 : index
    %c0_22 = arith.constant 0 : index
    %13 = vector.load %arg10[%c0_21, %c0_22] : memref<128x256xf32, #tpu.memory_space<vmem>>, vector<128x256xf32>
    %c0_23 = arith.constant 0 : index
    %c0_24 = arith.constant 0 : index
    %14 = vector.load %arg11[%c0_23, %c0_24] : memref<1x256xf32, #tpu.memory_space<vmem>>, vector<1x256xf32>
    %cst = arith.constant dense<0.000000e+00> : vector<8x128xf32>
    %15 = tpu.matmul %3, %8, %cst {dimension_numbers = #tpu.dot_dimension_numbers<[1], [0], [0], [1], [0, 0, 1, 1], [], []>} : vector<8x128xf32>, vector<128x128xf32>, vector<8x128xf32> -> vector<8x128xf32>
    %16 = vector.shape_cast %15 : vector<8x128xf32> to vector<8x1x128xf32>
    %17 = vector.broadcast %16 : vector<8x1x128xf32> to vector<8x8x128xf32>
    %18 = arith.addf %7, %17 : vector<8x8x128xf32>
    %19 = vector.shape_cast %9 : vector<1x128xf32> to vector<1x1x128xf32>
    %20 = vector.broadcast %19 : vector<1x1x128xf32> to vector<8x8x128xf32>
    %21 = arith.mulf %18, %20 : vector<8x8x128xf32>
    %cst_25 = arith.constant dense<0.000000e+00> : vector<8x8xf32>
    %22 = vector.multi_reduction <add>, %21, %cst_25 [2] : vector<8x8x128xf32> to vector<8x8xf32>
    %cst_26 = arith.constant dense<0xFF800000> : vector<8xf32>
    %23 = vector.multi_reduction <maximumf>, %22, %cst_26 [1] : vector<8x8xf32> to vector<8xf32>
    %24 = vector.shape_cast %23 : vector<8xf32> to vector<8x1xf32>
    %25 = vector.broadcast %24 : vector<8x1xf32> to vector<8x8xf32>
    %26 = arith.subf %22, %25 : vector<8x8xf32>
    %27 = math.exp %26 : vector<8x8xf32>
    %cst_27 = arith.constant dense<0.000000e+00> : vector<8xf32>
    %28 = vector.multi_reduction <add>, %27, %cst_27 [1] : vector<8x8xf32> to vector<8xf32>
    %29 = vector.shape_cast %28 : vector<8xf32> to vector<8x1xf32>
    %30 = vector.broadcast %29 : vector<8x1xf32> to vector<8x8xf32>
    %31 = arith.divf %27, %30 : vector<8x8xf32>
    %32 = vector.shape_cast %31 : vector<8x8xf32> to vector<8x8x1xf32>
    %33 = vector.broadcast %32 : vector<8x8x1xf32> to vector<8x8x128xf32>
    %34 = arith.mulf %33, %6 : vector<8x8x128xf32>
    %cst_28 = arith.constant dense<0.000000e+00> : vector<8x128xf32>
    %35 = vector.multi_reduction <add>, %34, %cst_28 [1] : vector<8x8x128xf32> to vector<8x128xf32>
    %cst_29 = arith.constant dense<0.000000e+00> : vector<8x384xf32>
    %36 = tpu.matmul %35, %10, %cst_29 {dimension_numbers = #tpu.dot_dimension_numbers<[1], [0], [0], [1], [0, 0, 1, 1], [], []>} : vector<8x128xf32>, vector<128x384xf32>, vector<8x384xf32> -> vector<8x384xf32>
    %37 = arith.addf %5, %36 : vector<8x384xf32>
    %cst_30 = arith.constant dense<0.000000e+00> : vector<8x384xf32>
    %38 = tpu.matmul %3, %11, %cst_30 {dimension_numbers = #tpu.dot_dimension_numbers<[1], [0], [0], [1], [0, 0, 1, 1], [], []>} : vector<8x128xf32>, vector<128x384xf32>, vector<8x384xf32> -> vector<8x384xf32>
    %39 = vector.broadcast %12 : vector<1x384xf32> to vector<8x384xf32>
    %40 = arith.addf %38, %39 : vector<8x384xf32>
    %41 = vector.extract_strided_slice %37 {offsets = [0, 0], sizes = [8, 128], strides = [1, 1]} : vector<8x384xf32> to vector<8x128xf32>
    %42 = vector.extract_strided_slice %40 {offsets = [0, 0], sizes = [8, 128], strides = [1, 1]} : vector<8x384xf32> to vector<8x128xf32>
    %43 = arith.addf %41, %42 : vector<8x128xf32>
    %44 = arith.negf %43 : vector<8x128xf32>
    %45 = math.exp %44 : vector<8x128xf32>
    %cst_31 = arith.constant 1.000000e+00 : f32
    %46 = vector.broadcast %cst_31 : f32 to vector<8x128xf32>
    %47 = arith.addf %46, %45 : vector<8x128xf32>
    %48 = arith.divf %46, %47 : vector<8x128xf32>
    %49 = vector.extract_strided_slice %37 {offsets = [0, 128], sizes = [8, 128], strides = [1, 1]} : vector<8x384xf32> to vector<8x128xf32>
    %50 = vector.extract_strided_slice %40 {offsets = [0, 128], sizes = [8, 128], strides = [1, 1]} : vector<8x384xf32> to vector<8x128xf32>
    %51 = arith.addf %49, %50 : vector<8x128xf32>
    %52 = arith.negf %51 : vector<8x128xf32>
    %53 = math.exp %52 : vector<8x128xf32>
    %cst_32 = arith.constant 1.000000e+00 : f32
    %54 = vector.broadcast %cst_32 : f32 to vector<8x128xf32>
    %55 = arith.addf %54, %53 : vector<8x128xf32>
    %56 = arith.divf %54, %55 : vector<8x128xf32>
    %57 = vector.extract_strided_slice %37 {offsets = [0, 256], sizes = [8, 128], strides = [1, 1]} : vector<8x384xf32> to vector<8x128xf32>
    %58 = vector.extract_strided_slice %40 {offsets = [0, 256], sizes = [8, 128], strides = [1, 1]} : vector<8x384xf32> to vector<8x128xf32>
    %59 = arith.mulf %48, %58 : vector<8x128xf32>
    %60 = arith.addf %57, %59 : vector<8x128xf32>
    %61 = math.tanh %60 : vector<8x128xf32>
    %cst_33 = arith.constant 1.000000e+00 : f32
    %62 = vector.broadcast %cst_33 : f32 to vector<8x128xf32>
    %63 = arith.subf %62, %56 : vector<8x128xf32>
    %64 = arith.mulf %63, %61 : vector<8x128xf32>
    %65 = arith.mulf %56, %3 : vector<8x128xf32>
    %66 = arith.addf %64, %65 : vector<8x128xf32>
    %cst_34 = arith.constant dense<0.000000e+00> : vector<8x256xf32>
    %67 = tpu.matmul %66, %13, %cst_34 {dimension_numbers = #tpu.dot_dimension_numbers<[1], [0], [0], [1], [0, 0, 1, 1], [], []>} : vector<8x128xf32>, vector<128x256xf32>, vector<8x256xf32> -> vector<8x256xf32>
    %68 = vector.broadcast %14 : vector<1x256xf32> to vector<8x256xf32>
    %69 = arith.addf %67, %68 : vector<8x256xf32>
    %cst_35 = arith.constant dense<0xFF800000> : vector<8xf32>
    %70 = vector.multi_reduction <maximumf>, %69, %cst_35 [1] : vector<8x256xf32> to vector<8xf32>
    %71 = vector.shape_cast %70 : vector<8xf32> to vector<8x1xf32>
    %72 = vector.broadcast %71 : vector<8x1xf32> to vector<8x256xf32>
    %73 = arith.subf %69, %72 : vector<8x256xf32>
    %74 = math.exp %73 : vector<8x256xf32>
    %cst_36 = arith.constant dense<0.000000e+00> : vector<8xf32>
    %75 = vector.multi_reduction <add>, %74, %cst_36 [1] : vector<8x256xf32> to vector<8xf32>
    %76 = vector.shape_cast %75 : vector<8xf32> to vector<8x1xf32>
    %77 = math.log %76 : vector<8x1xf32>
    %78 = vector.broadcast %77 : vector<8x1xf32> to vector<8x256xf32>
    %79 = arith.subf %73, %78 : vector<8x256xf32>
    %c0_37 = arith.constant 0 : index
    %c0_38 = arith.constant 0 : index
    %80 = vector.load %arg13[%c0_37, %c0_38] : memref<8x128xf32, #tpu.memory_space<vmem>>, vector<8x128xf32>
    tpu.vector_store %arg13[%c0_37, %c0_38], %66 {strides = array<i32>} : memref<8x128xf32, #tpu.memory_space<vmem>>, vector<8x128xf32>,
    %c0_39 = arith.constant 0 : index
    %c0_40 = arith.constant 0 : index
    %c0_41 = arith.constant 0 : index
    %81 = vector.load %arg12[%c0_39, %c0_40, %c0_41] : memref<1x8x256xf32, #tpu.memory_space<vmem>>, vector<1x8x256xf32>
    %82 = vector.shape_cast %81 : vector<1x8x256xf32> to vector<8x256xf32>
    %83 = vector.shape_cast %79 : vector<8x256xf32> to vector<1x8x256xf32>
    tpu.vector_store %arg12[%c0_39, %c0_40, %c0_41], %83 {strides = array<i32>} : memref<1x8x256xf32, #tpu.memory_space<vmem>>, vector<1x8x256xf32>,
    return
  }
  func.func @transform_0(%arg0: i32) -> (i32, i32, i32) {
    %c0_i32 = arith.constant 0 : i32
    %c0_i32_0 = arith.constant 0 : i32
    %c0_i32_1 = arith.constant 0 : i32
    return %arg0, %c0_i32, %c0_i32_0 : i32, i32, i32
  }
  func.func @transform_1(%arg0: i32) -> (i32, i32) {
    %c0_i32 = arith.constant 0 : i32
    %c0_i32_0 = arith.constant 0 : i32
    %c0_i32_1 = arith.constant 0 : i32
    return %c0_i32, %c0_i32_0 : i32, i32
  }
  func.func @transform_2(%arg0: i32) -> (i32, i32, i32) {
    %c0_i32 = arith.constant 0 : i32
    %c0_i32_0 = arith.constant 0 : i32
    %c0_i32_1 = arith.constant 0 : i32
    %c0_i32_2 = arith.constant 0 : i32
    return %c0_i32, %c0_i32_0, %c0_i32_1 : i32, i32, i32
  }
  func.func @transform_3(%arg0: i32) -> (i32, i32, i32) {
    %c0_i32 = arith.constant 0 : i32
    %c0_i32_0 = arith.constant 0 : i32
    %c0_i32_1 = arith.constant 0 : i32
    %c0_i32_2 = arith.constant 0 : i32
    return %c0_i32, %c0_i32_0, %c0_i32_1 : i32, i32, i32
  }
  func.func @transform_4(%arg0: i32) -> (i32, i32) {
    %c0_i32 = arith.constant 0 : i32
    %c0_i32_0 = arith.constant 0 : i32
    %c0_i32_1 = arith.constant 0 : i32
    return %c0_i32, %c0_i32_0 : i32, i32
  }
  func.func @transform_5(%arg0: i32) -> (i32, i32) {
    %c0_i32 = arith.constant 0 : i32
    %c0_i32_0 = arith.constant 0 : i32
    %c0_i32_1 = arith.constant 0 : i32
    return %c0_i32, %c0_i32_0 : i32, i32
  }
  func.func @transform_6(%arg0: i32) -> (i32, i32) {
    %c0_i32 = arith.constant 0 : i32
    %c0_i32_0 = arith.constant 0 : i32
    %c0_i32_1 = arith.constant 0 : i32
    return %c0_i32, %c0_i32_0 : i32, i32
  }
  func.func @transform_7(%arg0: i32) -> (i32, i32) {
    %c0_i32 = arith.constant 0 : i32
    %c0_i32_0 = arith.constant 0 : i32
    %c0_i32_1 = arith.constant 0 : i32
    return %c0_i32, %c0_i32_0 : i32, i32
  }
  func.func @transform_8(%arg0: i32) -> (i32, i32) {
    %c0_i32 = arith.constant 0 : i32
    %c0_i32_0 = arith.constant 0 : i32
    %c0_i32_1 = arith.constant 0 : i32
    return %c0_i32, %c0_i32_0 : i32, i32
  }
  func.func @transform_9(%arg0: i32) -> (i32, i32) {
    %c0_i32 = arith.constant 0 : i32
    %c0_i32_0 = arith.constant 0 : i32
    %c0_i32_1 = arith.constant 0 : i32
    return %c0_i32, %c0_i32_0 : i32, i32
  }
  func.func @transform_10(%arg0: i32) -> (i32, i32) {
    %c0_i32 = arith.constant 0 : i32
    %c0_i32_0 = arith.constant 0 : i32
    %c0_i32_1 = arith.constant 0 : i32
    return %c0_i32, %c0_i32_0 : i32, i32
  }
  func.func @transform_11(%arg0: i32) -> (i32, i32, i32) {
    %c0_i32 = arith.constant 0 : i32
    %c0_i32_0 = arith.constant 0 : i32
    %c0_i32_1 = arith.constant 0 : i32
    return %arg0, %c0_i32, %c0_i32_0 : i32, i32, i32
  }
}

</mosaic_0001>

<bundles_post_ra>
// kernel: seq2seq_forward.7
= control target key start
LH: loop header
LB: loop body
LE: loop exit
PB: predicated region body
PF: predicated region fallthrough
CT: control target
= control target key end

     0   :  { %s382_s1 = inlined_call_operand.vmem [shape: f32[128,128], index: 1, kind: input, shape index: {}]   ;;  %s383_s0 = inlined_call_operand.vmem [shape: f32[64,128], index: 0, kind: input, shape index: {}]   ;;  %s384_s2 = inlined_call_operand.vmem [shape: f32[1,128], index: 2, kind: input, shape index: {}]   ;;  %s385_s3 = inlined_call_operand.vmem [shape: f32[64,128], index: 3, kind: output, shape index: {}]  }
   0x1   :  { %v37_v0 = vld [vmem:[%s382_s1 + $0x78] sm:$0xff]  ;;  %v36_v1 = vld [vmem:[%s382_s1 + $0x70] sm:$0xff]  ;;  %v35_v2 = vld [vmem:[%s382_s1 + $0x68] sm:$0xff] }
   0x2   :  { %187 = vmatprep.subr.mxu0 %v37_v0  ;;  %231 = vmatprep.subr.mxu1 %v37_v0  ;;  %v34_v3 = vld [vmem:[%s382_s1 + $0x60] sm:$0xff]  ;;  %v33_v4 = vld [vmem:[%s382_s1 + $0x58] sm:$0xff]  ;;  %v32_v5 = vld [vmem:[%s382_s1 + $0x50] sm:$0xff] }
   0x3   :  { %188 = vmatpush3.msra.mxu0 %v37_v0  ;;  %247 = vmatpush3.msra.mxu1 %v37_v0  ;;  %v31_v6 = vld [vmem:[%s382_s1 + $0x48] sm:$0xff]  ;;  %v30_v7 = vld [vmem:[%s382_s1 + $0x40] sm:$0xff]  ;;  %v29_v8 = vld [vmem:[%s382_s1 + $0x38] sm:$0xff] }
   0x4   :  { %189 = vmatprep.subr.mxu0 %v36_v1  ;;  %232 = vmatprep.subr.mxu1 %v36_v1  ;;  %v28_v9 = vld [vmem:[%s382_s1 + $0x30] sm:$0xff]  ;;  %v27_v10 = vld [vmem:[%s382_s1 + $0x28] sm:$0xff]  ;;  %v26_v11 = vld [vmem:[%s382_s1 + $0x20] sm:$0xff] }
   0x5   :  { %190 = vmatpush3.msra.mxu0 %v36_v1  ;;  %248 = vmatpush3.msra.mxu1 %v36_v1  ;;  %v25_v12 = vld [vmem:[%s382_s1 + $0x18] sm:$0xff]  ;;  %v24_v13 = vld [vmem:[%s382_s1 + $0x10] sm:$0xff]  ;;  %v23_v14 = vld [vmem:[%s382_s1 + $0x8] sm:$0xff] }
   0x6   :  { %191 = vmatprep.subr.mxu0 %v35_v2  ;;  %233 = vmatprep.subr.mxu1 %v35_v2  ;;  %v22_v15 = vld [vmem:[%s382_s1] sm:$0xff]  ;;  %v15_v18 = vld [vmem:[%s383_s0 + $0x8] sm:$0xff]  ;;  %v16_v20 = vld [vmem:[%s383_s0 + $0x10] sm:$0xff] }
   0x7   :  { %192 = vmatpush3.msra.mxu0 %v35_v2  ;;  %249 = vmatpush3.msra.mxu1 %v35_v2  ;;  %v14_v16 = vld [vmem:[%s383_s0] sm:$0xff]  ;;  %v19_v19 = vld [vmem:[%s383_s0 + $0x28] sm:$0xff]  ;;  %v20_v21 = vld [vmem:[%s383_s0 + $0x30] sm:$0xff] }
   0x8   :  { %193 = vmatprep.subr.mxu0 %v34_v3  ;;  %234 = vmatprep.subr.mxu1 %v34_v3  ;;  %v18_v17 = vld [vmem:[%s383_s0 + $0x20] sm:$0xff]  ;;  %v17_v22 = vld [vmem:[%s383_s0 + $0x18] sm:$0xff] }
   0x9   :  { %194 = vmatpush3.msra.mxu0 %v34_v3  ;;  %250 = vmatpush3.msra.mxu1 %v34_v3  ;;  %v21_v23 = vld [vmem:[%s383_s0 + $0x38] sm:$0xff]  ;;  %v162_v24 = vld [vmem:[%s384_s2] ss:$0 sm:$0xff] }
   0xa   :  { %195 = vmatprep.subr.mxu0 %v33_v4  ;;  %235 = vmatprep.subr.mxu1 %v33_v4 }
   0xb   :  { %196 = vmatpush3.msra.mxu0 %v33_v4  ;;  %251 = vmatpush3.msra.mxu1 %v33_v4 }
   0xc   :  { %197 = vmatprep.subr.mxu0 %v32_v5  ;;  %236 = vmatprep.subr.mxu1 %v32_v5 }
   0xd   :  { %198 = vmatpush3.msra.mxu0 %v32_v5  ;;  %252 = vmatpush3.msra.mxu1 %v32_v5 }
   0xe   :  { %199 = vmatprep.subr.mxu0 %v31_v6  ;;  %237 = vmatprep.subr.mxu1 %v31_v6 }
   0xf   :  { %200 = vmatpush3.msra.mxu0 %v31_v6  ;;  %253 = vmatpush3.msra.mxu1 %v31_v6 }
  0x10   :  { %201 = vmatprep.subr.mxu0 %v30_v7  ;;  %238 = vmatprep.subr.mxu1 %v30_v7 }
  0x11   :  { %202 = vmatpush3.msra.mxu0 %v30_v7  ;;  %254 = vmatpush3.msra.mxu1 %v30_v7 }
  0x12   :  { %203 = vmatprep.subr.mxu0 %v29_v8  ;;  %239 = vmatprep.subr.mxu1 %v29_v8 }
  0x13   :  { %204 = vmatpush3.msra.mxu0 %v29_v8  ;;  %255 = vmatpush3.msra.mxu1 %v29_v8 }
  0x14   :  { %205 = vmatprep.subr.mxu0 %v28_v9  ;;  %240 = vmatprep.subr.mxu1 %v28_v9 }
  0x15   :  { %206 = vmatpush3.msra.mxu0 %v28_v9  ;;  %256 = vmatpush3.msra.mxu1 %v28_v9 }
  0x16   :  { %207 = vmatprep.subr.mxu0 %v27_v10  ;;  %241 = vmatprep.subr.mxu1 %v27_v10 }
  0x17   :  { %208 = vmatpush3.msra.mxu0 %v27_v10  ;;  %257 = vmatpush3.msra.mxu1 %v27_v10 }
  0x18   :  { %209 = vmatprep.subr.mxu0 %v26_v11  ;;  %242 = vmatprep.subr.mxu1 %v26_v11 }
  0x19   :  { %210 = vmatpush3.msra.mxu0 %v26_v11  ;;  %258 = vmatpush3.msra.mxu1 %v26_v11 }
  0x1a   :  { %211 = vmatprep.subr.mxu0 %v25_v12  ;;  %243 = vmatprep.subr.mxu1 %v25_v12 }
  0x1b   :  { %212 = vmatpush3.msra.mxu0 %v25_v12  ;;  %259 = vmatpush3.msra.mxu1 %v25_v12 }
  0x1c   :  { %213 = vmatprep.subr.mxu0 %v24_v13  ;;  %244 = vmatprep.subr.mxu1 %v24_v13 }
  0x1d   :  { %214 = vmatpush3.msra.mxu0 %v24_v13  ;;  %260 = vmatpush3.msra.mxu1 %v24_v13 }
  0x1e   :  { %215 = vmatprep.subr.mxu0 %v23_v14  ;;  %245 = vmatprep.subr.mxu1 %v23_v14 }
  0x1f   :  { %216 = vmatpush3.msra.mxu0 %v23_v14  ;;  %261 = vmatpush3.msra.mxu1 %v23_v14 }
  0x20   :  { %217 = vmatprep.subr.mxu0 %v22_v15  ;;  %246 = vmatprep.subr.mxu1 %v22_v15 }
  0x21   :  { %218 = vmatpush3.msra.mxu0 %v22_v15  ;;  %262 = vmatpush3.msra.mxu1 %v22_v15 }
  0x22   :  { %219 = vmatprep.mubr.f32.mxu0 %v14_v16  ;;  %225 = vmatprep.mubr.f32.mxu1 %v18_v17 }
  0x23   :  { %220 = vmatmul.mubr.f32.vlgmr.msra.gmra.mxu0 %v15_v18  ;;  %226 = vmatmul.mubr.f32.vlgmr.msra.gmra.mxu1 %v19_v19 }
  0x24   :  { %222 = vmatprep.mubr.f32.mxu0 %v16_v20  ;;  %228 = vmatprep.mubr.f32.mxu1 %v20_v21 }
  0x27   :  { %223 = vmatmul.mubr.f32.gmra.mxu0 %v17_v22  ;;  %229 = vmatmul.mubr.f32.gmra.mxu1 %v21_v23 }
  0xe3   :  { %v221_v25 = vpop.f32.mrf.mxu0  ;;  %v227_v26 = vpop.f32.mrf.mxu1 }
  0xe4   :  { %v117_v27 = vadd.f32 %v221_v25, %v162_v24  ;;  %v137_v28 = vadd.f32 %v227_v26, %v162_v24 }
  0xe5   :  { %v111_v29 = vpop.f32.mrf.mxu0  ;;  %v131_v30 = vpop.f32.mrf.mxu1 }
  0xe6   :  { %151 = vst [vmem:[%s385_s3 + $0x8] sm:$0xff] %v117_v27  ;;  %155 = vst [vmem:[%s385_s3 + $0x28] sm:$0xff] %v137_v28  ;;  %v112_v31 = vadd.f32 %v162_v24, %v111_v29  ;;  %v132_v32 = vadd.f32 %v162_v24, %v131_v30 }
  0xe7   :  { %v224_v33 = vpop.f32.mrf.mxu0  ;;  %v230_v34 = vpop.f32.mrf.mxu1 }
  0xe8   :  { %150 = vst [vmem:[%s385_s3] sm:$0xff] %v112_v31  ;;  %154 = vst [vmem:[%s385_s3 + $0x20] sm:$0xff] %v132_v32  ;;  %v127_v35 = vadd.f32 %v224_v33, %v162_v24  ;;  %v147_v36 = vadd.f32 %v230_v34, %v162_v24 }
  0xe9   :  { %v121_v37 = vpop.f32.mrf.mxu0  ;;  %v141_v38 = vpop.f32.mrf.mxu1 }
  0xea   :  { %153 = vst [vmem:[%s385_s3 + $0x18] sm:$0xff] %v127_v35  ;;  %157 = vst [vmem:[%s385_s3 + $0x38] sm:$0xff] %v147_v36  ;;  %v122_v39 = vadd.f32 %v162_v24, %v121_v37  ;;  %v142_v40 = vadd.f32 %v162_v24, %v141_v38 }
  0xec   :  { %152 = vst [vmem:[%s385_s3 + $0x10] sm:$0xff] %v122_v39  ;;  %156 = vst [vmem:[%s385_s3 + $0x30] sm:$0xff] %v142_v40 }

// kernel: seq2seq_forward.8
= control target key start
LH: loop header
LB: loop body
LE: loop exit
PB: predicated region body
PF: predicated region fallthrough
CT: control target
= control target key end

     0   :  { %v358_v1 = vmov 0.0   ;;  %vm359_vm0 = vmmov 0   ;;  %v69_v54 = vlaneseq  ;;  %s618_s1 = inlined_call_operand.vmem [shape: f32[128,384], index: 1, kind: input, shape index: {}]   ;;  %s619_s0 = inlined_call_operand.vmem [shape: f32[40,128], index: 0, kind: input, shape index: {}]   ;;  %s620_s2 = inlined_call_operand.vmem [shape: f32[1,384], index: 2, kind: input, shape index: {}]   ;;  %s621_s3 = inlined_call_operand.vmem [shape: f32[40,384], index: 3, kind: output, shape index: {}]  }
   0x1   :  { %v65_v0 = vld [vmem:[%s618_s1 + $0x170] sm:$0xff]  ;;  %309 = vmatprep.subr.mxu1 %v358_v1  ;;  %v64_v2 = vld [vmem:[%s618_s1 + $0x168] sm:$0xff]  ;;  %v66_v3 = vld [vmem:[%s618_s1 + $0x178] sm:$0xff]  ;;  %148 = vmatprep.mubr.f32.mxu0 %v358_v1 }
   0x2   :  { %84 = vmatprep.subr.mxu0 %v65_v0  ;;  %310 = vmatpush3.msra.mxu1 %v66_v3  ;;  %v62_v4 = vld [vmem:[%s618_s1 + $0x158] sm:$0xff]  ;;  %v61_v5 = vld [vmem:[%s618_s1 + $0x150] sm:$0xff]  ;;  %v63_v6 = vld [vmem:[%s618_s1 + $0x160] sm:$0xff]  ;;  %v70_v55 = vshrl.u32 %v69_v54, 7 }
   0x3   :  { %85 = vmatpush1.msra.mxu0 %v64_v2  ;;  %311 = vmatprep.subr.mxu1 %v358_v1  ;;  %v59_v7 = vld [vmem:[%s618_s1 + $0x140] sm:$0xff]  ;;  %v60_v8 = vld [vmem:[%s618_s1 + $0x148] sm:$0xff]  ;;  %v58_v9 = vld [vmem:[%s618_s1 + $0x138] sm:$0xff] }
   0x4   :  { %86 = vmatprep.subr.mxu0 %v62_v4  ;;  %312 = vmatpush3.msra.mxu1 %v63_v6  ;;  %v56_v10 = vld [vmem:[%s618_s1 + $0x128] sm:$0xff]  ;;  %v57_v11 = vld [vmem:[%s618_s1 + $0x130] sm:$0xff]  ;;  %v55_v12 = vld [vmem:[%s618_s1 + $0x120] sm:$0xff]  ;;  %v71_v56 = vsub.s32 0, %v70_v55  ;;  %v79_v57 = vsub.s32 2, %v70_v55  ;;  %v75_v59 = vsub.s32 1, %v70_v55 }
   0x5   :  { %87 = vmatpush1.msra.mxu0 %v61_v5  ;;  %313 = vmatprep.subr.mxu1 %v358_v1  ;;  %v53_v13 = vld [vmem:[%s618_s1 + $0x110] sm:$0xff]  ;;  %v54_v14 = vld [vmem:[%s618_s1 + $0x118] sm:$0xff]  ;;  %v52_v15 = vld [vmem:[%s618_s1 + $0x108] sm:$0xff] }
   0x6   :  { %88 = vmatprep.subr.mxu0 %v59_v7  ;;  %314 = vmatpush3.msra.mxu1 %v60_v8  ;;  %v50_v16 = vld [vmem:[%s618_s1 + $0xf8] sm:$0xff]  ;;  %v51_v17 = vld [vmem:[%s618_s1 + $0x100] sm:$0xff]  ;;  %v49_v18 = vld [vmem:[%s618_s1 + $0xf0] sm:$0xff] }
   0x7   :  { %89 = vmatpush1.msra.mxu0 %v58_v9  ;;  %315 = vmatprep.subr.mxu1 %v358_v1  ;;  %v47_v19 = vld [vmem:[%s618_s1 + $0xe0] sm:$0xff]  ;;  %v48_v20 = vld [vmem:[%s618_s1 + $0xe8] sm:$0xff]  ;;  %v46_v21 = vld [vmem:[%s618_s1 + $0xd8] sm:$0xff] }
   0x8   :  { %90 = vmatprep.subr.mxu0 %v56_v10  ;;  %316 = vmatpush3.msra.mxu1 %v57_v11  ;;  %v44_v22 = vld [vmem:[%s618_s1 + $0xc8] sm:$0xff]  ;;  %v45_v23 = vld [vmem:[%s618_s1 + $0xd0] sm:$0xff]  ;;  %v43_v24 = vld [vmem:[%s618_s1 + $0xc0] sm:$0xff] }
   0x9   :  { %91 = vmatpush1.msra.mxu0 %v55_v12  ;;  %317 = vmatprep.subr.mxu1 %v358_v1  ;;  %v41_v25 = vld [vmem:[%s618_s1 + $0xb0] sm:$0xff]  ;;  %v42_v26 = vld [vmem:[%s618_s1 + $0xb8] sm:$0xff]  ;;  %v40_v27 = vld [vmem:[%s618_s1 + $0xa8] sm:$0xff] }
   0xa   :  { %92 = vmatprep.subr.mxu0 %v53_v13  ;;  %318 = vmatpush3.msra.mxu1 %v54_v14  ;;  %v38_v28 = vld [vmem:[%s618_s1 + $0x98] sm:$0xff]  ;;  %v39_v29 = vld [vmem:[%s618_s1 + $0xa0] sm:$0xff]  ;;  %v37_v30 = vld [vmem:[%s618_s1 + $0x90] sm:$0xff] }
   0xb   :  { %93 = vmatpush1.msra.mxu0 %v52_v15  ;;  %319 = vmatprep.subr.mxu1 %v358_v1  ;;  %v35_v31 = vld [vmem:[%s618_s1 + $0x80] sm:$0xff]  ;;  %v36_v32 = vld [vmem:[%s618_s1 + $0x88] sm:$0xff]  ;;  %v34_v33 = vld [vmem:[%s618_s1 + $0x78] sm:$0xff] }
   0xc   :  { %94 = vmatprep.subr.mxu0 %v50_v16  ;;  %320 = vmatpush3.msra.mxu1 %v51_v17  ;;  %v32_v34 = vld [vmem:[%s618_s1 + $0x68] sm:$0xff]  ;;  %v33_v35 = vld [vmem:[%s618_s1 + $0x70] sm:$0xff]  ;;  %v31_v36 = vld [vmem:[%s618_s1 + $0x60] sm:$0xff] }
   0xd   :  { %95 = vmatpush1.msra.mxu0 %v49_v18  ;;  %321 = vmatprep.subr.mxu1 %v358_v1  ;;  %v29_v37 = vld [vmem:[%s618_s1 + $0x50] sm:$0xff]  ;;  %v30_v38 = vld [vmem:[%s618_s1 + $0x58] sm:$0xff]  ;;  %v28_v39 = vld [vmem:[%s618_s1 + $0x48] sm:$0xff] }
   0xe   :  { %96 = vmatprep.subr.mxu0 %v47_v19  ;;  %322 = vmatpush3.msra.mxu1 %v48_v20  ;;  %v26_v40 = vld [vmem:[%s618_s1 + $0x38] sm:$0xff]  ;;  %v27_v41 = vld [vmem:[%s618_s1 + $0x40] sm:$0xff]  ;;  %v25_v42 = vld [vmem:[%s618_s1 + $0x30] sm:$0xff] }
   0xf   :  { %97 = vmatpush1.msra.mxu0 %v46_v21  ;;  %323 = vmatprep.subr.mxu1 %v358_v1  ;;  %v23_v43 = vld [vmem:[%s618_s1 + $0x20] sm:$0xff]  ;;  %v24_v44 = vld [vmem:[%s618_s1 + $0x28] sm:$0xff]  ;;  %v22_v45 = vld [vmem:[%s618_s1 + $0x18] sm:$0xff] }
  0x10   :  { %98 = vmatprep.subr.mxu0 %v44_v22  ;;  %324 = vmatpush3.msra.mxu1 %v45_v23  ;;  %v20_v46 = vld [vmem:[%s618_s1 + $0x8] sm:$0xff]  ;;  %v21_v47 = vld [vmem:[%s618_s1 + $0x10] sm:$0xff]  ;;  %v19_v48 = vld [vmem:[%s618_s1] sm:$0xff] }
  0x11   :  { %99 = vmatpush1.msra.mxu0 %v43_v24  ;;  %325 = vmatprep.subr.mxu1 %v358_v1  ;;  %v14_v49 = vld [vmem:[%s619_s0] sm:$0xff]  ;;  %v15_v50 = vld [vmem:[%s619_s0 + $0x8] sm:$0xff]  ;;  %v16_v51 = vld [vmem:[%s619_s0 + $0x10] sm:$0xff] }
  0x12   :  { %100 = vmatprep.subr.mxu0 %v41_v25  ;;  %326 = vmatpush3.msra.mxu1 %v42_v26  ;;  %v17_v52 = vld [vmem:[%s619_s0 + $0x18] sm:$0xff]  ;;  %v18_v53 = vld [vmem:[%s619_s0 + $0x20] sm:$0xff] }
  0x13   :  { %101 = vmatpush1.msra.mxu0 %v40_v27  ;;  %327 = vmatprep.subr.mxu1 %v358_v1  ;;  %v67_v58 = vld [vmem:[%s620_s2] sm:$0x7] }
  0x14   :  { %102 = vmatprep.subr.mxu0 %v38_v28  ;;  %328 = vmatpush3.msra.mxu1 %v39_v29  ;;  %v72_v60 = vrot.slane %v67_v58, %v71_v56  ;;  %v80_v61 = vrot.slane %v67_v58, %v79_v57  ;;  %v76_v62 = vrot.slane %v67_v58, %v75_v59 }
  0x15   :  { %103 = vmatpush1.msra.mxu0 %v37_v30  ;;  %329 = vmatprep.subr.mxu1 %v358_v1 }
  0x16   :  { %104 = vmatprep.subr.mxu0 %v35_v31  ;;  %330 = vmatpush3.msra.mxu1 %v36_v32 }
  0x17   :  { %105 = vmatpush1.msra.mxu0 %v34_v33  ;;  %331 = vmatprep.subr.mxu1 %v358_v1 }
  0x18   :  { %106 = vmatprep.subr.mxu0 %v32_v34  ;;  %332 = vmatpush3.msra.mxu1 %v33_v35 }
  0x19   :  { %107 = vmatpush1.msra.mxu0 %v31_v36  ;;  %333 = vmatprep.subr.mxu1 %v358_v1 }
  0x1a   :  { %108 = vmatprep.subr.mxu0 %v29_v37  ;;  %334 = vmatpush3.msra.mxu1 %v30_v38 }
  0x1b   :  { %109 = vmatpush1.msra.mxu0 %v28_v39  ;;  %335 = vmatprep.subr.mxu1 %v358_v1 }
  0x1c   :  { %110 = vmatprep.subr.mxu0 %v26_v40  ;;  %336 = vmatpush3.msra.mxu1 %v27_v41 }
  0x1d   :  { %111 = vmatpush1.msra.mxu0 %v25_v42  ;;  %337 = vmatprep.subr.mxu1 %v358_v1 }
  0x1e   :  { %112 = vmatprep.subr.mxu0 %v23_v43  ;;  %338 = vmatpush3.msra.mxu1 %v24_v44 }
  0x1f   :  { %113 = vmatpush1.msra.mxu0 %v22_v45  ;;  %339 = vmatprep.subr.mxu1 %v358_v1 }
  0x20   :  { %114 = vmatprep.subr.mxu0 %v20_v46  ;;  %340 = vmatpush3.msra.mxu1 %v21_v47 }
  0x21   :  { %115 = vmatpush1.msra.mxu0 %v19_v48  ;;  %341 = vmatprep.mubr.msk.f32.mxu1 %vm359_vm0, %v358_v1 }
  0x22   :  { %149 = vmatmul.mubr.f32.vlgmr.msra.gmra.mxu0 %v14_v49  ;;  %342 = vmatmul.mubr.f32.vlgmr.msra.gmra.mxu1 %v14_v49 }
  0x23   :  { %154 = vmatprep.mubr.f32.mxu0 %v358_v1  ;;  %344 = vmatprep.mubr.msk.f32.mxu1 %vm359_vm0, %v358_v1 }
  0x26   :  { %155 = vmatmul.mubr.f32.gmra.mxu0 %v15_v50  ;;  %345 = vmatmul.mubr.f32.gmra.mxu1 %v15_v50 }
  0x27   :  { %160 = vmatprep.mubr.f32.mxu0 %v358_v1  ;;  %347 = vmatprep.mubr.msk.f32.mxu1 %vm359_vm0, %v358_v1 }
  0x2a   :  { %161 = vmatmul.mubr.f32.gmra.mxu0 %v16_v51  ;;  %348 = vmatmul.mubr.f32.gmra.mxu1 %v16_v51 }
  0x2b   :  { %166 = vmatprep.mubr.f32.mxu0 %v358_v1  ;;  %350 = vmatprep.mubr.msk.f32.mxu1 %vm359_vm0, %v358_v1 }
  0x2e   :  { %167 = vmatmul.mubr.f32.gmra.mxu0 %v17_v52  ;;  %351 = vmatmul.mubr.f32.gmra.mxu1 %v17_v52 }
  0x2f   :  { %172 = vmatprep.mubr.f32.mxu0 %v358_v1  ;;  %353 = vmatprep.mubr.msk.f32.mxu1 %vm359_vm0, %v358_v1 }
  0x32   :  { %173 = vmatmul.mubr.f32.gmra.mxu0 %v18_v53  ;;  %354 = vmatmul.mubr.f32.gmra.mxu1 %v18_v53 }
  0xe2   :  { %v150_v63 = vpop.f32.mrf.mxu0  ;;  %v245_v0 = vpop.f32.mrf.mxu1 }
  0xe3   :  { %v151_v1 = vadd.f32 %v150_v63, %v72_v60  ;;  %v246_v2 = vadd.f32 %v245_v0, %v80_v61 }
  0xe4   :  { %v152_v3 = vpop.f32.mrf.mxu0  ;;  %v343_v4 = vpop.f32.mrf.mxu1 }
  0xe5   :  { %269 = vst [vmem:[%s621_s3] sm:$0xff] %v151_v1  ;;  %271 = vst [vmem:[%s621_s3 + $0x10] sm:$0xff] %v246_v2  ;;  %v153_v5 = vadd.f32 %v152_v3, %v76_v62 }
  0xe6   :  { %v156_v6 = vpop.f32.mrf.mxu0  ;;  %v250_v7 = vpop.f32.mrf.mxu1 }
  0xe7   :  { %270 = vst [vmem:[%s621_s3 + $0x8] sm:$0xff] %v153_v5  ;;  %v157_v8 = vadd.f32 %v156_v6, %v72_v60  ;;  %v251_v9 = vadd.f32 %v250_v7, %v80_v61 }
  0xe8   :  { %v158_v10 = vpop.f32.mrf.mxu0  ;;  %v346_v11 = vpop.f32.mrf.mxu1 }
  0xe9   :  { %272 = vst [vmem:[%s621_s3 + $0x18] sm:$0xff] %v157_v8  ;;  %274 = vst [vmem:[%s621_s3 + $0x28] sm:$0xff] %v251_v9  ;;  %v159_v12 = vadd.f32 %v158_v10, %v76_v62 }
  0xea   :  { %v162_v13 = vpop.f32.mrf.mxu0  ;;  %v255_v14 = vpop.f32.mrf.mxu1 }
  0xeb   :  { %273 = vst [vmem:[%s621_s3 + $0x20] sm:$0xff] %v159_v12  ;;  %v163_v15 = vadd.f32 %v162_v13, %v72_v60  ;;  %v256_v16 = vadd.f32 %v255_v14, %v80_v61 }
  0xec   :  { %v164_v17 = vpop.f32.mrf.mxu0  ;;  %v349_v18 = vpop.f32.mrf.mxu1 }
  0xed   :  { %275 = vst [vmem:[%s621_s3 + $0x30] sm:$0xff] %v163_v15  ;;  %277 = vst [vmem:[%s621_s3 + $0x40] sm:$0xff] %v256_v16  ;;  %v165_v19 = vadd.f32 %v164_v17, %v76_v62 }
  0xee   :  { %v168_v20 = vpop.f32.mrf.mxu0  ;;  %v260_v21 = vpop.f32.mrf.mxu1 }
  0xef   :  { %276 = vst [vmem:[%s621_s3 + $0x38] sm:$0xff] %v165_v19  ;;  %v169_v22 = vadd.f32 %v168_v20, %v72_v60  ;;  %v261_v23 = vadd.f32 %v260_v21, %v80_v61 }
  0xf0   :  { %v170_v24 = vpop.f32.mrf.mxu0  ;;  %v352_v25 = vpop.f32.mrf.mxu1 }
  0xf1   :  { %278 = vst [vmem:[%s621_s3 + $0x48] sm:$0xff] %v169_v22  ;;  %280 = vst [vmem:[%s621_s3 + $0x58] sm:$0xff] %v261_v23  ;;  %v171_v26 = vadd.f32 %v170_v24, %v76_v62 }
  0xf2   :  { %v174_v27 = vpop.f32.mrf.mxu0  ;;  %v265_v28 = vpop.f32.mrf.mxu1 }
  0xf3   :  { %279 = vst [vmem:[%s621_s3 + $0x50] sm:$0xff] %v171_v26  ;;  %v175_v29 = vadd.f32 %v174_v27, %v72_v60  ;;  %v266_v30 = vadd.f32 %v265_v28, %v80_v61 }
  0xf4   :  { %v176_v31 = vpop.f32.mrf.mxu0  ;;  %v355_v32 = vpop.f32.mrf.mxu1 }
  0xf5   :  { %281 = vst [vmem:[%s621_s3 + $0x60] sm:$0xff] %v175_v29  ;;  %283 = vst [vmem:[%s621_s3 + $0x70] sm:$0xff] %v266_v30  ;;  %v177_v33 = vadd.f32 %v176_v31, %v76_v62 }
  0xf7   :  { %282 = vst [vmem:[%s621_s3 + $0x68] sm:$0xff] %v177_v33 }

// kernel: seq2seq_forward.5
= control target key start
LH: loop header
LB: loop body
LE: loop exit
PB: predicated region body
PF: predicated region fallthrough
CT: control target
= control target key end

     0   :  { %s1076_s1 = inlined_call_operand.vmem [shape: f32[128,128], index: 1, kind: input, shape index: {}]   ;;  %s1077_s0 = inlined_call_operand.vmem [shape: f32[64,128], index: 0, kind: input, shape index: {}]   ;;  %s1078_s3 = inlined_call_operand.vmem [shape: f32[128,384], index: 3, kind: input, shape index: {}]   ;;  %s1079_s2 = inlined_call_operand.vmem [shape: f32[1,128], index: 2, kind: input, shape index: {}]   ;;  %s1080_s4 = inlined_call_operand.vmem [shape: f32[1,384], index: 4, kind: input, shape index: {}]   ;;  %s1081_s5 = inlined_call_operand.vmem [shape: f32[64,384], index: 5, kind: output, shape index: {}]  }
   0x1   :  { %v43_v0 = vld [vmem:[%s1076_s1 + $0x78] sm:$0xff]  ;;  %v42_v1 = vld [vmem:[%s1076_s1 + $0x70] sm:$0xff]  ;;  %v41_v2 = vld [vmem:[%s1076_s1 + $0x68] sm:$0xff] }
   0x2   :  { %516 = vmatprep.subr.mxu0 %v43_v0  ;;  %v40_v3 = vld [vmem:[%s1076_s1 + $0x60] sm:$0xff]  ;;  %v39_v5 = vld [vmem:[%s1076_s1 + $0x58] sm:$0xff]  ;;  %v38_v6 = vld [vmem:[%s1076_s1 + $0x50] sm:$0xff] }
   0x3   :  { %517 = vmatpush3.msra.mxu0 %v43_v0  ;;  %v20_v4 = vld [vmem:[%s1077_s0] sm:$0xff]  ;;  %v202_v7 = vld [vmem:[%s1078_s3 + $0x170] sm:$0xff]  ;;  %v201_v8 = vld [vmem:[%s1078_s3 + $0x168] sm:$0xff] }
   0x4   :  { %518 = vmatprep.subr.mxu0 %v42_v1  ;;  %548 = vmatprep.mubr.f32.mxu0 %v20_v4  ;;  %v199_v9 = vld [vmem:[%s1078_s3 + $0x158] sm:$0xff]  ;;  %v198_v10 = vld [vmem:[%s1078_s3 + $0x150] sm:$0xff]  ;;  %v37_v11 = vld [vmem:[%s1076_s1 + $0x48] sm:$0xff] }
   0x5   :  { %519 = vmatpush3.msra.mxu0 %v42_v1  ;;  %221 = vmatprep.subr.mxu1 %v202_v7  ;;  %v196_v12 = vld [vmem:[%s1078_s3 + $0x140] sm:$0xff]  ;;  %v195_v13 = vld [vmem:[%s1078_s3 + $0x138] sm:$0xff]  ;;  %v193_v15 = vld [vmem:[%s1078_s3 + $0x128] sm:$0xff] }
   0x6   :  { %520 = vmatprep.subr.mxu0 %v41_v2  ;;  %222 = vmatpush1.msra.mxu1 %v201_v8  ;;  %v36_v14 = vld [vmem:[%s1076_s1 + $0x40] sm:$0xff]  ;;  %v35_v17 = vld [vmem:[%s1076_s1 + $0x38] sm:$0xff]  ;;  %v190_v18 = vld [vmem:[%s1078_s3 + $0x110] sm:$0xff]  ;;  %v637_v8 = vmov 0.0  }
   0x7   :  { %521 = vmatpush3.msra.mxu0 %v41_v2  ;;  %223 = vmatprep.subr.mxu1 %v199_v9  ;;  %v192_v16 = vld [vmem:[%s1078_s3 + $0x120] sm:$0xff]  ;;  %v189_v19 = vld [vmem:[%s1078_s3 + $0x108] sm:$0xff]  ;;  %v34_v20 = vld [vmem:[%s1076_s1 + $0x30] sm:$0xff] }
   0x8   :  { %522 = vmatprep.subr.mxu0 %v40_v3  ;;  %224 = vmatpush1.msra.mxu1 %v198_v10  ;;  %v187_v21 = vld [vmem:[%s1078_s3 + $0xf8] sm:$0xff]  ;;  %v186_v22 = vld [vmem:[%s1078_s3 + $0xf0] sm:$0xff]  ;;  %v33_v23 = vld [vmem:[%s1076_s1 + $0x28] sm:$0xff] }
   0x9   :  { %523 = vmatpush3.msra.mxu0 %v40_v3  ;;  %225 = vmatprep.subr.mxu1 %v196_v12  ;;  %v184_v24 = vld [vmem:[%s1078_s3 + $0xe0] sm:$0xff]  ;;  %v183_v25 = vld [vmem:[%s1078_s3 + $0xd8] sm:$0xff]  ;;  %v181_v27 = vld [vmem:[%s1078_s3 + $0xc8] sm:$0xff] }
   0xa   :  { %524 = vmatprep.subr.mxu0 %v39_v5  ;;  %226 = vmatpush1.msra.mxu1 %v195_v13  ;;  %v32_v26 = vld [vmem:[%s1076_s1 + $0x20] sm:$0xff]  ;;  %v31_v29 = vld [vmem:[%s1076_s1 + $0x18] sm:$0xff]  ;;  %v178_v30 = vld [vmem:[%s1078_s3 + $0xb0] sm:$0xff] }
   0xb   :  { %525 = vmatpush3.msra.mxu0 %v39_v5  ;;  %227 = vmatprep.subr.mxu1 %v193_v15  ;;  %v180_v28 = vld [vmem:[%s1078_s3 + $0xc0] sm:$0xff]  ;;  %v177_v31 = vld [vmem:[%s1078_s3 + $0xa8] sm:$0xff]  ;;  %v30_v32 = vld [vmem:[%s1076_s1 + $0x10] sm:$0xff] }
   0xc   :  { %526 = vmatprep.subr.mxu0 %v38_v6  ;;  %228 = vmatpush1.msra.mxu1 %v192_v16  ;;  %v175_v33 = vld [vmem:[%s1078_s3 + $0x98] sm:$0xff]  ;;  %v174_v34 = vld [vmem:[%s1078_s3 + $0x90] sm:$0xff]  ;;  %v29_v35 = vld [vmem:[%s1076_s1 + $0x8] sm:$0xff] }
   0xd   :  { %527 = vmatpush3.msra.mxu0 %v38_v6  ;;  %229 = vmatprep.subr.mxu1 %v190_v18  ;;  %v172_v36 = vld [vmem:[%s1078_s3 + $0x80] sm:$0xff]  ;;  %v171_v37 = vld [vmem:[%s1078_s3 + $0x78] sm:$0xff]  ;;  %v169_v39 = vld [vmem:[%s1078_s3 + $0x68] sm:$0xff] }
   0xe   :  { %528 = vmatprep.subr.mxu0 %v37_v11  ;;  %230 = vmatpush1.msra.mxu1 %v189_v19  ;;  %v28_v38 = vld [vmem:[%s1076_s1] sm:$0xff]  ;;  %v21_v41 = vld [vmem:[%s1077_s0 + $0x8] sm:$0xff]  ;;  %v797_v42 = vld [vmem:[%s1078_s3 + $0x178] sm:$0xff] }
   0xf   :  { %529 = vmatpush3.msra.mxu0 %v37_v11  ;;  %231 = vmatprep.subr.mxu1 %v187_v21  ;;  %v168_v40 = vld [vmem:[%s1078_s3 + $0x60] sm:$0xff]  ;;  %v22_v43 = vld [vmem:[%s1077_s0 + $0x10] sm:$0xff]  ;;  %v165_v46 = vld [vmem:[%s1078_s3 + $0x48] sm:$0xff] }
  0x10   :  { %530 = vmatprep.subr.mxu0 %v36_v14  ;;  %232 = vmatpush1.msra.mxu1 %v186_v22  ;;  %v805_v44 = vld [vmem:[%s1078_s3 + $0x160] sm:$0xff]  ;;  %v166_v45 = vld [vmem:[%s1078_s3 + $0x50] sm:$0xff]  ;;  %v23_v47 = vld [vmem:[%s1077_s0 + $0x18] sm:$0xff] }
  0x11   :  { %531 = vmatpush3.msra.mxu0 %v36_v14  ;;  %233 = vmatprep.subr.mxu1 %v184_v24  ;;  %v821_v48 = vld [vmem:[%s1078_s3 + $0x148] sm:$0xff]  ;;  %v24_v49 = vld [vmem:[%s1077_s0 + $0x20] sm:$0xff]  ;;  %v831_v50 = vld [vmem:[%s1078_s3 + $0x130] sm:$0xff] }
  0x12   :  { %532 = vmatprep.subr.mxu0 %v35_v17  ;;  %234 = vmatpush1.msra.mxu1 %v183_v25  ;;  %v163_v51 = vld [vmem:[%s1078_s3 + $0x38] sm:$0xff]  ;;  %v162_v52 = vld [vmem:[%s1078_s3 + $0x30] sm:$0xff]  ;;  %v25_v53 = vld [vmem:[%s1077_s0 + $0x28] sm:$0xff] }
  0x13   :  { %533 = vmatpush3.msra.mxu0 %v35_v17  ;;  %235 = vmatprep.subr.mxu1 %v181_v27  ;;  %v847_v54 = vld [vmem:[%s1078_s3 + $0x118] sm:$0xff]  ;;  %v26_v55 = vld [vmem:[%s1077_s0 + $0x30] sm:$0xff]  ;;  %v857_v56 = vld [vmem:[%s1078_s3 + $0x100] sm:$0xff] }
  0x14   :  { %534 = vmatprep.subr.mxu0 %v34_v20  ;;  %236 = vmatpush1.msra.mxu1 %v180_v28  ;;  %v27_v57 = vld [vmem:[%s1077_s0 + $0x38] sm:$0xff]  ;;  %v867_v58 = vld [vmem:[%s1078_s3 + $0xe8] sm:$0xff]  ;;  %v874_v59 = vld [vmem:[%s1078_s3 + $0xd0] sm:$0xff] }
  0x15   :  { %535 = vmatpush3.msra.mxu0 %v34_v20  ;;  %237 = vmatprep.subr.mxu1 %v178_v30  ;;  %v881_v60 = vld [vmem:[%s1078_s3 + $0xb8] sm:$0xff]  ;;  %v888_v61 = vld [vmem:[%s1078_s3 + $0xa0] sm:$0xff]  ;;  %v895_v62 = vld [vmem:[%s1078_s3 + $0x88] sm:$0xff] }
  0x16   :  { %536 = vmatprep.subr.mxu0 %v33_v23  ;;  %238 = vmatpush1.msra.mxu1 %v177_v31  ;;  %v902_v63 = vld [vmem:[%s1078_s3 + $0x70] sm:$0xff]  ;;  %v909_v0 = vld [vmem:[%s1078_s3 + $0x58] sm:$0xff]  ;;  %v918_v1 = vld [vmem:[%s1078_s3 + $0x40] sm:$0xff] }
  0x17   :  { %537 = vmatpush3.msra.mxu0 %v33_v23  ;;  %239 = vmatprep.subr.mxu1 %v175_v33  ;;  %v160_v2 = vld [vmem:[%s1078_s3 + $0x20] sm:$0xff]  ;;  %v159_v3 = vld [vmem:[%s1078_s3 + $0x18] sm:$0xff]  ;;  %v931_v4 = vld [vmem:[%s1078_s3 + $0x28] sm:$0xff] }
  0x18   :  { %538 = vmatprep.subr.mxu0 %v32_v26  ;;  %240 = vmatpush1.msra.mxu1 %v174_v34  ;;  %v157_v5 = vld [vmem:[%s1078_s3 + $0x8] sm:$0xff]  ;;  %v156_v6 = vld [vmem:[%s1078_s3] sm:$0xff]  ;;  %v944_v7 = vld [vmem:[%s1078_s3 + $0x10] sm:$0xff] }
  0x19   :  { %539 = vmatpush3.msra.mxu0 %v32_v26  ;;  %241 = vmatprep.subr.mxu1 %v172_v36  ;;  %v467_v10 = vld [vmem:[%s1079_s2] ss:$0 sm:$0xff]  ;;  %v206_v26 = vlaneseq }
  0x1a   :  { %540 = vmatprep.subr.mxu0 %v31_v29  ;;  %242 = vmatpush1.msra.mxu1 %v171_v37 }
  0x1b   :  { %541 = vmatpush3.msra.mxu0 %v31_v29  ;;  %243 = vmatprep.subr.mxu1 %v169_v39  ;;  %v207_v27 = vshrl.u32 %v206_v26, 7  ;;  %v204_v29 = vld [vmem:[%s1080_s4] sm:$0x7] }
  0x1c   :  { %542 = vmatprep.subr.mxu0 %v30_v32  ;;  %244 = vmatpush1.msra.mxu1 %v168_v40 }
  0x1d   :  { %543 = vmatpush3.msra.mxu0 %v30_v32  ;;  %245 = vmatprep.subr.mxu1 %v166_v45  ;;  %v208_v28 = vsub.s32 0, %v207_v27  ;;  %v216_v30 = vsub.s32 2, %v207_v27  ;;  %v212_v31 = vsub.s32 1, %v207_v27 }
  0x1e   :  { %544 = vmatprep.subr.mxu0 %v29_v35  ;;  %246 = vmatpush1.msra.mxu1 %v165_v46 }
  0x1f   :  { %545 = vmatpush3.msra.mxu0 %v29_v35  ;;  %247 = vmatprep.subr.mxu1 %v163_v51  ;;  %v209_v32 = vrot.slane %v204_v29, %v208_v28  ;;  %v994_v33 = vrot.slane %v204_v29, %v216_v30  ;;  %v213_v34 = vrot.slane %v204_v29, %v212_v31 }
  0x20   :  { %546 = vmatprep.subr.mxu0 %v28_v38  ;;  %248 = vmatpush1.msra.mxu1 %v162_v52 }
  0x21   :  { %547 = vmatpush3.msra.mxu0 %v28_v38  ;;  %249 = vmatprep.subr.mxu1 %v160_v2 }
  0x22   :  { %549 = vmatmul.mubr.f32.vlgmr.msra.gmra.mxu0 %v21_v41  ;;  %560 = vmatprep.subr.mxu0 %v797_v42 }
  0x23   :  { %551 = vmatprep.mubr.f32.mxu0 %v22_v43  ;;  %561 = vmatpush3.msra.mxu0 %v797_v42 }
  0x24   :  { %562 = vmatprep.subr.mxu0 %v805_v44  ;;  %250 = vmatpush1.msra.mxu1 %v159_v3 }
  0x25   :  { %563 = vmatpush3.msra.mxu0 %v805_v44  ;;  %251 = vmatprep.subr.mxu1 %v157_v5 }
  0x26   :  { %552 = vmatmul.mubr.f32.gmra.mxu0 %v23_v47  ;;  %564 = vmatprep.subr.mxu0 %v821_v48 }
  0x27   :  { %554 = vmatprep.mubr.f32.mxu0 %v24_v49  ;;  %565 = vmatpush3.msra.mxu0 %v821_v48 }
  0x28   :  { %566 = vmatprep.subr.mxu0 %v831_v50  ;;  %252 = vmatpush1.msra.mxu1 %v156_v6 }
  0x29   :  { %567 = vmatpush3.msra.mxu0 %v831_v50  ;;  %285 = vmatprep.mubr.f32.mxu1 %v637_v8 }
  0x2a   :  { %555 = vmatmul.mubr.f32.gmra.mxu0 %v25_v53  ;;  %568 = vmatprep.subr.mxu0 %v847_v54 }
  0x2b   :  { %557 = vmatprep.mubr.f32.mxu0 %v26_v55  ;;  %569 = vmatpush3.msra.mxu0 %v847_v54 }
  0x2c   :  { %570 = vmatprep.subr.mxu0 %v857_v56  ;;  %604 = vmatprep.subr.mxu1 %v797_v42 }
  0x2d   :  { %571 = vmatpush3.msra.mxu0 %v857_v56 }
  0x2e   :  { %558 = vmatmul.mubr.f32.gmra.mxu0 %v27_v57  ;;  %572 = vmatprep.subr.mxu0 %v867_v58 }
  0x2f   :  { %573 = vmatpush3.msra.mxu0 %v867_v58 }
  0x30   :  { %574 = vmatprep.subr.mxu0 %v874_v59 }
  0x31   :  { %575 = vmatpush3.msra.mxu0 %v874_v59 }
  0x32   :  { %576 = vmatprep.subr.mxu0 %v881_v60 }
  0x33   :  { %577 = vmatpush3.msra.mxu0 %v881_v60 }
  0x34   :  { %578 = vmatprep.subr.mxu0 %v888_v61 }
  0x35   :  { %579 = vmatpush3.msra.mxu0 %v888_v61 }
  0x36   :  { %580 = vmatprep.subr.mxu0 %v895_v62 }
  0x37   :  { %581 = vmatpush3.msra.mxu0 %v895_v62 }
  0x38   :  { %582 = vmatprep.subr.mxu0 %v902_v63 }
  0x39   :  { %583 = vmatpush3.msra.mxu0 %v902_v63 }
  0x3a   :  { %584 = vmatprep.subr.mxu0 %v909_v0 }
  0x3b   :  { %585 = vmatpush3.msra.mxu0 %v909_v0 }
  0x3c   :  { %586 = vmatprep.subr.mxu0 %v918_v1 }
  0x3d   :  { %587 = vmatpush3.msra.mxu0 %v918_v1 }
  0x3e   :  { %588 = vmatprep.subr.mxu0 %v931_v4 }
  0x3f   :  { %589 = vmatpush3.msra.mxu0 %v931_v4 }
  0x40   :  { %590 = vmatprep.subr.mxu0 %v944_v7 }
  0x41   :  { %591 = vmatpush3.msra.mxu0 %v944_v7 }
  0xe2   :  { %v550_v9 = vpop.f32.mrf.mxu0 }
  0xe3   :  { %v123_v13 = vadd.f32 %v550_v9, %v467_v10 }
  0xe4   :  { %v117_v11 = vpop.f32.mrf.mxu0 }
  0xe5   :  { %v118_v12 = vadd.f32 %v467_v10, %v117_v11 }
  0xe6   :  { %v553_v14 = vpop.f32.mrf.mxu0 }
  0xe7   :  { %286 = vmatmul.mubr.f32.vlgmr.msra.gmra.mxu1 %v118_v12  ;;  %592 = vmatprep.mubr.f32.mxu0 %v118_v12  ;;  %v133_v16 = vadd.f32 %v553_v14, %v467_v10 }
  0xe8   :  { %620 = vmatpush3.msra.mxu1 %v797_v42  ;;  %v127_v15 = vpop.f32.mrf.mxu0  ;;  %593 = vmatmul.mubr.f32.vlgmr.msra.gmra.mxu0 %v123_v13 }
  0xe9   :  { %v128_v17 = vadd.f32 %v467_v10, %v127_v15  ;;  %605 = vmatprep.subr.mxu1 %v805_v44  ;;  %291 = vmatprep.mubr.f32.mxu1 %v637_v8 }
  0xea   :  { %621 = vmatpush3.msra.mxu1 %v805_v44  ;;  %v556_v18 = vpop.f32.mrf.mxu0 }
  0xeb   :  { %606 = vmatprep.subr.mxu1 %v821_v48  ;;  %292 = vmatmul.mubr.f32.gmra.mxu1 %v123_v13  ;;  %v143_v22 = vadd.f32 %v556_v18, %v467_v10 }
  0xec   :  { %622 = vmatpush3.msra.mxu1 %v821_v48  ;;  %595 = vmatprep.mubr.f32.mxu0 %v128_v17  ;;  %v137_v19 = vpop.f32.mrf.mxu0 }
  0xed   :  { %607 = vmatprep.subr.mxu1 %v831_v50  ;;  %596 = vmatmul.mubr.f32.gmra.mxu0 %v133_v16  ;;  %v138_v20 = vadd.f32 %v467_v10, %v137_v19 }
  0xee   :  { %623 = vmatpush3.msra.mxu1 %v831_v50  ;;  %297 = vmatprep.mubr.f32.mxu1 %v637_v8  ;;  %v559_v21 = vpop.f32.mrf.mxu0 }
  0xef   :  { %608 = vmatprep.subr.mxu1 %v847_v54  ;;  %298 = vmatmul.mubr.f32.gmra.mxu1 %v128_v17  ;;  %v153_v25 = vadd.f32 %v559_v21, %v467_v10 }
  0xf0   :  { %624 = vmatpush3.msra.mxu1 %v847_v54  ;;  %303 = vmatprep.mubr.f32.mxu1 %v637_v8  ;;  %v147_v23 = vpop.f32.mrf.mxu0 }
  0xf1   :  { %609 = vmatprep.subr.mxu1 %v857_v56  ;;  %v148_v24 = vadd.f32 %v467_v10, %v147_v23 }
  0xf2   :  { %625 = vmatpush3.msra.mxu1 %v857_v56 }
  0xf3   :  { %610 = vmatprep.subr.mxu1 %v867_v58  ;;  %304 = vmatmul.mubr.f32.gmra.mxu1 %v133_v16 }
  0xf4   :  { %626 = vmatpush3.msra.mxu1 %v867_v58  ;;  %309 = vmatprep.mubr.f32.mxu1 %v637_v8 }
  0xf5   :  { %611 = vmatprep.subr.mxu1 %v874_v59 }
  0xf6   :  { %627 = vmatpush3.msra.mxu1 %v874_v59 }
  0xf7   :  { %612 = vmatprep.subr.mxu1 %v881_v60  ;;  %310 = vmatmul.mubr.f32.gmra.mxu1 %v138_v20 }
  0xf8   :  { %628 = vmatpush3.msra.mxu1 %v881_v60  ;;  %315 = vmatprep.mubr.f32.mxu1 %v637_v8 }
  0xf9   :  { %613 = vmatprep.subr.mxu1 %v888_v61 }
  0xfa   :  { %629 = vmatpush3.msra.mxu1 %v888_v61 }
  0xfb   :  { %614 = vmatprep.subr.mxu1 %v895_v62  ;;  %316 = vmatmul.mubr.f32.gmra.mxu1 %v143_v22 }
  0xfc   :  { %630 = vmatpush3.msra.mxu1 %v895_v62  ;;  %321 = vmatprep.mubr.f32.mxu1 %v637_v8 }
  0xfd   :  { %615 = vmatprep.subr.mxu1 %v902_v63 }
  0xfe   :  { %631 = vmatpush3.msra.mxu1 %v902_v63 }
  0xff   :  { %616 = vmatprep.subr.mxu1 %v909_v0  ;;  %322 = vmatmul.mubr.f32.gmra.mxu1 %v148_v24 }
 0x100   :  { %632 = vmatpush3.msra.mxu1 %v909_v0  ;;  %327 = vmatprep.mubr.f32.mxu1 %v637_v8 }
 0x101   :  { %617 = vmatprep.subr.mxu1 %v918_v1 }
 0x102   :  { %633 = vmatpush3.msra.mxu1 %v918_v1 }
 0x103   :  { %618 = vmatprep.subr.mxu1 %v931_v4  ;;  %328 = vmatmul.mubr.f32.gmra.mxu1 %v153_v25 }
 0x104   :  { %634 = vmatpush3.msra.mxu1 %v931_v4  ;;  %598 = vmatprep.mubr.f32.mxu1 %v138_v20 }
 0x105   :  { %619 = vmatprep.subr.mxu1 %v944_v7 }
 0x106   :  { %635 = vmatpush3.msra.mxu1 %v944_v7 }
 0x107   :  { %599 = vmatmul.mubr.f32.vlgmr.msra.gmra.mxu1 %v143_v22 }
 0x108   :  { %601 = vmatprep.mubr.f32.mxu1 %v148_v24 }
 0x10b   :  { %602 = vmatmul.mubr.f32.gmra.mxu1 %v153_v25 }
 0x1a7   :  { %v287_v35 = vpop.f32.mrf.mxu1 }
 0x1a8   :  { %v288_v36 = vadd.f32 %v287_v35, %v209_v32  ;;  %v594_v37 = vpop.f32.mrf.mxu0 }
 0x1a9   :  { %v406_v38 = vadd.f32 %v594_v37, %v994_v33  ;;  %v289_v39 = vpop.f32.mrf.mxu1 }
 0x1aa   :  { %439 = vst [vmem:[%s1081_s5] sm:$0xff] %v288_v36  ;;  %v290_v40 = vadd.f32 %v289_v39, %v213_v34  ;;  %v400_v41 = vpop.f32.mrf.mxu0 }
 0x1ab   :  { %444 = vst [vmem:[%s1081_s5 + $0x28] sm:$0xff] %v406_v38  ;;  %v401_v42 = vadd.f32 %v400_v41, %v994_v33  ;;  %v293_v43 = vpop.f32.mrf.mxu1 }
 0x1ac   :  { %440 = vst [vmem:[%s1081_s5 + $0x8] sm:$0xff] %v290_v40  ;;  %v294_v44 = vadd.f32 %v293_v43, %v209_v32 }
 0x1ad   :  { %441 = vst [vmem:[%s1081_s5 + $0x10] sm:$0xff] %v401_v42  ;;  %v597_v45 = vpop.f32.mrf.mxu0  ;;  %v295_v46 = vpop.f32.mrf.mxu1 }
 0x1ae   :  { %442 = vst [vmem:[%s1081_s5 + $0x18] sm:$0xff] %v294_v44  ;;  %v416_v47 = vadd.f32 %v597_v45, %v994_v33  ;;  %v296_v48 = vadd.f32 %v295_v46, %v213_v34 }
 0x1af   :  { %v410_v49 = vpop.f32.mrf.mxu0  ;;  %v299_v50 = vpop.f32.mrf.mxu1 }
 0x1b0   :  { %450 = vst [vmem:[%s1081_s5 + $0x58] sm:$0xff] %v416_v47  ;;  %443 = vst [vmem:[%s1081_s5 + $0x20] sm:$0xff] %v296_v48  ;;  %v411_v51 = vadd.f32 %v410_v49, %v994_v33  ;;  %v300_v52 = vadd.f32 %v299_v50, %v209_v32 }
 0x1b1   :  { %v301_v53 = vpop.f32.mrf.mxu1 }
 0x1b2   :  { %447 = vst [vmem:[%s1081_s5 + $0x40] sm:$0xff] %v411_v51  ;;  %445 = vst [vmem:[%s1081_s5 + $0x30] sm:$0xff] %v300_v52  ;;  %v302_v54 = vadd.f32 %v301_v53, %v213_v34 }
 0x1b3   :  { %v305_v55 = vpop.f32.mrf.mxu1 }
 0x1b4   :  { %446 = vst [vmem:[%s1081_s5 + $0x38] sm:$0xff] %v302_v54  ;;  %v306_v56 = vadd.f32 %v305_v55, %v209_v32 }
 0x1b5   :  { %v307_v57 = vpop.f32.mrf.mxu1 }
 0x1b6   :  { %448 = vst [vmem:[%s1081_s5 + $0x48] sm:$0xff] %v306_v56  ;;  %v308_v58 = vadd.f32 %v307_v57, %v213_v34 }
 0x1b7   :  { %v311_v59 = vpop.f32.mrf.mxu1 }
 0x1b8   :  { %449 = vst [vmem:[%s1081_s5 + $0x50] sm:$0xff] %v308_v58  ;;  %v312_v60 = vadd.f32 %v311_v59, %v209_v32 }
 0x1b9   :  { %v313_v61 = vpop.f32.mrf.mxu1 }
 0x1ba   :  { %451 = vst [vmem:[%s1081_s5 + $0x60] sm:$0xff] %v312_v60  ;;  %v314_v62 = vadd.f32 %v313_v61, %v213_v34 }
 0x1bb   :  { %v317_v63 = vpop.f32.mrf.mxu1 }
 0x1bc   :  { %452 = vst [vmem:[%s1081_s5 + $0x68] sm:$0xff] %v314_v62  ;;  %v318_v0 = vadd.f32 %v317_v63, %v209_v32 }
 0x1bd   :  { %v319_v1 = vpop.f32.mrf.mxu1 }
 0x1be   :  { %454 = vst [vmem:[%s1081_s5 + $0x78] sm:$0xff] %v318_v0  ;;  %v320_v2 = vadd.f32 %v319_v1, %v213_v34 }
 0x1bf   :  { %v323_v3 = vpop.f32.mrf.mxu1 }
 0x1c0   :  { %455 = vst [vmem:[%s1081_s5 + $0x80] sm:$0xff] %v320_v2  ;;  %v324_v4 = vadd.f32 %v323_v3, %v209_v32 }
 0x1c1   :  { %v325_v5 = vpop.f32.mrf.mxu1 }
 0x1c2   :  { %457 = vst [vmem:[%s1081_s5 + $0x90] sm:$0xff] %v324_v4  ;;  %v326_v6 = vadd.f32 %v325_v5, %v213_v34 }
 0x1c3   :  { %v329_v7 = vpop.f32.mrf.mxu1 }
 0x1c4   :  { %458 = vst [vmem:[%s1081_s5 + $0x98] sm:$0xff] %v326_v6  ;;  %v330_v8 = vadd.f32 %v329_v7, %v209_v32 }
 0x1c5   :  { %v331_v9 = vpop.f32.mrf.mxu1 }
 0x1c6   :  { %460 = vst [vmem:[%s1081_s5 + $0xa8] sm:$0xff] %v330_v8  ;;  %v332_v10 = vadd.f32 %v331_v9, %v213_v34 }
 0x1c7   :  { %v600_v11 = vpop.f32.mrf.mxu1 }
 0x1c8   :  { %461 = vst [vmem:[%s1081_s5 + $0xb0] sm:$0xff] %v332_v10  ;;  %v426_v12 = vadd.f32 %v600_v11, %v994_v33 }
 0x1c9   :  { %v420_v13 = vpop.f32.mrf.mxu1 }
 0x1ca   :  { %456 = vst [vmem:[%s1081_s5 + $0x88] sm:$0xff] %v426_v12  ;;  %v421_v14 = vadd.f32 %v420_v13, %v994_v33 }
 0x1cb   :  { %v603_v15 = vpop.f32.mrf.mxu1 }
 0x1cc   :  { %453 = vst [vmem:[%s1081_s5 + $0x70] sm:$0xff] %v421_v14  ;;  %v436_v16 = vadd.f32 %v603_v15, %v994_v33 }
 0x1cd   :  { %v430_v17 = vpop.f32.mrf.mxu1 }
 0x1ce   :  { %462 = vst [vmem:[%s1081_s5 + $0xb8] sm:$0xff] %v436_v16  ;;  %v431_v18 = vadd.f32 %v430_v17, %v994_v33 }
 0x1d0   :  { %459 = vst [vmem:[%s1081_s5 + $0xa0] sm:$0xff] %v431_v18 }

// kernel: seq2seq_forward.6
= control target key start
LH: loop header
LB: loop body
LE: loop exit
PB: predicated region body
PF: predicated region fallthrough
CT: control target
= control target key end

     0   :  { %v3240_v3 = vmov 0.0   ;;  %vm2023_vm0 = vmmov 0   ;;  %v69_v49 = vlaneseq  ;;  %s3235_s1 = inlined_call_operand.vmem [shape: f32[128,384], index: 1, kind: input, shape index: {}]   ;;  %s3236_s2 = inlined_call_operand.vmem [shape: f32[1,384], index: 2, kind: input, shape index: {}]   ;;  %s3237_s0 = inlined_call_operand.vmem [shape: f32[8,8,384], index: 0, kind: input, shape index: {}]   ;;  %s3238_s3 = inlined_call_operand.vmem [shape: f32[8,8,128], index: 3, kind: output, shape index: {0}]   ;;  %s3239_s4 = inlined_call_operand.vmem [shape: f32[8,128], index: 4, kind: output, shape index: {1}]  }
   0x1   :  { %v2052_v0 = vld [vmem:[%s3235_s1 + $0x170] sm:$0xff]  ;;  %v2057_v1 = vld [vmem:[%s3235_s1 + $0x168] sm:$0xff]  ;;  %v2062_v2 = vld [vmem:[%s3235_s1 + $0x158] sm:$0xff]  ;;  %148 = vmatprep.mubr.f32.mxu0 %v3240_v3  ;;  %1612 = vmatprep.subr.mxu1 %v3240_v3 }
   0x2   :  { %3256 = vst [vmem:[#allocation2_spill] sm:$0xff] %v2052_v0  ;;  %84 = vmatprep.subr.mxu0 %v2052_v0  ;;  %v2070_v4 = vld [vmem:[%s3235_s1 + $0x150] sm:$0xff]  ;;  %1644 = vmatprep.mubr.msk.f32.mxu1 %vm2023_vm0, %v3240_v3  ;;  %v2078_v5 = vld [vmem:[%s3235_s1 + $0x140] sm:$0xff]  ;;  %v2084_v6 = vld [vmem:[%s3235_s1 + $0x138] sm:$0xff]  ;;  %v70_v50 = vshrl.u32 %v69_v49, 7 }
   0x3   :  { %85 = vmatpush1.msra.mxu0 %v2057_v1  ;;  %v2090_v7 = vld [vmem:[%s3235_s1 + $0x128] sm:$0xff]  ;;  %v2096_v8 = vld [vmem:[%s3235_s1 + $0x120] sm:$0xff]  ;;  %v2102_v9 = vld [vmem:[%s3235_s1 + $0x110] sm:$0xff] }
   0x4   :  { %86 = vmatprep.subr.mxu0 %v2062_v2  ;;  %v2108_v10 = vld [vmem:[%s3235_s1 + $0x108] sm:$0xff]  ;;  %v2114_v11 = vld [vmem:[%s3235_s1 + $0xf8] sm:$0xff]  ;;  %v2120_v12 = vld [vmem:[%s3235_s1 + $0xf0] sm:$0xff]  ;;  %v71_v51 = vsub.s32 0, %v70_v50  ;;  %v75_v54 = vsub.s32 1, %v70_v50 }
   0x5   :  { %87 = vmatpush1.msra.mxu0 %v2070_v4  ;;  %v2126_v13 = vld [vmem:[%s3235_s1 + $0xe0] sm:$0xff]  ;;  %v2131_v14 = vld [vmem:[%s3235_s1 + $0x178] sm:$0xff]  ;;  %v2149_v17 = vld [vmem:[%s3235_s1 + $0xc8] sm:$0xff] }
   0x6   :  { %88 = vmatprep.subr.mxu0 %v2078_v5  ;;  %v2137_v15 = vld [vmem:[%s3235_s1 + $0xd8] sm:$0xff]  ;;  %1613 = vmatpush3.msra.mxu1 %v2131_v14  ;;  %v2143_v16 = vld [vmem:[%s3235_s1 + $0x160] sm:$0xff]  ;;  %v2155_v18 = vld [vmem:[%s3235_s1 + $0x148] sm:$0xff] }
   0x7   :  { %89 = vmatpush1.msra.mxu0 %v2084_v6  ;;  %1614 = vmatprep.subr.mxu1 %v3240_v3  ;;  %v2161_v19 = vld [vmem:[%s3235_s1 + $0xc0] sm:$0xff]  ;;  %v2168_v20 = vld [vmem:[%s3235_s1 + $0xb0] sm:$0xff]  ;;  %v2180_v22 = vld [vmem:[%s3235_s1 + $0xa8] sm:$0xff] }
   0x8   :  { %90 = vmatprep.subr.mxu0 %v2090_v7  ;;  %1615 = vmatpush3.msra.mxu1 %v2143_v16  ;;  %v2174_v21 = vld [vmem:[%s3235_s1 + $0x130] sm:$0xff]  ;;  %v2187_v23 = vld [vmem:[%s3235_s1 + $0x98] sm:$0xff]  ;;  %v2206_v26 = vld [vmem:[%s3235_s1 + $0x80] sm:$0xff] }
   0x9   :  { %91 = vmatpush1.msra.mxu0 %v2096_v8  ;;  %1616 = vmatprep.subr.mxu1 %v3240_v3  ;;  %v2193_v24 = vld [vmem:[%s3235_s1 + $0x118] sm:$0xff]  ;;  %v2199_v25 = vld [vmem:[%s3235_s1 + $0x90] sm:$0xff]  ;;  %v2212_v27 = vld [vmem:[%s3235_s1 + $0x100] sm:$0xff] }
   0xa   :  { %92 = vmatprep.subr.mxu0 %v2102_v9  ;;  %1617 = vmatpush3.msra.mxu1 %v2155_v18  ;;  %v2218_v28 = vld [vmem:[%s3235_s1 + $0x78] sm:$0xff]  ;;  %v2225_v29 = vld [vmem:[%s3235_s1 + $0x68] sm:$0xff]  ;;  %v2237_v31 = vld [vmem:[%s3235_s1 + $0x60] sm:$0xff] }
   0xb   :  { %93 = vmatpush1.msra.mxu0 %v2108_v10  ;;  %1618 = vmatprep.subr.mxu1 %v3240_v3  ;;  %v2231_v30 = vld [vmem:[%s3235_s1 + $0xe8] sm:$0xff]  ;;  %v2244_v32 = vld [vmem:[%s3235_s1 + $0x50] sm:$0xff]  ;;  %v2263_v35 = vld [vmem:[%s3235_s1 + $0x38] sm:$0xff] }
   0xc   :  { %94 = vmatprep.subr.mxu0 %v2114_v11  ;;  %1619 = vmatpush3.msra.mxu1 %v2174_v21  ;;  %v2250_v33 = vld [vmem:[%s3235_s1 + $0xd0] sm:$0xff]  ;;  %v2256_v34 = vld [vmem:[%s3235_s1 + $0x48] sm:$0xff]  ;;  %v2269_v36 = vld [vmem:[%s3235_s1 + $0xb8] sm:$0xff] }
   0xd   :  { %95 = vmatpush1.msra.mxu0 %v2120_v12  ;;  %1620 = vmatprep.subr.mxu1 %v3240_v3  ;;  %v2275_v37 = vld [vmem:[%s3235_s1 + $0x30] sm:$0xff]  ;;  %v2282_v38 = vld [vmem:[%s3235_s1 + $0x20] sm:$0xff]  ;;  %v2294_v40 = vld [vmem:[%s3235_s1 + $0x18] sm:$0xff] }
   0xe   :  { %96 = vmatprep.subr.mxu0 %v2126_v13  ;;  %1621 = vmatpush3.msra.mxu1 %v2193_v24  ;;  %v2288_v39 = vld [vmem:[%s3235_s1 + $0xa0] sm:$0xff]  ;;  %v2301_v41 = vld [vmem:[%s3235_s1 + $0x8] sm:$0xff]  ;;  %v2321_v44 = vld [vmem:[%s3235_s1 + $0x70] sm:$0xff] }
   0xf   :  { %97 = vmatpush1.msra.mxu0 %v2137_v15  ;;  %1622 = vmatprep.subr.mxu1 %v3240_v3  ;;  %3257 = vst [vmem:[#allocation3_spill] sm:$0xff] %v2301_v41  ;;  %v2307_v42 = vld [vmem:[%s3235_s1 + $0x88] sm:$0xff]  ;;  %v2313_v43 = vld [vmem:[%s3235_s1] sm:$0xff]  ;;  %v2330_v45 = vld [vmem:[%s3235_s1 + $0x58] sm:$0xff] }
  0x10   :  { %98 = vmatprep.subr.mxu0 %v2149_v17  ;;  %1623 = vmatpush3.msra.mxu1 %v2212_v27  ;;  %3258 = vst [vmem:[#allocation4_spill] sm:$0xff] %v2313_v43  ;;  %v2338_v46 = vld [vmem:[%s3235_s1 + $0x40] sm:$0xff]  ;;  %v2347_v47 = vld [vmem:[%s3235_s1 + $0x28] sm:$0xff]  ;;  %v2356_v48 = vld [vmem:[%s3235_s1 + $0x10] sm:$0xff] }
  0x11   :  { %99 = vmatpush1.msra.mxu0 %v2161_v19  ;;  %1624 = vmatprep.subr.mxu1 %v3240_v3  ;;  %3259 = vst [vmem:[#allocation5_spill] sm:$0xff] %v2347_v47  ;;  %3260 = vst [vmem:[#allocation6_spill] sm:$0xff] %v2356_v48  ;;  %v64_v52 = vld [vmem:[%s3236_s2] sm:$0x7]  ;;  %v66_v63 = vld [vmem:[%s3237_s0 + $0x8] sm:$0xff] }
  0x12   :  { %100 = vmatprep.subr.mxu0 %v2168_v20  ;;  %1625 = vmatpush3.msra.mxu1 %v2231_v30  ;;  %v2430_v53 = vrot.slane %v64_v52, %v71_v51  ;;  %v65_v55 = vld [vmem:[%s3237_s0] sm:$0xff]  ;;  %v2436_v58 = vrot.slane %v64_v52, %v75_v54  ;;  %v79_v54 = vsub.s32 2, %v70_v50 }
  0x13   :  { %101 = vmatpush1.msra.mxu0 %v2180_v22  ;;  %1626 = vmatprep.subr.mxu1 %v3240_v3 }
  0x14   :  { %102 = vmatprep.subr.mxu0 %v2187_v23  ;;  %1627 = vmatpush3.msra.mxu1 %v2250_v33 }
  0x15   :  { %103 = vmatpush1.msra.mxu0 %v2199_v25  ;;  %1628 = vmatprep.subr.mxu1 %v3240_v3 }
  0x16   :  { %104 = vmatprep.subr.mxu0 %v2206_v26  ;;  %1629 = vmatpush3.msra.mxu1 %v2269_v36 }
  0x17   :  { %105 = vmatpush1.msra.mxu0 %v2218_v28  ;;  %1630 = vmatprep.subr.mxu1 %v3240_v3 }
  0x18   :  { %106 = vmatprep.subr.mxu0 %v2225_v29  ;;  %1631 = vmatpush3.msra.mxu1 %v2288_v39 }
  0x19   :  { %107 = vmatpush1.msra.mxu0 %v2237_v31  ;;  %1632 = vmatprep.subr.mxu1 %v3240_v3 }
  0x1a   :  { %108 = vmatprep.subr.mxu0 %v2244_v32  ;;  %1633 = vmatpush3.msra.mxu1 %v2307_v42 }
  0x1b   :  { %109 = vmatpush1.msra.mxu0 %v2256_v34  ;;  %1634 = vmatprep.subr.mxu1 %v3240_v3 }
  0x1c   :  { %110 = vmatprep.subr.mxu0 %v2263_v35  ;;  %1635 = vmatpush3.msra.mxu1 %v2321_v44 }
  0x1d   :  { %111 = vmatpush1.msra.mxu0 %v2275_v37  ;;  %1636 = vmatprep.subr.mxu1 %v3240_v3 }
  0x1e   :  { %112 = vmatprep.subr.mxu0 %v2282_v38  ;;  %1637 = vmatpush3.msra.mxu1 %v2330_v45 }
  0x1f   :  { %113 = vmatpush1.msra.mxu0 %v2294_v40  ;;  %1638 = vmatprep.subr.mxu1 %v3240_v3 }
  0x20   :  { %114 = vmatprep.subr.mxu0 %v2301_v41  ;;  %1639 = vmatpush3.msra.mxu1 %v2338_v46 }
  0x21   :  { %115 = vmatpush1.msra.mxu0 %v2313_v43  ;;  %1640 = vmatprep.subr.mxu1 %v3240_v3 }
  0x22   :  { %149 = vmatmul.mubr.f32.vlgmr.msra.gmra.mxu0 %v3240_v3  ;;  %251 = vmatprep.subr.mxu0 %v2052_v0 }
  0x23   :  { %252 = vmatpush1.msra.mxu0 %v2057_v1  ;;  %1641 = vmatpush3.msra.mxu1 %v2347_v47 }
  0x24   :  { %253 = vmatprep.subr.mxu0 %v2062_v2  ;;  %1642 = vmatprep.subr.mxu1 %v3240_v3 }
  0x25   :  { %254 = vmatpush1.msra.mxu0 %v2070_v4  ;;  %1643 = vmatpush3.msra.mxu1 %v2356_v48 }
  0x26   :  { %255 = vmatprep.subr.mxu0 %v2078_v5  ;;  %1645 = vmatmul.mubr.f32.vlgmr.msra.gmra.mxu1 %v3240_v3 }
  0x27   :  { %256 = vmatpush1.msra.mxu0 %v2084_v6  ;;  %1647 = vmatprep.subr.mxu1 %v3240_v3 }
  0x28   :  { %257 = vmatprep.subr.mxu0 %v2090_v7  ;;  %1648 = vmatpush3.msra.mxu1 %v2131_v14 }
  0x29   :  { %258 = vmatpush1.msra.mxu0 %v2096_v8  ;;  %1649 = vmatprep.subr.mxu1 %v3240_v3 }
  0x2a   :  { %259 = vmatprep.subr.mxu0 %v2102_v9  ;;  %1650 = vmatpush3.msra.mxu1 %v2143_v16 }
  0x2b   :  { %260 = vmatpush1.msra.mxu0 %v2108_v10  ;;  %1651 = vmatprep.subr.mxu1 %v3240_v3 }
  0x2c   :  { %261 = vmatprep.subr.mxu0 %v2114_v11  ;;  %1652 = vmatpush3.msra.mxu1 %v2155_v18 }
  0x2d   :  { %262 = vmatpush1.msra.mxu0 %v2120_v12  ;;  %1653 = vmatprep.subr.mxu1 %v3240_v3 }
  0x2e   :  { %263 = vmatprep.subr.mxu0 %v2126_v13  ;;  %1654 = vmatpush3.msra.mxu1 %v2174_v21 }
  0x2f   :  { %264 = vmatpush1.msra.mxu0 %v2137_v15  ;;  %1655 = vmatprep.subr.mxu1 %v3240_v3 }
  0x30   :  { %265 = vmatprep.subr.mxu0 %v2149_v17  ;;  %1656 = vmatpush3.msra.mxu1 %v2193_v24 }
  0x31   :  { %266 = vmatpush1.msra.mxu0 %v2161_v19  ;;  %1657 = vmatprep.subr.mxu1 %v3240_v3 }
  0x32   :  { %267 = vmatprep.subr.mxu0 %v2168_v20  ;;  %1658 = vmatpush3.msra.mxu1 %v2212_v27 }
  0x33   :  { %268 = vmatpush1.msra.mxu0 %v2180_v22  ;;  %1659 = vmatprep.subr.mxu1 %v3240_v3 }
  0x34   :  { %269 = vmatprep.subr.mxu0 %v2187_v23  ;;  %1660 = vmatpush3.msra.mxu1 %v2231_v30 }
  0x35   :  { %270 = vmatpush1.msra.mxu0 %v2199_v25  ;;  %1661 = vmatprep.subr.mxu1 %v3240_v3 }
  0x36   :  { %271 = vmatprep.subr.mxu0 %v2206_v26  ;;  %1662 = vmatpush3.msra.mxu1 %v2250_v33 }
  0x37   :  { %272 = vmatpush1.msra.mxu0 %v2218_v28  ;;  %1663 = vmatprep.subr.mxu1 %v3240_v3 }
  0x38   :  { %273 = vmatprep.subr.mxu0 %v2225_v29  ;;  %1664 = vmatpush3.msra.mxu1 %v2269_v36 }
  0x39   :  { %274 = vmatpush1.msra.mxu0 %v2237_v31  ;;  %1665 = vmatprep.subr.mxu1 %v3240_v3 }
  0x3a   :  { %275 = vmatprep.subr.mxu0 %v2244_v32  ;;  %1666 = vmatpush3.msra.mxu1 %v2288_v39 }
  0x3b   :  { %276 = vmatpush1.msra.mxu0 %v2256_v34  ;;  %1667 = vmatprep.subr.mxu1 %v3240_v3 }
  0x3c   :  { %277 = vmatprep.subr.mxu0 %v2263_v35  ;;  %1668 = vmatpush3.msra.mxu1 %v2307_v42 }
  0x3d   :  { %278 = vmatpush1.msra.mxu0 %v2275_v37  ;;  %1669 = vmatprep.subr.mxu1 %v3240_v3 }
  0x3e   :  { %279 = vmatprep.subr.mxu0 %v2282_v38  ;;  %1670 = vmatpush3.msra.mxu1 %v2321_v44 }
  0x3f   :  { %280 = vmatpush1.msra.mxu0 %v2294_v40  ;;  %1671 = vmatprep.subr.mxu1 %v3240_v3 }
  0x40   :  { %281 = vmatprep.subr.mxu0 %v2301_v41  ;;  %1672 = vmatpush3.msra.mxu1 %v2330_v45 }
  0x41   :  { %282 = vmatpush1.msra.mxu0 %v2313_v43  ;;  %315 = vmatprep.mubr.f32.mxu0 %v3240_v3 }
  0x42   :  { %1673 = vmatprep.subr.mxu1 %v3240_v3  ;;  %1679 = vmatprep.mubr.msk.f32.mxu1 %vm2023_vm0, %v3240_v3 }
  0x43   :  { %1674 = vmatpush3.msra.mxu1 %v2338_v46  ;;  %419 = vmatprep.subr.mxu0 %v2052_v0 }
  0x44   :  { %1675 = vmatprep.subr.mxu1 %v3240_v3 }
  0x45   :  { %1676 = vmatpush3.msra.mxu1 %v2347_v47 }
  0x46   :  { %1677 = vmatprep.subr.mxu1 %v3240_v3 }
  0x47   :  { %1678 = vmatpush3.msra.mxu1 %v2356_v48 }
  0x48   :  { %1682 = vmatprep.subr.mxu1 %v3240_v3 }
  0xe2   :  { %v150_v56 = vpop.f32.mrf.mxu0 }
  0xe3   :  { %v151_v57 = vadd.f32 %v150_v56, %v2430_v53  ;;  %v2442_v56 = vrot.slane %v64_v52, %v79_v54  ;;  %v3263_v54 = vld [vmem:[#allocation6_spill] sm:$0xff] }
  0xe4   :  { %v152_v59 = vpop.f32.mrf.mxu0 }
  0xe5   :  { %v225_v60 = vadd.f32 %v151_v57, %v65_v55  ;;  %v153_v62 = vadd.f32 %v152_v59, %v2436_v58 }
  0xe6   :  { %v221_v51 = vpop.f32.mrf.mxu1 }
  0xe7   :  { %v1432_v61 = vmul.f32 -1.442695, %v225_v60  ;;  %v232_v49 = vadd.f32 %v153_v62, %v66_v63  ;;  %v222_v59 = vadd.f32 %v221_v51, %v2442_v56  ;;  %v3262_v51 = vld [vmem:[#allocation4_spill] sm:$0xff] }
  0xe8   :  { %v1646_v3 = vpop.f32.mrf.mxu1 }
  0xe9   :  { %1894 = vpow2.f32 %v1432_v61  ;;  %v1433_v0 = vmul.f32 -1.442695, %v232_v49  ;;  %v67_v61 = vld [vmem:[%s3237_s0 + $0x10] sm:$0xff]  ;;  %v3261_v49 = vmov 0.0  }
  0xeb   :  { %1896 = vpow2.f32 %v1433_v0 }
  0xf6   :  { %v1895_v48 = vpop.eup %1894 }
  0xf7   :  { %v229_v43 = vadd.f32 1.0, %v1895_v48 }
  0xf8   :  { %v1897_v55 = vpop.eup %1896 }
  0xf9   :  { %1898 = vrcp.f32 %v229_v43  ;;  %v236_v57 = vadd.f32 1.0, %v1897_v55  ;;  %v3264_v55 = vld [vmem:[#allocation2_spill] sm:$0xff] }
  0xfb   :  { %1900 = vrcp.f32 %v236_v57  ;;  %v1434_v57 = vld [vmem:[%s3237_s0 + $0x18] sm:$0xff] }
 0x106   :  { %v1899_v60 = vpop.eup %1898 }
 0x107   :  { %v239_v62 = vmul.f32 %v1899_v60, %v222_v59 }
 0x108   :  { %v1901_v0 = vpop.eup %1900 }
 0x109   :  { %v240_v3 = vadd.f32 %v239_v62, %v67_v61  ;;  %v242_v63 = vsub.f32 1.0, %v1901_v0  ;;  %v244_v50 = vmul.f32 0.0, %v1901_v0 }
 0x10b   :  { %1902 = vtanh.f32 %v240_v3 }
 0x118   :  { %v1903_v48 = vpop.eup %1902 }
 0x119   :  { %v243_v43 = vmul.f32 %v1903_v48, %v242_v63 }
 0x11b   :  { %v2448_v52 = vadd.f32 %v244_v50, %v243_v43  ;;  %v1435_v43 = vld [vmem:[%s3237_s0 + $0x20] sm:$0xff] }
 0x11d   :  { %246 = vst [vmem:[%s3238_s3] sm:$0xff] %v2448_v52  ;;  %316 = vmatmul.mubr.f32.vlgmr.msra.gmra.mxu0 %v2448_v52  ;;  %1680 = vmatmul.mubr.f32.vlgmr.msra.gmra.mxu1 %v2448_v52 }
 0x11e   :  { %420 = vmatpush1.msra.mxu0 %v2057_v1  ;;  %1683 = vmatpush3.msra.mxu1 %v2131_v14 }
 0x11f   :  { %421 = vmatprep.subr.mxu0 %v2062_v2  ;;  %1684 = vmatprep.subr.mxu1 %v3261_v49 }
 0x120   :  { %422 = vmatpush1.msra.mxu0 %v2070_v4  ;;  %1685 = vmatpush3.msra.mxu1 %v2143_v16 }
 0x121   :  { %423 = vmatprep.subr.mxu0 %v2078_v5  ;;  %1686 = vmatprep.subr.mxu1 %v3261_v49 }
 0x122   :  { %424 = vmatpush1.msra.mxu0 %v2084_v6  ;;  %1687 = vmatpush3.msra.mxu1 %v2155_v18 }
 0x123   :  { %425 = vmatprep.subr.mxu0 %v2090_v7  ;;  %1688 = vmatprep.subr.mxu1 %v3261_v49 }
 0x124   :  { %426 = vmatpush1.msra.mxu0 %v2096_v8  ;;  %1689 = vmatpush3.msra.mxu1 %v2174_v21 }
 0x125   :  { %427 = vmatprep.subr.mxu0 %v2102_v9  ;;  %1690 = vmatprep.subr.mxu1 %v3261_v49 }
 0x126   :  { %428 = vmatpush1.msra.mxu0 %v2108_v10  ;;  %1691 = vmatpush3.msra.mxu1 %v2193_v24 }
 0x127   :  { %429 = vmatprep.subr.mxu0 %v2114_v11  ;;  %1692 = vmatprep.subr.mxu1 %v3261_v49 }
 0x128   :  { %430 = vmatpush1.msra.mxu0 %v2120_v12  ;;  %1693 = vmatpush3.msra.mxu1 %v2212_v27 }
 0x129   :  { %431 = vmatprep.subr.mxu0 %v2126_v13  ;;  %1694 = vmatprep.subr.mxu1 %v3261_v49 }
 0x12a   :  { %432 = vmatpush1.msra.mxu0 %v2137_v15  ;;  %1695 = vmatpush3.msra.mxu1 %v2231_v30 }
 0x12b   :  { %433 = vmatprep.subr.mxu0 %v2149_v17  ;;  %1696 = vmatprep.subr.mxu1 %v3261_v49 }
 0x12c   :  { %434 = vmatpush1.msra.mxu0 %v2161_v19  ;;  %1697 = vmatpush3.msra.mxu1 %v2250_v33 }
 0x12d   :  { %435 = vmatprep.subr.mxu0 %v2168_v20  ;;  %1698 = vmatprep.subr.mxu1 %v3261_v49 }
 0x12e   :  { %436 = vmatpush1.msra.mxu0 %v2180_v22  ;;  %1699 = vmatpush3.msra.mxu1 %v2269_v36 }
 0x12f   :  { %437 = vmatprep.subr.mxu0 %v2187_v23  ;;  %1700 = vmatprep.subr.mxu1 %v3261_v49 }
 0x130   :  { %438 = vmatpush1.msra.mxu0 %v2199_v25  ;;  %1701 = vmatpush3.msra.mxu1 %v2288_v39 }
 0x131   :  { %439 = vmatprep.subr.mxu0 %v2206_v26  ;;  %1702 = vmatprep.subr.mxu1 %v3261_v49 }
 0x132   :  { %440 = vmatpush1.msra.mxu0 %v2218_v28  ;;  %1703 = vmatpush3.msra.mxu1 %v2307_v42 }
 0x133   :  { %441 = vmatprep.subr.mxu0 %v2225_v29  ;;  %1704 = vmatprep.subr.mxu1 %v3261_v49 }
 0x134   :  { %442 = vmatpush1.msra.mxu0 %v2237_v31  ;;  %1705 = vmatpush3.msra.mxu1 %v2321_v44 }
 0x135   :  { %443 = vmatprep.subr.mxu0 %v2244_v32  ;;  %1706 = vmatprep.subr.mxu1 %v3261_v49 }
 0x136   :  { %444 = vmatpush1.msra.mxu0 %v2256_v34  ;;  %1707 = vmatpush3.msra.mxu1 %v2330_v45 }
 0x137   :  { %445 = vmatprep.subr.mxu0 %v2263_v35  ;;  %1708 = vmatprep.subr.mxu1 %v3261_v49 }
 0x138   :  { %446 = vmatpush1.msra.mxu0 %v2275_v37  ;;  %1709 = vmatpush3.msra.mxu1 %v2338_v46 }
 0x139   :  { %447 = vmatprep.subr.mxu0 %v2282_v38  ;;  %1710 = vmatprep.subr.mxu1 %v3261_v49 }
 0x13a   :  { %448 = vmatpush1.msra.mxu0 %v2294_v40  ;;  %1711 = vmatpush3.msra.mxu1 %v2347_v47 }
 0x13b   :  { %449 = vmatprep.subr.mxu0 %v2301_v41  ;;  %1712 = vmatprep.subr.mxu1 %v3261_v49 }
 0x13c   :  { %450 = vmatpush1.msra.mxu0 %v3262_v51  ;;  %483 = vmatprep.mubr.f32.mxu0 %v3261_v49 }
 0x13d   :  { %1713 = vmatpush3.msra.mxu1 %v3263_v54  ;;  %1714 = vmatprep.mubr.msk.f32.mxu1 %vm2023_vm0, %v3261_v49 }
 0x13e   :  { %587 = vmatprep.subr.mxu0 %v3264_v55  ;;  %1717 = vmatprep.subr.mxu1 %v3261_v49 }
 0x1dd   :  { %v317_v59 = vpop.f32.mrf.mxu0  ;;  %v388_v60 = vpop.f32.mrf.mxu1 }
 0x1de   :  { %v318_v61 = vadd.f32 %v317_v59, %v2430_v53  ;;  %v389_v59 = vadd.f32 %v388_v60, %v2442_v56  ;;  %v3268_v60 = vld [vmem:[#allocation6_spill] sm:$0xff] }
 0x1df   :  { %v319_v62 = vpop.f32.mrf.mxu0  ;;  %v1681_v3 = vpop.f32.mrf.mxu1 }
 0x1e0   :  { %v392_v0 = vadd.f32 %v1434_v57, %v318_v61  ;;  %v320_v48 = vadd.f32 %v319_v62, %v2436_v58  ;;  %v1436_v57 = vld [vmem:[%s3237_s0 + $0x28] sm:$0xff] }
 0x1e2   :  { %v1437_v63 = vmul.f32 -1.442695, %v392_v0  ;;  %v399_v50 = vadd.f32 %v1435_v43, %v320_v48  ;;  %v3269_v43 = vld [vmem:[#allocation2_spill] sm:$0xff] }
 0x1e4   :  { %1904 = vpow2.f32 %v1437_v63  ;;  %v1438_v55 = vmul.f32 -1.442695, %v399_v50  ;;  %v1440_v50 = vld [vmem:[%s3237_s0 + $0x30] sm:$0xff] }
 0x1e6   :  { %1906 = vpow2.f32 %v1438_v55 }
 0x1f1   :  { %v1905_v54 = vpop.eup %1904 }
 0x1f2   :  { %v396_v51 = vadd.f32 1.0, %v1905_v54 }
 0x1f3   :  { %v1907_v41 = vpop.eup %1906 }
 0x1f4   :  { %1908 = vrcp.f32 %v396_v51  ;;  %v403_v47 = vadd.f32 1.0, %v1907_v41  ;;  %v3265_v41 = vld [vmem:[#allocation5_spill] sm:$0xff] }
 0x1f6   :  { %1910 = vrcp.f32 %v403_v47  ;;  %v3266_v47 = vld [vmem:[#allocation3_spill] sm:$0xff] }
 0x201   :  { %v1909_v3 = vpop.eup %1908 }
 0x202   :  { %v406_v61 = vmul.f32 %v1909_v3, %v389_v59 }
 0x203   :  { %v1911_v0 = vpop.eup %1910 }
 0x204   :  { %v407_v62 = vadd.f32 %v1436_v57, %v406_v61  ;;  %v409_v63 = vsub.f32 1.0, %v1911_v0  ;;  %v411_v54 = vmul.f32 %v1911_v0, %v2448_v52  ;;  %v3267_v52 = vld [vmem:[#allocation4_spill] sm:$0xff] }
 0x206   :  { %1912 = vtanh.f32 %v407_v62 }
 0x213   :  { %v1913_v48 = vpop.eup %1912 }
 0x214   :  { %v410_v55 = vmul.f32 %v1913_v48, %v409_v63 }
 0x216   :  { %v2536_v51 = vadd.f32 %v411_v54, %v410_v55  ;;  %v1441_v55 = vld [vmem:[%s3237_s0 + $0x38] sm:$0xff] }
 0x218   :  { %1439 = vst [vmem:[%s3238_s3 + $0x8] sm:$0xff] %v2536_v51  ;;  %484 = vmatmul.mubr.f32.vlgmr.msra.gmra.mxu0 %v2536_v51  ;;  %1715 = vmatmul.mubr.f32.vlgmr.msra.gmra.mxu1 %v2536_v51 }
 0x219   :  { %588 = vmatpush1.msra.mxu0 %v2057_v1  ;;  %1718 = vmatpush3.msra.mxu1 %v2131_v14 }
 0x21a   :  { %589 = vmatprep.subr.mxu0 %v2062_v2  ;;  %1719 = vmatprep.subr.mxu1 %v3261_v49 }
 0x21b   :  { %590 = vmatpush1.msra.mxu0 %v2070_v4  ;;  %1720 = vmatpush3.msra.mxu1 %v2143_v16 }
 0x21c   :  { %591 = vmatprep.subr.mxu0 %v2078_v5  ;;  %1721 = vmatprep.subr.mxu1 %v3261_v49 }
 0x21d   :  { %592 = vmatpush1.msra.mxu0 %v2084_v6  ;;  %1722 = vmatpush3.msra.mxu1 %v2155_v18 }
 0x21e   :  { %593 = vmatprep.subr.mxu0 %v2090_v7  ;;  %1723 = vmatprep.subr.mxu1 %v3261_v49 }
 0x21f   :  { %594 = vmatpush1.msra.mxu0 %v2096_v8  ;;  %1724 = vmatpush3.msra.mxu1 %v2174_v21 }
 0x220   :  { %595 = vmatprep.subr.mxu0 %v2102_v9  ;;  %1725 = vmatprep.subr.mxu1 %v3261_v49 }
 0x221   :  { %596 = vmatpush1.msra.mxu0 %v2108_v10  ;;  %1726 = vmatpush3.msra.mxu1 %v2193_v24 }
 0x222   :  { %597 = vmatprep.subr.mxu0 %v2114_v11  ;;  %1727 = vmatprep.subr.mxu1 %v3261_v49 }
 0x223   :  { %598 = vmatpush1.msra.mxu0 %v2120_v12  ;;  %1728 = vmatpush3.msra.mxu1 %v2212_v27 }
 0x224   :  { %599 = vmatprep.subr.mxu0 %v2126_v13  ;;  %1729 = vmatprep.subr.mxu1 %v3261_v49 }
 0x225   :  { %600 = vmatpush1.msra.mxu0 %v2137_v15  ;;  %1730 = vmatpush3.msra.mxu1 %v2231_v30 }
 0x226   :  { %601 = vmatprep.subr.mxu0 %v2149_v17  ;;  %1731 = vmatprep.subr.mxu1 %v3261_v49 }
 0x227   :  { %602 = vmatpush1.msra.mxu0 %v2161_v19  ;;  %1732 = vmatpush3.msra.mxu1 %v2250_v33 }
 0x228   :  { %603 = vmatprep.subr.mxu0 %v2168_v20  ;;  %1733 = vmatprep.subr.mxu1 %v3261_v49 }
 0x229   :  { %604 = vmatpush1.msra.mxu0 %v2180_v22  ;;  %1734 = vmatpush3.msra.mxu1 %v2269_v36 }
 0x22a   :  { %605 = vmatprep.subr.mxu0 %v2187_v23  ;;  %1735 = vmatprep.subr.mxu1 %v3261_v49 }
 0x22b   :  { %606 = vmatpush1.msra.mxu0 %v2199_v25  ;;  %1736 = vmatpush3.msra.mxu1 %v2288_v39 }
 0x22c   :  { %607 = vmatprep.subr.mxu0 %v2206_v26  ;;  %1737 = vmatprep.subr.mxu1 %v3261_v49 }
 0x22d   :  { %608 = vmatpush1.msra.mxu0 %v2218_v28  ;;  %1738 = vmatpush3.msra.mxu1 %v2307_v42 }
 0x22e   :  { %609 = vmatprep.subr.mxu0 %v2225_v29  ;;  %1739 = vmatprep.subr.mxu1 %v3261_v49 }
 0x22f   :  { %610 = vmatpush1.msra.mxu0 %v2237_v31  ;;  %1740 = vmatpush3.msra.mxu1 %v2321_v44 }
 0x230   :  { %611 = vmatprep.subr.mxu0 %v2244_v32  ;;  %1741 = vmatprep.subr.mxu1 %v3261_v49 }
 0x231   :  { %612 = vmatpush1.msra.mxu0 %v2256_v34  ;;  %1742 = vmatpush3.msra.mxu1 %v2330_v45 }
 0x232   :  { %613 = vmatprep.subr.mxu0 %v2263_v35  ;;  %1743 = vmatprep.subr.mxu1 %v3261_v49 }
 0x233   :  { %614 = vmatpush1.msra.mxu0 %v2275_v37  ;;  %1744 = vmatpush3.msra.mxu1 %v2338_v46 }
 0x234   :  { %615 = vmatprep.subr.mxu0 %v2282_v38  ;;  %1745 = vmatprep.subr.mxu1 %v3261_v49 }
 0x235   :  { %616 = vmatpush1.msra.mxu0 %v2294_v40  ;;  %1746 = vmatpush3.msra.mxu1 %v3265_v41 }
 0x236   :  { %617 = vmatprep.subr.mxu0 %v3266_v47  ;;  %1747 = vmatprep.subr.mxu1 %v3261_v49 }
 0x237   :  { %618 = vmatpush1.msra.mxu0 %v3267_v52  ;;  %651 = vmatprep.mubr.f32.mxu0 %v3261_v49 }
 0x238   :  { %1748 = vmatpush3.msra.mxu1 %v3268_v60  ;;  %1749 = vmatprep.mubr.msk.f32.mxu1 %vm2023_vm0, %v3261_v49 }
 0x239   :  { %755 = vmatprep.subr.mxu0 %v3269_v43  ;;  %1752 = vmatprep.subr.mxu1 %v3261_v49 }
 0x2d8   :  { %v485_v59 = vpop.f32.mrf.mxu0  ;;  %v556_v3 = vpop.f32.mrf.mxu1 }
 0x2d9   :  { %v486_v57 = vadd.f32 %v485_v59, %v2430_v53  ;;  %v557_v59 = vadd.f32 %v556_v3, %v2442_v56 }
 0x2da   :  { %v487_v61 = vpop.f32.mrf.mxu0  ;;  %v1716_v62 = vpop.f32.mrf.mxu1 }
 0x2db   :  { %v560_v0 = vadd.f32 %v1440_v50, %v486_v57  ;;  %v488_v48 = vadd.f32 %v487_v61, %v2436_v58  ;;  %v1442_v50 = vld [vmem:[%s3237_s0 + $0x40] sm:$0xff] }
 0x2dd   :  { %v1443_v63 = vmul.f32 -1.442695, %v560_v0  ;;  %v567_v54 = vadd.f32 %v1441_v55, %v488_v48 }
 0x2df   :  { %1914 = vpow2.f32 %v1443_v63  ;;  %v1444_v43 = vmul.f32 -1.442695, %v567_v54 }
 0x2e1   :  { %1916 = vpow2.f32 %v1444_v43 }
 0x2ec   :  { %v1915_v60 = vpop.eup %1914 }
 0x2ed   :  { %v564_v52 = vadd.f32 1.0, %v1915_v60 }
 0x2ee   :  { %v1917_v47 = vpop.eup %1916 }
 0x2ef   :  { %1918 = vrcp.f32 %v564_v52  ;;  %v571_v41 = vadd.f32 1.0, %v1917_v47 }
 0x2f1   :  { %1920 = vrcp.f32 %v571_v41 }
 0x2fc   :  { %v1919_v62 = vpop.eup %1918 }
 0x2fd   :  { %v574_v57 = vmul.f32 %v1919_v62, %v557_v59 }
 0x2fe   :  { %v1921_v0 = vpop.eup %1920 }
 0x2ff   :  { %v575_v61 = vadd.f32 %v1442_v50, %v574_v57  ;;  %v577_v63 = vsub.f32 1.0, %v1921_v0  ;;  %v579_v60 = vmul.f32 %v1921_v0, %v2536_v51  ;;  %v2723_v50 = vld [vmem:[%s3235_s1 + $0x168] sm:$0xff]  ;;  %v2730_v57 = vld [vmem:[%s3235_s1 + $0x158] sm:$0xff] }
 0x300   :  { %v2751_v0 = vld [vmem:[%s3235_s1 + $0x138] sm:$0xff] }
 0x301   :  { %1922 = vtanh.f32 %v575_v61  ;;  %v2737_v61 = vld [vmem:[%s3235_s1 + $0x150] sm:$0xff] }
 0x30e   :  { %v1923_v48 = vpop.eup %1922 }
 0x30f   :  { %v578_v43 = vmul.f32 %v1923_v48, %v577_v63  ;;  %v2765_v63 = vld [vmem:[%s3235_s1 + $0x120] sm:$0xff]  ;;  %v2779_v48 = vld [vmem:[%s3235_s1 + $0x108] sm:$0xff] }
 0x311   :  { %v2624_v52 = vadd.f32 %v579_v60, %v578_v43  ;;  %v2793_v43 = vld [vmem:[%s3235_s1 + $0xf0] sm:$0xff]  ;;  %v2807_v60 = vld [vmem:[%s3235_s1 + $0xd8] sm:$0xff] }
 0x313   :  { %1445 = vst [vmem:[%s3238_s3 + $0x10] sm:$0xff] %v2624_v52  ;;  %652 = vmatmul.mubr.f32.vlgmr.msra.gmra.mxu0 %v2624_v52  ;;  %1750 = vmatmul.mubr.f32.vlgmr.msra.gmra.mxu1 %v2624_v52 }
 0x314   :  { %756 = vmatpush1.msra.mxu0 %v2057_v1  ;;  %1753 = vmatpush3.msra.mxu1 %v2131_v14  ;;  %v3270_v1 = vld [vmem:[#allocation5_spill] sm:$0xff] }
 0x315   :  { %757 = vmatprep.subr.mxu0 %v2062_v2  ;;  %1754 = vmatprep.subr.mxu1 %v3261_v49  ;;  %v3271_v2 = vld [vmem:[#allocation3_spill] sm:$0xff] }
 0x316   :  { %758 = vmatpush1.msra.mxu0 %v2070_v4  ;;  %1755 = vmatpush3.msra.mxu1 %v2143_v16  ;;  %v3272_v4 = vld [vmem:[#allocation4_spill] sm:$0xff] }
 0x317   :  { %759 = vmatprep.subr.mxu0 %v2078_v5  ;;  %1756 = vmatprep.subr.mxu1 %v3261_v49  ;;  %v3273_v5 = vld [vmem:[#allocation6_spill] sm:$0xff] }
 0x318   :  { %760 = vmatpush1.msra.mxu0 %v2084_v6  ;;  %1757 = vmatpush3.msra.mxu1 %v2155_v18  ;;  %v3274_v6 = vld [vmem:[#allocation2_spill] sm:$0xff] }
 0x319   :  { %761 = vmatprep.subr.mxu0 %v2090_v7  ;;  %1758 = vmatprep.subr.mxu1 %v3261_v49  ;;  %v1446_v7 = vld [vmem:[%s3237_s0 + $0x48] sm:$0xff] }
 0x31a   :  { %762 = vmatpush1.msra.mxu0 %v2096_v8  ;;  %1759 = vmatpush3.msra.mxu1 %v2174_v21 }
 0x31b   :  { %763 = vmatprep.subr.mxu0 %v2102_v9  ;;  %1760 = vmatprep.subr.mxu1 %v3261_v49 }
 0x31c   :  { %764 = vmatpush1.msra.mxu0 %v2108_v10  ;;  %1761 = vmatpush3.msra.mxu1 %v2193_v24 }
 0x31d   :  { %765 = vmatprep.subr.mxu0 %v2114_v11  ;;  %1762 = vmatprep.subr.mxu1 %v3261_v49 }
 0x31e   :  { %766 = vmatpush1.msra.mxu0 %v2120_v12  ;;  %1763 = vmatpush3.msra.mxu1 %v2212_v27 }
 0x31f   :  { %767 = vmatprep.subr.mxu0 %v2126_v13  ;;  %1764 = vmatprep.subr.mxu1 %v3261_v49 }
 0x320   :  { %768 = vmatpush1.msra.mxu0 %v2137_v15  ;;  %1765 = vmatpush3.msra.mxu1 %v2231_v30 }
 0x321   :  { %769 = vmatprep.subr.mxu0 %v2149_v17  ;;  %1766 = vmatprep.subr.mxu1 %v3261_v49 }
 0x322   :  { %770 = vmatpush1.msra.mxu0 %v2161_v19  ;;  %1767 = vmatpush3.msra.mxu1 %v2250_v33  ;;  %v1447_v19 = vld [vmem:[%s3237_s0 + $0x50] sm:$0xff] }
 0x323   :  { %771 = vmatprep.subr.mxu0 %v2168_v20  ;;  %1768 = vmatprep.subr.mxu1 %v3261_v49 }
 0x324   :  { %772 = vmatpush1.msra.mxu0 %v2180_v22  ;;  %1769 = vmatpush3.msra.mxu1 %v2269_v36 }
 0x325   :  { %773 = vmatprep.subr.mxu0 %v2187_v23  ;;  %1770 = vmatprep.subr.mxu1 %v3261_v49 }
 0x326   :  { %774 = vmatpush1.msra.mxu0 %v2199_v25  ;;  %1771 = vmatpush3.msra.mxu1 %v2288_v39 }
 0x327   :  { %775 = vmatprep.subr.mxu0 %v2206_v26  ;;  %1772 = vmatprep.subr.mxu1 %v3261_v49 }
 0x328   :  { %776 = vmatpush1.msra.mxu0 %v2218_v28  ;;  %1773 = vmatpush3.msra.mxu1 %v2307_v42 }
 0x329   :  { %777 = vmatprep.subr.mxu0 %v2225_v29  ;;  %1774 = vmatprep.subr.mxu1 %v3261_v49 }
 0x32a   :  { %778 = vmatpush1.msra.mxu0 %v2237_v31  ;;  %1775 = vmatpush3.msra.mxu1 %v2321_v44 }
 0x32b   :  { %779 = vmatprep.subr.mxu0 %v2244_v32  ;;  %1776 = vmatprep.subr.mxu1 %v3261_v49  ;;  %v1448_v32 = vld [vmem:[%s3237_s0 + $0x58] sm:$0xff] }
 0x32c   :  { %780 = vmatpush1.msra.mxu0 %v2256_v34  ;;  %1777 = vmatpush3.msra.mxu1 %v2330_v45 }
 0x32d   :  { %781 = vmatprep.subr.mxu0 %v2263_v35  ;;  %1778 = vmatprep.subr.mxu1 %v3261_v49 }
 0x32e   :  { %782 = vmatpush1.msra.mxu0 %v2275_v37  ;;  %1779 = vmatpush3.msra.mxu1 %v2338_v46 }
 0x32f   :  { %783 = vmatprep.subr.mxu0 %v2282_v38  ;;  %1780 = vmatprep.subr.mxu1 %v3261_v49 }
 0x330   :  { %784 = vmatpush1.msra.mxu0 %v2294_v40  ;;  %1781 = vmatpush3.msra.mxu1 %v3270_v1 }
 0x331   :  { %785 = vmatprep.subr.mxu0 %v3271_v2  ;;  %1782 = vmatprep.subr.mxu1 %v3261_v49 }
 0x332   :  { %786 = vmatpush1.msra.mxu0 %v3272_v4  ;;  %819 = vmatprep.mubr.f32.mxu0 %v3261_v49 }
 0x333   :  { %1783 = vmatpush3.msra.mxu1 %v3273_v5  ;;  %1784 = vmatprep.mubr.msk.f32.mxu1 %vm2023_vm0, %v3261_v49 }
 0x334   :  { %923 = vmatprep.subr.mxu0 %v3274_v6  ;;  %1787 = vmatprep.subr.mxu1 %v3261_v49  ;;  %v2835_v6 = vld [vmem:[%s3235_s1 + $0xa8] sm:$0xff] }
 0x3d3   :  { %v653_v8 = vpop.f32.mrf.mxu0  ;;  %v724_v9 = vpop.f32.mrf.mxu1 }
 0x3d4   :  { %v654_v10 = vadd.f32 %v653_v8, %v2430_v53  ;;  %v725_v29 = vadd.f32 %v724_v9, %v2442_v56  ;;  %v2863_v8 = vld [vmem:[%s3235_s1 + $0x78] sm:$0xff]  ;;  %v2877_v9 = vld [vmem:[%s3235_s1 + $0x60] sm:$0xff] }
 0x3d5   :  { %v655_v11 = vpop.f32.mrf.mxu0  ;;  %v1751_v12 = vpop.f32.mrf.mxu1 }
 0x3d6   :  { %v728_v13 = vadd.f32 %v1446_v7, %v654_v10  ;;  %v656_v17 = vadd.f32 %v655_v11, %v2436_v58  ;;  %v2849_v7 = vld [vmem:[%s3235_s1 + $0x90] sm:$0xff] }
 0x3d8   :  { %v1449_v15 = vmul.f32 -1.442695, %v728_v13  ;;  %v735_v20 = vadd.f32 %v1447_v19, %v656_v17 }
 0x3da   :  { %1924 = vpow2.f32 %v1449_v15  ;;  %v1450_v22 = vmul.f32 -1.442695, %v735_v20  ;;  %v1454_v20 = vld [vmem:[%s3237_s0 + $0x70] sm:$0xff] }
 0x3dc   :  { %1926 = vpow2.f32 %v1450_v22 }
 0x3e7   :  { %v1925_v23 = vpop.eup %1924 }
 0x3e8   :  { %v732_v25 = vadd.f32 1.0, %v1925_v23 }
 0x3e9   :  { %v1927_v26 = vpop.eup %1926 }
 0x3ea   :  { %1928 = vrcp.f32 %v732_v25  ;;  %v739_v28 = vadd.f32 1.0, %v1927_v26 }
 0x3ec   :  { %1930 = vrcp.f32 %v739_v28 }
 0x3f7   :  { %v1929_v31 = vpop.eup %1928 }
 0x3f8   :  { %v742_v51 = vmul.f32 %v1929_v31, %v725_v29 }
 0x3f9   :  { %v1931_v47 = vpop.eup %1930 }
 0x3fa   :  { %v743_v41 = vadd.f32 %v1448_v32, %v742_v51  ;;  %v745_v3 = vsub.f32 1.0, %v1931_v47  ;;  %v747_v59 = vmul.f32 %v1931_v47, %v2624_v52  ;;  %v2821_v52 = vld [vmem:[%s3235_s1 + $0xc0] sm:$0xff]  ;;  %v2937_v51 = vld [vmem:[%s3235_s1 + $0x178] sm:$0xff]  ;;  %v2955_v47 = vld [vmem:[%s3235_s1 + $0x148] sm:$0xff] }
 0x3fc   :  { %1932 = vtanh.f32 %v743_v41  ;;  %v2946_v41 = vld [vmem:[%s3235_s1 + $0x160] sm:$0xff] }
 0x409   :  { %v1933_v55 = vpop.eup %1932 }
 0x40a   :  { %v746_v54 = vmul.f32 %v1933_v55, %v745_v3  ;;  %v2964_v3 = vld [vmem:[%s3235_s1 + $0x130] sm:$0xff]  ;;  %v2973_v55 = vld [vmem:[%s3235_s1 + $0x118] sm:$0xff] }
 0x40c   :  { %v2712_v62 = vadd.f32 %v747_v59, %v746_v54  ;;  %v2982_v54 = vld [vmem:[%s3235_s1 + $0x100] sm:$0xff]  ;;  %v2991_v59 = vld [vmem:[%s3235_s1 + $0xe8] sm:$0xff] }
 0x40e   :  { %1451 = vst [vmem:[%s3238_s3 + $0x18] sm:$0xff] %v2712_v62  ;;  %820 = vmatmul.mubr.f32.vlgmr.msra.gmra.mxu0 %v2712_v62  ;;  %1785 = vmatmul.mubr.f32.vlgmr.msra.gmra.mxu1 %v2712_v62 }
 0x40f   :  { %924 = vmatpush1.msra.mxu0 %v2723_v50  ;;  %1788 = vmatpush3.msra.mxu1 %v2131_v14  ;;  %v2744_v14 = vld [vmem:[%s3235_s1 + $0x140] sm:$0xff] }
 0x410   :  { %925 = vmatprep.subr.mxu0 %v2730_v57  ;;  %1789 = vmatprep.subr.mxu1 %v3261_v49 }
 0x411   :  { %926 = vmatpush1.msra.mxu0 %v2737_v61  ;;  %1790 = vmatpush3.msra.mxu1 %v2143_v16  ;;  %v2758_v16 = vld [vmem:[%s3235_s1 + $0x128] sm:$0xff] }
 0x412   :  { %927 = vmatprep.subr.mxu0 %v2744_v14  ;;  %1791 = vmatprep.subr.mxu1 %v3261_v49 }
 0x413   :  { %928 = vmatpush1.msra.mxu0 %v2751_v0  ;;  %1792 = vmatpush3.msra.mxu1 %v2155_v18  ;;  %v2772_v18 = vld [vmem:[%s3235_s1 + $0x110] sm:$0xff] }
 0x414   :  { %929 = vmatprep.subr.mxu0 %v2758_v16  ;;  %1793 = vmatprep.subr.mxu1 %v3261_v49 }
 0x415   :  { %930 = vmatpush1.msra.mxu0 %v2765_v63  ;;  %1794 = vmatpush3.msra.mxu1 %v2174_v21  ;;  %v2786_v21 = vld [vmem:[%s3235_s1 + $0xf8] sm:$0xff] }
 0x416   :  { %931 = vmatprep.subr.mxu0 %v2772_v18  ;;  %1795 = vmatprep.subr.mxu1 %v3261_v49 }
 0x417   :  { %932 = vmatpush1.msra.mxu0 %v2779_v48  ;;  %1796 = vmatpush3.msra.mxu1 %v2193_v24  ;;  %v2800_v24 = vld [vmem:[%s3235_s1 + $0xe0] sm:$0xff] }
 0x418   :  { %933 = vmatprep.subr.mxu0 %v2786_v21  ;;  %1797 = vmatprep.subr.mxu1 %v3261_v49 }
 0x419   :  { %934 = vmatpush1.msra.mxu0 %v2793_v43  ;;  %1798 = vmatpush3.msra.mxu1 %v2212_v27  ;;  %v2814_v27 = vld [vmem:[%s3235_s1 + $0xc8] sm:$0xff] }
 0x41a   :  { %935 = vmatprep.subr.mxu0 %v2800_v24  ;;  %1799 = vmatprep.subr.mxu1 %v3261_v49 }
 0x41b   :  { %936 = vmatpush1.msra.mxu0 %v2807_v60  ;;  %1800 = vmatpush3.msra.mxu1 %v2231_v30  ;;  %v2828_v30 = vld [vmem:[%s3235_s1 + $0xb0] sm:$0xff] }
 0x41c   :  { %937 = vmatprep.subr.mxu0 %v2814_v27  ;;  %1801 = vmatprep.subr.mxu1 %v3261_v49 }
 0x41d   :  { %938 = vmatpush1.msra.mxu0 %v2821_v52  ;;  %1802 = vmatpush3.msra.mxu1 %v2250_v33  ;;  %v2842_v33 = vld [vmem:[%s3235_s1 + $0x98] sm:$0xff] }
 0x41e   :  { %939 = vmatprep.subr.mxu0 %v2828_v30  ;;  %1803 = vmatprep.subr.mxu1 %v3261_v49 }
 0x41f   :  { %940 = vmatpush1.msra.mxu0 %v2835_v6  ;;  %1804 = vmatpush3.msra.mxu1 %v2269_v36  ;;  %v2856_v36 = vld [vmem:[%s3235_s1 + $0x80] sm:$0xff] }
 0x420   :  { %941 = vmatprep.subr.mxu0 %v2842_v33  ;;  %1805 = vmatprep.subr.mxu1 %v3261_v49 }
 0x421   :  { %942 = vmatpush1.msra.mxu0 %v2849_v7  ;;  %1806 = vmatpush3.msra.mxu1 %v2288_v39  ;;  %v2870_v39 = vld [vmem:[%s3235_s1 + $0x68] sm:$0xff] }
 0x422   :  { %943 = vmatprep.subr.mxu0 %v2856_v36  ;;  %1807 = vmatprep.subr.mxu1 %v3261_v49 }
 0x423   :  { %944 = vmatpush1.msra.mxu0 %v2863_v8  ;;  %1808 = vmatpush3.msra.mxu1 %v2307_v42  ;;  %v2884_v42 = vld [vmem:[%s3235_s1 + $0x50] sm:$0xff] }
 0x424   :  { %945 = vmatprep.subr.mxu0 %v2870_v39  ;;  %1809 = vmatprep.subr.mxu1 %v3261_v49 }
 0x425   :  { %946 = vmatpush1.msra.mxu0 %v2877_v9  ;;  %1810 = vmatpush3.msra.mxu1 %v2321_v44 }
 0x426   :  { %947 = vmatprep.subr.mxu0 %v2884_v42  ;;  %1811 = vmatprep.subr.mxu1 %v3261_v49 }
 0x427   :  { %948 = vmatpush1.msra.mxu0 %v2256_v34  ;;  %1812 = vmatpush3.msra.mxu1 %v2330_v45  ;;  %v2908_v34 = vld [vmem:[%s3235_s1 + $0x170] sm:$0xff] }
 0x428   :  { %949 = vmatprep.subr.mxu0 %v2263_v35  ;;  %1813 = vmatprep.subr.mxu1 %v3261_v49  ;;  %v1452_v35 = vld [vmem:[%s3237_s0 + $0x60] sm:$0xff] }
 0x429   :  { %950 = vmatpush1.msra.mxu0 %v2275_v37  ;;  %1814 = vmatpush3.msra.mxu1 %v2338_v46 }
 0x42a   :  { %951 = vmatprep.subr.mxu0 %v2282_v38  ;;  %1815 = vmatprep.subr.mxu1 %v3261_v49 }
 0x42b   :  { %952 = vmatpush1.msra.mxu0 %v2294_v40  ;;  %1816 = vmatpush3.msra.mxu1 %v3270_v1 }
 0x42c   :  { %953 = vmatprep.subr.mxu0 %v3271_v2  ;;  %1817 = vmatprep.subr.mxu1 %v3261_v49 }
 0x42d   :  { %954 = vmatpush1.msra.mxu0 %v3272_v4  ;;  %987 = vmatprep.mubr.f32.mxu0 %v3261_v49  ;;  %v1453_v4 = vld [vmem:[%s3237_s0 + $0x68] sm:$0xff] }
 0x42e   :  { %1818 = vmatpush3.msra.mxu1 %v3273_v5  ;;  %1819 = vmatprep.mubr.msk.f32.mxu1 %vm2023_vm0, %v3261_v49 }
 0x42f   :  { %1091 = vmatprep.subr.mxu0 %v2908_v34  ;;  %1822 = vmatprep.subr.mxu1 %v3261_v49 }
 0x4ce   :  { %v821_v37 = vpop.f32.mrf.mxu0  ;;  %v892_v38 = vpop.f32.mrf.mxu1 }
 0x4cf   :  { %v822_v40 = vadd.f32 %v821_v37, %v2430_v53  ;;  %v893_v17 = vadd.f32 %v892_v38, %v2442_v56  ;;  %v3018_v37 = vld [vmem:[%s3235_s1 + $0xa0] sm:$0xff]  ;;  %v3027_v38 = vld [vmem:[%s3235_s1 + $0x88] sm:$0xff] }
 0x4d0   :  { %v823_v44 = vpop.f32.mrf.mxu0  ;;  %v1786_v45 = vpop.f32.mrf.mxu1 }
 0x4d1   :  { %v896_v46 = vadd.f32 %v1452_v35, %v822_v40  ;;  %v824_v2 = vadd.f32 %v823_v44, %v2436_v58  ;;  %v3009_v35 = vld [vmem:[%s3235_s1 + $0xb8] sm:$0xff]  ;;  %v3036_v40 = vld [vmem:[%s3235_s1 + $0x70] sm:$0xff]  ;;  %v3044_v44 = vld [vmem:[%s3235_s1 + $0x48] sm:$0xff] }
 0x4d2   :  { %v3050_v45 = vld [vmem:[%s3235_s1 + $0x58] sm:$0xff] }
 0x4d3   :  { %v1455_v1 = vmul.f32 -1.442695, %v896_v46  ;;  %v903_v5 = vadd.f32 %v1453_v4, %v824_v2  ;;  %v3056_v46 = vld [vmem:[%s3235_s1 + $0x38] sm:$0xff]  ;;  %v3069_v2 = vld [vmem:[%s3235_s1 + $0x40] sm:$0xff] }
 0x4d4   :  { %v3075_v4 = vld [vmem:[%s3235_s1 + $0x20] sm:$0xff] }
 0x4d5   :  { %1934 = vpow2.f32 %v1455_v1  ;;  %v1456_v10 = vmul.f32 -1.442695, %v903_v5  ;;  %v3063_v1 = vld [vmem:[%s3235_s1 + $0x30] sm:$0xff]  ;;  %v3082_v5 = vld [vmem:[%s3235_s1 + $0x18] sm:$0xff] }
 0x4d7   :  { %1936 = vpow2.f32 %v1456_v10  ;;  %v3088_v10 = vld [vmem:[%s3235_s1 + $0x28] sm:$0xff] }
 0x4d8   :  { %3275 = vst [vmem:[#allocation5_spill] sm:$0xff] %v3088_v10 }
 0x4e2   :  { %v1935_v11 = vpop.eup %1934 }
 0x4e3   :  { %v900_v12 = vadd.f32 1.0, %v1935_v11  ;;  %v3094_v11 = vld [vmem:[%s3235_s1 + $0x8] sm:$0xff] }
 0x4e4   :  { %v1937_v13 = vpop.eup %1936  ;;  %3276 = vst [vmem:[#allocation3_spill] sm:$0xff] %v3094_v11 }
 0x4e5   :  { %1938 = vrcp.f32 %v900_v12  ;;  %v907_v15 = vadd.f32 1.0, %v1937_v13  ;;  %v3101_v12 = vld [vmem:[%s3235_s1] sm:$0xff]  ;;  %v3108_v13 = vld [vmem:[%s3235_s1 + $0x10] sm:$0xff] }
 0x4e6   :  { %3277 = vst [vmem:[#allocation4_spill] sm:$0xff] %v3101_v12  ;;  %3278 = vst [vmem:[#allocation6_spill] sm:$0xff] %v3108_v13 }
 0x4e7   :  { %1940 = vrcp.f32 %v907_v15  ;;  %v1458_v15 = vld [vmem:[%s3237_s0 + $0x78] sm:$0xff] }
 0x4f2   :  { %v1939_v19 = vpop.eup %1938 }
 0x4f3   :  { %v910_v22 = vmul.f32 %v1939_v19, %v893_v17 }
 0x4f4   :  { %v1941_v25 = vpop.eup %1940 }
 0x4f5   :  { %v911_v23 = vadd.f32 %v1454_v20, %v910_v22  ;;  %v913_v26 = vsub.f32 1.0, %v1941_v25  ;;  %v915_v31 = vmul.f32 %v1941_v25, %v2712_v62  ;;  %v3000_v62 = vld [vmem:[%s3235_s1 + $0xd0] sm:$0xff] }
 0x4f7   :  { %1942 = vtanh.f32 %v911_v23 }
 0x504   :  { %v1943_v28 = vpop.eup %1942 }
 0x505   :  { %v914_v29 = vmul.f32 %v1943_v28, %v913_v26 }
 0x507   :  { %v2925_v32 = vadd.f32 %v915_v31, %v914_v29 }
 0x509   :  { %1457 = vst [vmem:[%s3238_s3 + $0x20] sm:$0xff] %v2925_v32  ;;  %988 = vmatmul.mubr.f32.vlgmr.msra.gmra.mxu0 %v2925_v32  ;;  %1820 = vmatmul.mubr.f32.vlgmr.msra.gmra.mxu1 %v2925_v32 }
 0x50a   :  { %1092 = vmatpush1.msra.mxu0 %v2723_v50  ;;  %1823 = vmatpush3.msra.mxu1 %v2937_v51 }
 0x50b   :  { %1093 = vmatprep.subr.mxu0 %v2730_v57  ;;  %1824 = vmatprep.subr.mxu1 %v3261_v49 }
 0x50c   :  { %1094 = vmatpush1.msra.mxu0 %v2737_v61  ;;  %1825 = vmatpush3.msra.mxu1 %v2946_v41 }
 0x50d   :  { %1095 = vmatprep.subr.mxu0 %v2744_v14  ;;  %1826 = vmatprep.subr.mxu1 %v3261_v49 }
 0x50e   :  { %1096 = vmatpush1.msra.mxu0 %v2751_v0  ;;  %1827 = vmatpush3.msra.mxu1 %v2955_v47 }
 0x50f   :  { %1097 = vmatprep.subr.mxu0 %v2758_v16  ;;  %1828 = vmatprep.subr.mxu1 %v3261_v49 }
 0x510   :  { %1098 = vmatpush1.msra.mxu0 %v2765_v63  ;;  %1829 = vmatpush3.msra.mxu1 %v2964_v3 }
 0x511   :  { %1099 = vmatprep.subr.mxu0 %v2772_v18  ;;  %1830 = vmatprep.subr.mxu1 %v3261_v49 }
 0x512   :  { %1100 = vmatpush1.msra.mxu0 %v2779_v48  ;;  %1831 = vmatpush3.msra.mxu1 %v2973_v55 }
 0x513   :  { %1101 = vmatprep.subr.mxu0 %v2786_v21  ;;  %1832 = vmatprep.subr.mxu1 %v3261_v49 }
 0x514   :  { %1102 = vmatpush1.msra.mxu0 %v2793_v43  ;;  %1833 = vmatpush3.msra.mxu1 %v2982_v54 }
 0x515   :  { %1103 = vmatprep.subr.mxu0 %v2800_v24  ;;  %1834 = vmatprep.subr.mxu1 %v3261_v49 }
 0x516   :  { %1104 = vmatpush1.msra.mxu0 %v2807_v60  ;;  %1835 = vmatpush3.msra.mxu1 %v2991_v59 }
 0x517   :  { %1105 = vmatprep.subr.mxu0 %v2814_v27  ;;  %1836 = vmatprep.subr.mxu1 %v3261_v49 }
 0x518   :  { %1106 = vmatpush1.msra.mxu0 %v2821_v52  ;;  %1837 = vmatpush3.msra.mxu1 %v3000_v62 }
 0x519   :  { %1107 = vmatprep.subr.mxu0 %v2828_v30  ;;  %1838 = vmatprep.subr.mxu1 %v3261_v49 }
 0x51a   :  { %1108 = vmatpush1.msra.mxu0 %v2835_v6  ;;  %1839 = vmatpush3.msra.mxu1 %v3009_v35 }
 0x51b   :  { %1109 = vmatprep.subr.mxu0 %v2842_v33  ;;  %1840 = vmatprep.subr.mxu1 %v3261_v49 }
 0x51c   :  { %1110 = vmatpush1.msra.mxu0 %v2849_v7  ;;  %1841 = vmatpush3.msra.mxu1 %v3018_v37 }
 0x51d   :  { %1111 = vmatprep.subr.mxu0 %v2856_v36  ;;  %1842 = vmatprep.subr.mxu1 %v3261_v49 }
 0x51e   :  { %1112 = vmatpush1.msra.mxu0 %v2863_v8  ;;  %1843 = vmatpush3.msra.mxu1 %v3027_v38 }
 0x51f   :  { %1113 = vmatprep.subr.mxu0 %v2870_v39  ;;  %1844 = vmatprep.subr.mxu1 %v3261_v49 }
 0x520   :  { %1114 = vmatpush1.msra.mxu0 %v2877_v9  ;;  %1845 = vmatpush3.msra.mxu1 %v3036_v40 }
 0x521   :  { %1115 = vmatprep.subr.mxu0 %v2884_v42  ;;  %1846 = vmatprep.subr.mxu1 %v3261_v49 }
 0x522   :  { %1116 = vmatpush1.msra.mxu0 %v3044_v44  ;;  %1847 = vmatpush3.msra.mxu1 %v3050_v45 }
 0x523   :  { %1117 = vmatprep.subr.mxu0 %v3056_v46  ;;  %1848 = vmatprep.subr.mxu1 %v3261_v49 }
 0x524   :  { %1118 = vmatpush1.msra.mxu0 %v3063_v1  ;;  %1849 = vmatpush3.msra.mxu1 %v3069_v2 }
 0x525   :  { %1119 = vmatprep.subr.mxu0 %v3075_v4  ;;  %1850 = vmatprep.subr.mxu1 %v3261_v49 }
 0x526   :  { %1120 = vmatpush1.msra.mxu0 %v3082_v5  ;;  %1851 = vmatpush3.msra.mxu1 %v3088_v10 }
 0x527   :  { %1121 = vmatprep.subr.mxu0 %v3094_v11  ;;  %1852 = vmatprep.subr.mxu1 %v3261_v49 }
 0x528   :  { %1122 = vmatpush1.msra.mxu0 %v3101_v12  ;;  %1155 = vmatprep.mubr.f32.mxu0 %v3261_v49 }
 0x529   :  { %1853 = vmatpush3.msra.mxu1 %v3108_v13  ;;  %1854 = vmatprep.mubr.msk.f32.mxu1 %vm2023_vm0, %v3261_v49 }
 0x52a   :  { %1259 = vmatprep.subr.mxu0 %v2908_v34  ;;  %1857 = vmatprep.subr.mxu1 %v3261_v49  ;;  %v1459_v34 = vld [vmem:[%s3237_s0 + $0x80] sm:$0xff] }
 0x5c9   :  { %v989_v17 = vpop.f32.mrf.mxu0  ;;  %v1060_v19 = vpop.f32.mrf.mxu1 }
 0x5ca   :  { %v990_v20 = vadd.f32 %v989_v17, %v2430_v53  ;;  %v1061_v17 = vadd.f32 %v1060_v19, %v2442_v56 }
 0x5cb   :  { %v991_v22 = vpop.f32.mrf.mxu0  ;;  %v1821_v23 = vpop.f32.mrf.mxu1 }
 0x5cc   :  { %v1064_v25 = vadd.f32 %v1458_v15, %v990_v20  ;;  %v992_v28 = vadd.f32 %v991_v22, %v2436_v58  ;;  %v1460_v15 = vld [vmem:[%s3237_s0 + $0x88] sm:$0xff] }
 0x5ce   :  { %v1461_v26 = vmul.f32 -1.442695, %v1064_v25  ;;  %v1071_v29 = vadd.f32 %v1459_v34, %v992_v28 }
 0x5d0   :  { %1944 = vpow2.f32 %v1461_v26  ;;  %v1462_v31 = vmul.f32 -1.442695, %v1071_v29 }
 0x5d2   :  { %1946 = vpow2.f32 %v1462_v31 }
 0x5dd   :  { %v1945_v13 = vpop.eup %1944 }
 0x5de   :  { %v1068_v12 = vadd.f32 1.0, %v1945_v13 }
 0x5df   :  { %v1947_v11 = vpop.eup %1946 }
 0x5e0   :  { %1948 = vrcp.f32 %v1068_v12  ;;  %v1075_v10 = vadd.f32 1.0, %v1947_v11 }
 0x5e2   :  { %1950 = vrcp.f32 %v1075_v10 }
 0x5ed   :  { %v1949_v23 = vpop.eup %1948 }
 0x5ee   :  { %v1078_v20 = vmul.f32 %v1949_v23, %v1061_v17 }
 0x5ef   :  { %v1951_v25 = vpop.eup %1950 }
 0x5f0   :  { %v1079_v22 = vadd.f32 %v1460_v15, %v1078_v20  ;;  %v1081_v26 = vsub.f32 1.0, %v1951_v25  ;;  %v1083_v13 = vmul.f32 %v1951_v25, %v2925_v32 }
 0x5f2   :  { %1952 = vtanh.f32 %v1079_v22 }
 0x5ff   :  { %v1953_v28 = vpop.eup %1952 }
 0x600   :  { %v1082_v34 = vmul.f32 %v1953_v28, %v1081_v26 }
 0x602   :  { %v3128_v12 = vadd.f32 %v1083_v13, %v1082_v34 }
 0x604   :  { %1463 = vst [vmem:[%s3238_s3 + $0x28] sm:$0xff] %v3128_v12  ;;  %1156 = vmatmul.mubr.f32.vlgmr.msra.gmra.mxu0 %v3128_v12  ;;  %1855 = vmatmul.mubr.f32.vlgmr.msra.gmra.mxu1 %v3128_v12 }
 0x605   :  { %1260 = vmatpush1.msra.mxu0 %v2723_v50  ;;  %1858 = vmatpush3.msra.mxu1 %v2937_v51  ;;  %v3279_v50 = vld [vmem:[#allocation5_spill] sm:$0xff] }
 0x606   :  { %1261 = vmatprep.subr.mxu0 %v2730_v57  ;;  %1859 = vmatprep.subr.mxu1 %v3261_v49  ;;  %v3280_v57 = vld [vmem:[#allocation3_spill] sm:$0xff] }
 0x607   :  { %1262 = vmatpush1.msra.mxu0 %v2737_v61  ;;  %1860 = vmatpush3.msra.mxu1 %v2946_v41  ;;  %v3281_v61 = vld [vmem:[#allocation4_spill] sm:$0xff] }
 0x608   :  { %1263 = vmatprep.subr.mxu0 %v2744_v14  ;;  %1861 = vmatprep.subr.mxu1 %v3261_v49  ;;  %v3282_v14 = vld [vmem:[#allocation6_spill] sm:$0xff] }
 0x609   :  { %1264 = vmatpush1.msra.mxu0 %v2751_v0  ;;  %1862 = vmatpush3.msra.mxu1 %v2955_v47  ;;  %v1464_v0 = vld [vmem:[%s3237_s0 + $0x90] sm:$0xff] }
 0x60a   :  { %1265 = vmatprep.subr.mxu0 %v2758_v16  ;;  %1863 = vmatprep.subr.mxu1 %v3261_v49 }
 0x60b   :  { %1266 = vmatpush1.msra.mxu0 %v2765_v63  ;;  %1864 = vmatpush3.msra.mxu1 %v2964_v3 }
 0x60c   :  { %1267 = vmatprep.subr.mxu0 %v2772_v18  ;;  %1865 = vmatprep.subr.mxu1 %v3261_v49 }
 0x60d   :  { %1268 = vmatpush1.msra.mxu0 %v2779_v48  ;;  %1866 = vmatpush3.msra.mxu1 %v2973_v55 }
 0x60e   :  { %1269 = vmatprep.subr.mxu0 %v2786_v21  ;;  %1867 = vmatprep.subr.mxu1 %v3261_v49 }
 0x60f   :  { %1270 = vmatpush1.msra.mxu0 %v2793_v43  ;;  %1868 = vmatpush3.msra.mxu1 %v2982_v54  ;;  %v1470_v54 = vld [vmem:[%s3237_s0 + $0xa8] sm:$0xff] }
 0x610   :  { %1271 = vmatprep.subr.mxu0 %v2800_v24  ;;  %1869 = vmatprep.subr.mxu1 %v3261_v49 }
 0x611   :  { %1272 = vmatpush1.msra.mxu0 %v2807_v60  ;;  %1870 = vmatpush3.msra.mxu1 %v2991_v59 }
 0x612   :  { %1273 = vmatprep.subr.mxu0 %v2814_v27  ;;  %1871 = vmatprep.subr.mxu1 %v3261_v49  ;;  %v1465_v27 = vld [vmem:[%s3237_s0 + $0x98] sm:$0xff] }
 0x613   :  { %1274 = vmatpush1.msra.mxu0 %v2821_v52  ;;  %1872 = vmatpush3.msra.mxu1 %v3000_v62 }
 0x614   :  { %1275 = vmatprep.subr.mxu0 %v2828_v30  ;;  %1873 = vmatprep.subr.mxu1 %v3261_v49 }
 0x615   :  { %1276 = vmatpush1.msra.mxu0 %v2835_v6  ;;  %1874 = vmatpush3.msra.mxu1 %v3009_v35 }
 0x616   :  { %1277 = vmatprep.subr.mxu0 %v2842_v33  ;;  %1875 = vmatprep.subr.mxu1 %v3261_v49 }
 0x617   :  { %1278 = vmatpush1.msra.mxu0 %v2849_v7  ;;  %1876 = vmatpush3.msra.mxu1 %v3018_v37 }
 0x618   :  { %1279 = vmatprep.subr.mxu0 %v2856_v36  ;;  %1877 = vmatprep.subr.mxu1 %v3261_v49 }
 0x619   :  { %1280 = vmatpush1.msra.mxu0 %v2863_v8  ;;  %1878 = vmatpush3.msra.mxu1 %v3027_v38 }
 0x61a   :  { %1281 = vmatprep.subr.mxu0 %v2870_v39  ;;  %1879 = vmatprep.subr.mxu1 %v3261_v49  ;;  %v1466_v39 = vld [vmem:[%s3237_s0 + $0xa0] sm:$0xff] }
 0x61b   :  { %1282 = vmatpush1.msra.mxu0 %v2877_v9  ;;  %1880 = vmatpush3.msra.mxu1 %v3036_v40 }
 0x61c   :  { %1283 = vmatprep.subr.mxu0 %v2884_v42  ;;  %1881 = vmatprep.subr.mxu1 %v3261_v49 }
 0x61d   :  { %1284 = vmatpush1.msra.mxu0 %v3044_v44  ;;  %1882 = vmatpush3.msra.mxu1 %v3050_v45 }
 0x61e   :  { %1285 = vmatprep.subr.mxu0 %v3056_v46  ;;  %1883 = vmatprep.subr.mxu1 %v3261_v49  ;;  %v1471_v46 = vld [vmem:[%s3237_s0 + $0xb0] sm:$0xff] }
 0x61f   :  { %1286 = vmatpush1.msra.mxu0 %v3063_v1  ;;  %1884 = vmatpush3.msra.mxu1 %v3069_v2 }
 0x620   :  { %1287 = vmatprep.subr.mxu0 %v3075_v4  ;;  %1885 = vmatprep.subr.mxu1 %v3261_v49 }
 0x621   :  { %1288 = vmatpush1.msra.mxu0 %v3082_v5  ;;  %1886 = vmatpush3.msra.mxu1 %v3279_v50 }
 0x622   :  { %1289 = vmatprep.subr.mxu0 %v3280_v57  ;;  %1887 = vmatprep.subr.mxu1 %v3261_v49 }
 0x623   :  { %1290 = vmatpush1.msra.mxu0 %v3281_v61  ;;  %1323 = vmatprep.mubr.f32.mxu0 %v3261_v49 }
 0x624   :  { %1888 = vmatpush3.msra.mxu1 %v3282_v14  ;;  %1889 = vmatprep.mubr.msk.f32.mxu1 %vm2023_vm0, %v3261_v49 }
 0x6c4   :  { %v1157_v16 = vpop.f32.mrf.mxu0  ;;  %v1228_v63 = vpop.f32.mrf.mxu1 }
 0x6c5   :  { %v1158_v18 = vadd.f32 %v1157_v16, %v2430_v53  ;;  %v1229_v36 = vadd.f32 %v1228_v63, %v2442_v56 }
 0x6c6   :  { %v1159_v48 = vpop.f32.mrf.mxu0  ;;  %v1856_v21 = vpop.f32.mrf.mxu1 }
 0x6c7   :  { %v1232_v43 = vadd.f32 %v1464_v0, %v1158_v18  ;;  %v1160_v60 = vadd.f32 %v1159_v48, %v2436_v58 }
 0x6c9   :  { %v1467_v24 = vmul.f32 -1.442695, %v1232_v43  ;;  %v1239_v49 = vadd.f32 %v1465_v27, %v1160_v60 }
 0x6cb   :  { %1954 = vpow2.f32 %v1467_v24  ;;  %v1468_v52 = vmul.f32 -1.442695, %v1239_v49 }
 0x6cd   :  { %1956 = vpow2.f32 %v1468_v52 }
 0x6d8   :  { %v1955_v30 = vpop.eup %1954 }
 0x6d9   :  { %v1236_v6 = vadd.f32 1.0, %v1955_v30 }
 0x6da   :  { %v1957_v33 = vpop.eup %1956 }
 0x6db   :  { %1958 = vrcp.f32 %v1236_v6  ;;  %v1243_v7 = vadd.f32 1.0, %v1957_v33 }
 0x6dd   :  { %1960 = vrcp.f32 %v1243_v7 }
 0x6e8   :  { %v1959_v8 = vpop.eup %1958 }
 0x6e9   :  { %v1246_v9 = vmul.f32 %v1959_v8, %v1229_v36 }
 0x6ea   :  { %v1961_v32 = vpop.eup %1960 }
 0x6eb   :  { %v1247_v42 = vadd.f32 %v1466_v39, %v1246_v9  ;;  %v1249_v51 = vsub.f32 1.0, %v1961_v32  ;;  %v1251_v3 = vmul.f32 %v1961_v32, %v3128_v12 }
 0x6ed   :  { %1962 = vtanh.f32 %v1247_v42 }
 0x6fa   :  { %v1963_v41 = vpop.eup %1962 }
 0x6fb   :  { %v1250_v47 = vmul.f32 %v1963_v41, %v1249_v51 }
 0x6fd   :  { %v1252_v55 = vadd.f32 %v1251_v3, %v1250_v47 }
 0x6ff   :  { %1469 = vst [vmem:[%s3238_s3 + $0x30] sm:$0xff] %v1252_v55  ;;  %1324 = vmatmul.mubr.f32.vlgmr.msra.gmra.mxu0 %v1252_v55  ;;  %1890 = vmatmul.mubr.f32.vlgmr.msra.gmra.mxu1 %v1252_v55 }
 0x7bf   :  { %v1325_v59 = vpop.f32.mrf.mxu0  ;;  %v1396_v62 = vpop.f32.mrf.mxu1 }
 0x7c0   :  { %v1326_v35 = vadd.f32 %v1325_v59, %v2430_v53  ;;  %v1397_v53 = vadd.f32 %v1396_v62, %v2442_v56 }
 0x7c1   :  { %v1327_v37 = vpop.f32.mrf.mxu0  ;;  %v1891_v38 = vpop.f32.mrf.mxu1 }
 0x7c2   :  { %v1400_v40 = vadd.f32 %v1470_v54, %v1326_v35  ;;  %v1328_v45 = vadd.f32 %v1327_v37, %v2436_v58  ;;  %v1472_v58 = vld [vmem:[%s3237_s0 + $0xb8] sm:$0xff] }
 0x7c4   :  { %v1473_v44 = vmul.f32 -1.442695, %v1400_v40  ;;  %v1407_v1 = vadd.f32 %v1471_v46, %v1328_v45 }
 0x7c6   :  { %1964 = vpow2.f32 %v1473_v44  ;;  %v1474_v2 = vmul.f32 -1.442695, %v1407_v1 }
 0x7c8   :  { %1966 = vpow2.f32 %v1474_v2 }
 0x7d3   :  { %v1965_v4 = vpop.eup %1964 }
 0x7d4   :  { %v1404_v5 = vadd.f32 1.0, %v1965_v4 }
 0x7d5   :  { %v1967_v10 = vpop.eup %1966 }
 0x7d6   :  { %1968 = vrcp.f32 %v1404_v5  ;;  %v1411_v11 = vadd.f32 1.0, %v1967_v10 }
 0x7d8   :  { %1970 = vrcp.f32 %v1411_v11 }
 0x7e3   :  { %v1969_v19 = vpop.eup %1968 }
 0x7e4   :  { %v1414_v29 = vmul.f32 %v1969_v19, %v1397_v53 }
 0x7e5   :  { %v1971_v17 = vpop.eup %1970 }
 0x7e6   :  { %v1415_v31 = vadd.f32 %v1472_v58, %v1414_v29  ;;  %v1417_v23 = vsub.f32 1.0, %v1971_v17  ;;  %v1419_v22 = vmul.f32 %v1971_v17, %v1252_v55 }
 0x7e8   :  { %1972 = vtanh.f32 %v1415_v31 }
 0x7f5   :  { %v1973_v15 = vpop.eup %1972 }
 0x7f6   :  { %v1418_v20 = vmul.f32 %v1973_v15, %v1417_v23 }
 0x7f8   :  { %v1420_v25 = vadd.f32 %v1419_v22, %v1418_v20 }
 0x7fa   :  { %1475 = vst [vmem:[%s3238_s3 + $0x38] sm:$0xff] %v1420_v25  ;;  %1423 = vst [vmem:[%s3239_s4] sm:$0xff] %v1420_v25 }

// kernel: seq2seq_forward.9
= control target key start
LH: loop header
LB: loop body
LE: loop exit
PB: predicated region body
PF: predicated region fallthrough
CT: control target
= control target key end

     0   :  { %s1913_s17 = smov 0   ;;  %s2607_s0 = inlined_call_operand.vmem [shape: f32[5,8,384], index: 0, kind: input, shape index: {}]   ;;  %s2608_s1 = inlined_call_operand.vmem [shape: f32[8,128], index: 1, kind: input, shape index: {}]   ;;  %s2609_s2 = inlined_call_operand.vmem [shape: f32[8,8,128], index: 2, kind: input, shape index: {}]   ;;  %s2610_s3 = inlined_call_operand.vmem [shape: f32[8,8,128], index: 3, kind: input, shape index: {}]   ;;  %s2611_s4 = inlined_call_operand.vmem [shape: f32[128,128], index: 4, kind: input, shape index: {}]   ;;  %s2612_s5 = inlined_call_operand.vmem [shape: f32[1,128], index: 5, kind: input, shape index: {}]   ;;  %s2613_s6 = inlined_call_operand.vmem [shape: f32[128,384], index: 6, kind: input, shape index: {}]   ;;  %s2614_s7 = inlined_call_operand.vmem [shape: f32[128,384], index: 7, kind: input, shape index: {}]   ;;  %s2615_s8 = inlined_call_operand.vmem [shape: f32[1,384], index: 8, kind: input, shape index: {}]   ;;  %s2616_s9 = inlined_call_operand.vmem [shape: f32[128,256], index: 9, kind: input, shape index: {}]   ;;  %s2617_s10 = inlined_call_operand.vmem [shape: f32[1,256], index: 10, kind: input, shape index: {}]   ;;  %s2618_s11 = inlined_call_operand.vmem [shape: f32[5,8,256], index: 11, kind: output, shape index: {}]  }
   0x1 LB: > { %s1606_s18 = sadd.s32 4294967295, %s1847_s17   ;;  %p1610_p0 = scmp.ge.s32.totalorder %s1847_s17, 1  ;;  %s1847_s17 = sphi %s1913_s17, %s21_s17  }
   0x2   : > { %p337_p1 = scmp.lt.s32.totalorder %s1847_s17, 6 }
   0x4   : > { %p338_p2 = pnand %p1610_p0, %p337_p1 }
   0x5   : > { %p377_p3 = scmp.lt.s32.totalorder (!%p338_p2), %s1606_s18, 4  ;;  %p1614_p4 = scmp.ne.s32.totalorder (!%p338_p2), %s1606_s18, 0 }
   0x6   : > { %341 = sbr.rel (%p338_p2) target bundleno = 1842 (0x732), region = 64 }
   0xb   : > { %s378_s19 = scalar_select %p377_p3, %s1606_s18, 4 }
   0xc   : > { %390 = sbr.rel (%p1614_p4) target bundleno = 19 (0x13), region = 68 }
   0xd   : > { %s1777_s20 = smul.u32 24, %s378_s19  ;;  %s1620_s21 = sshll.u32 %s378_s19, 4 }
   0xe   : > { %s1924_s24 = scalar_lea.vmem %s2618_s11, %s1620_s21 }
   0xf   : > { %s1929_s27 = scalar_lea.vmem %s2607_s0, %s1777_s20 }
  0x11   : > { %v391_v0 = vld [vmem:[%s2608_s1] sm:$0xff] }
  0x12   : > { %392 = vst [vmem:[#allocation2] sm:$0xff] %v391_v0 }
  0x13 PF: > { %v428_v1 = vld [vmem:[%s2611_s4 + $0x78] sm:$0xff]  ;;  %v1849_v2 = vmov 0.0   ;;  %v427_v3 = vld [vmem:[%s2611_s4 + $0x70] sm:$0xff]  ;;  %vm1850_vm0 = vmmov 0   ;;  %v426_v4 = vld [vmem:[%s2611_s4 + $0x68] sm:$0xff]  ;;  %v635_v21 = vlaneseq  ;;  %vm800_vm1 = vcmask 1041409  }
  0x14   : > { %1672 = vmatprep.subr.mxu0 %v1849_v2  ;;  %1704 = vmatprep.mubr.msk.f32.mxu0 %vm1850_vm0, %v1849_v2  ;;  %v425_v5 = vld [vmem:[%s2611_s4 + $0x60] sm:$0xff]  ;;  %v424_v6 = vld [vmem:[%s2611_s4 + $0x58] sm:$0xff]  ;;  %v423_v7 = vld [vmem:[%s2611_s4 + $0x50] sm:$0xff]  ;;  %v1851_v19 = vmov 1966171168   ;;  %vm802_vm2 = vcmask 1042434  }
  0x15   : > { %1673 = vmatpush3.msra.mxu0 %v428_v1  ;;  %1192 = vmatprep.mubr.f32.mxu1 %v1849_v2  ;;  %v422_v8 = vld [vmem:[%s2611_s4 + $0x48] sm:$0xff]  ;;  %v421_v9 = vld [vmem:[%s2611_s4 + $0x40] sm:$0xff]  ;;  %v420_v10 = vld [vmem:[%s2611_s4 + $0x38] sm:$0xff]  ;;  %v633_v20 = vunpack.c.l.s4 %v1851_v19  ;;  %v2004_v23 = vshrl.u32 %v635_v21, 7  ;;  %vm804_vm3 = vcmask 1043459   ;;  %vm806_vm4 = vcmask 1044484  }
  0x16   : > { %1674 = vmatprep.subr.mxu0 %v1849_v2  ;;  %v419_v11 = vld [vmem:[%s2611_s4 + $0x30] sm:$0xff]  ;;  %v418_v12 = vld [vmem:[%s2611_s4 + $0x28] sm:$0xff]  ;;  %v417_v13 = vld [vmem:[%s2611_s4 + $0x20] sm:$0xff]  ;;  %vm808_vm5 = vcmask 1045509   ;;  %vm810_vm6 = vcmask 1046534   ;;  %vm812_vm7 = vcmask 1047559  }
  0x17   : > { %1675 = vmatpush3.msra.mxu0 %v427_v3  ;;  %v416_v14 = vld [vmem:[%s2611_s4 + $0x18] sm:$0xff]  ;;  %v415_v15 = vld [vmem:[%s2611_s4 + $0x10] sm:$0xff]  ;;  %v414_v16 = vld [vmem:[%s2611_s4 + $0x8] sm:$0xff]  ;;  %v634_v22 = vunpack.c.0.s8 %v633_v20  ;;  %v2008_v29 = vsub.s32 0, %v2004_v23  ;;  %vm815_vm8 = vcmask 64512  }
  0x18   : > { %1676 = vmatprep.subr.mxu0 %v1849_v2  ;;  %v413_v17 = vld [vmem:[%s2611_s4] sm:$0xff]  ;;  %v407_v39 = vld [vmem:[%s2610_s3 + $0x10] sm:$0xff]  ;;  %v406_v42 = vld [vmem:[%s2610_s3 + $0x8] sm:$0xff] }
  0x19   : > { %1677 = vmatpush3.msra.mxu0 %v426_v4  ;;  %v393_v18 = vld [vmem:[#allocation2] sm:$0xff]  ;;  %v637_v24 = vsub.s32 %v634_v22, %v2004_v23  ;;  %v408_v46 = vld [vmem:[%s2610_s3 + $0x18] sm:$0xff]  ;;  %v410_v59 = vld [vmem:[%s2610_s3 + $0x28] sm:$0xff] }
  0x1a   : > { %1678 = vmatprep.subr.mxu0 %v1849_v2  ;;  %v405_v36 = vld [vmem:[%s2610_s3] sm:$0xff]  ;;  %v411_v1 = vld [vmem:[%s2610_s3 + $0x30] sm:$0xff]  ;;  %v412_v4 = vld [vmem:[%s2610_s3 + $0x38] sm:$0xff] }
  0x1b   : > { %1679 = vmatpush3.msra.mxu0 %v425_v5  ;;  %v1615_v40 = vld [vmem:[%s2612_s5] ss:$0 sm:$0xff] }
  0x1c   : > { %1680 = vmatprep.subr.mxu0 %v1849_v2  ;;  %v409_v56 = vld [vmem:[%s2610_s3 + $0x20] sm:$0xff] }
  0x1d   : > { %1681 = vmatpush3.msra.mxu0 %v424_v6 }
  0x1e   : > { %1682 = vmatprep.subr.mxu0 %v1849_v2 }
  0x1f   : > { %1683 = vmatpush3.msra.mxu0 %v423_v7 }
  0x20   : > { %1684 = vmatprep.subr.mxu0 %v1849_v2 }
  0x21   : > { %1685 = vmatpush3.msra.mxu0 %v422_v8 }
  0x22   : > { %1686 = vmatprep.subr.mxu0 %v1849_v2 }
  0x23   : > { %1687 = vmatpush3.msra.mxu0 %v421_v9 }
  0x24   : > { %1688 = vmatprep.subr.mxu0 %v1849_v2 }
  0x25   : > { %1689 = vmatpush3.msra.mxu0 %v420_v10 }
  0x26   : > { %1690 = vmatprep.subr.mxu0 %v1849_v2 }
  0x27   : > { %1691 = vmatpush3.msra.mxu0 %v419_v11  ;;  %v767_v11 = vand.u32 127, %v635_v21 }
  0x28   : > { %1692 = vmatprep.subr.mxu0 %v1849_v2 }
  0x29   : > { %1693 = vmatpush3.msra.mxu0 %v418_v12 }
  0x2a   : > { %1694 = vmatprep.subr.mxu0 %v1849_v2 }
  0x2b   : > { %1695 = vmatpush3.msra.mxu0 %v417_v13  ;;  %v2046_v13 = vsub.s32 %v767_v11, %v2004_v23 }
  0x2c   : > { %1696 = vmatprep.subr.mxu0 %v1849_v2 }
  0x2d   : > { %1697 = vmatpush3.msra.mxu0 %v416_v14 }
  0x2e   : > { %1698 = vmatprep.subr.mxu0 %v1849_v2 }
  0x2f   : > { %1699 = vmatpush3.msra.mxu0 %v415_v15 }
  0x30   : > { %1700 = vmatprep.subr.mxu0 %v1849_v2 }
  0x31   : > { %1701 = vmatpush3.msra.mxu0 %v414_v16 }
  0x32   : > { %1702 = vmatprep.subr.mxu0 %v1849_v2 }
  0x33   : > { %1703 = vmatpush3.msra.mxu0 %v413_v17 }
  0x34   : > { %1705 = vmatmul.mubr.f32.vlgmr.msra.gmra.mxu0 %v393_v18  ;;  %1707 = vmatprep.subr.mxu0 %v1849_v2 }
  0x35   : > { %1739 = vmatprep.mubr.msk.f32.mxu0 %vm1850_vm0, %v1849_v2 }
  0xf4   : > { %v626_v25 = vpop.f32.mrf.mxu0 }
  0xf5   : > { %v631_v26 = vcombine.high %v626_v25, %v626_v25  ;;  %v638_v27 = vrot.slane %v626_v25, %v637_v24 }
  0xf6   : > { %v1706_v28 = vpop.f32.mrf.mxu0 }
  0xf7   : > { %v645_v30 = vrot.slane %v631_v26, %v637_v24  ;;  %v646_v31 = vcombine.high %v638_v27, %v638_v27  ;;  %v654_v32 = vrot.slane %v638_v27, %v637_v24 }
  0xf9   : > { %v647_v33 = vcombine.high %v645_v30, %v645_v30  ;;  %v668_v34 = vrot.slane %v646_v31, %v637_v24  ;;  %v676_v35 = vcombine.high %v654_v32, %v654_v32  ;;  %v661_v37 = vrot.slane %v645_v30, %v637_v24 }
  0xfa   : > { %v683_v38 = vrot.slane %v654_v32, %v2008_v29 }
  0xfb   : > { %v691_v41 = vrot.slane %v676_v35, %v2008_v29  ;;  %v687_v43 = vrot.slane %v668_v34, %v2008_v29  ;;  %v678_v44 = vcombine.high %v668_v34, %v668_v34  ;;  %v675_v47 = vrot.slane %v647_v33, %v637_v24 }
  0xfc   : > { %v720_v45 = vadd.f32 %v683_v38, %v405_v36  ;;  %v699_v52 = vrot.slane %v661_v37, %v2008_v29  ;;  %v677_v53 = vcombine.high %v661_v37, %v661_v37 }
  0xfd   : > { %v722_v48 = vadd.f32 %v691_v41, %v407_v39  ;;  %v695_v49 = vrot.slane %v678_v44, %v2008_v29  ;;  %v721_v51 = vadd.f32 %v687_v43, %v406_v42  ;;  %v703_v57 = vrot.slane %v675_v47, %v2008_v29 }
  0xfe   : > { %v734_v50 = vmul.f32 %v1615_v40, %v720_v45  ;;  %v679_v58 = vcombine.high %v675_v47, %v675_v47  ;;  %v724_v61 = vadd.f32 %v699_v52, %v409_v56  ;;  %v707_v62 = vrot.slane %v677_v53, %v2008_v29 }
  0xff   : > { %v736_v54 = vmul.f32 %v1615_v40, %v722_v48  ;;  %v723_v55 = vadd.f32 %v695_v49, %v408_v46  ;;  %v735_v60 = vmul.f32 %v1615_v40, %v721_v51  ;;  %v725_v0 = vadd.f32 %v703_v57, %v410_v59 }
 0x100   : > { %742 = vadd.xlane.f32.xlu0 %v734_v50  ;;  %v711_v3 = vrot.slane %v679_v58, %v2008_v29  ;;  %v738_v5 = vmul.f32 %v1615_v40, %v724_v61  ;;  %v726_v6 = vadd.f32 %v707_v62, %v411_v1  ;;  %v1852_v39 = vmov 0  }
 0x101   : > { %746 = vadd.xlane.f32.xlu1 %v736_v54  ;;  %v737_v63 = vmul.f32 %v1615_v40, %v723_v55  ;;  %v739_v7 = vmul.f32 %v1615_v40, %v725_v0  ;;  %1791 = vset.pattern.permute.xlu0 %v1852_v39  ;;  %v2068_v41 = vsub.s32 2, %v2004_v23  ;;  %v834_v42 = vsub.s32 3, %v2004_v23 }
 0x102   : > { %v727_v8 = vadd.f32 %v711_v3, %v412_v4  ;;  %v740_v9 = vmul.f32 %v1615_v40, %v726_v6  ;;  %1790 = vset.pattern.permute.xlu1 %v1852_v39  ;;  %v838_v47 = vsub.s32 4, %v2004_v23  ;;  %v842_v54 = vsub.s32 5, %v2004_v23 }
 0x103   : > { %v846_v58 = vsub.s32 6, %v2004_v23  ;;  %v850_v62 = vsub.s32 7, %v2004_v23 }
 0x104   : > { %744 = vadd.xlane.f32.xlu0 %v735_v60  ;;  %v741_v10 = vmul.f32 %v1615_v40, %v727_v8  ;;  %v2065_v40 = vsub.s32 1, %v2004_v23  ;;  %v473_v23 = vld [vmem:[%s2613_s6 + $0x158] sm:$0xff] }
 0x105   : > { %748 = vadd.xlane.f32.xlu1 %v737_v63 }
 0x108   : > { %750 = vadd.xlane.f32.xlu0 %v738_v5 }
 0x109   : > { %752 = vadd.xlane.f32.xlu1 %v739_v7 }
 0x10c   : > { %754 = vadd.xlane.f32.xlu0 %v740_v9 }
 0x10d   : > { %756 = vadd.xlane.f32.xlu1 %v741_v10 }
 0x189   : > { %v743_v12 = vpop.xlane.xlu0 %742 }
 0x18a   : > { %v747_v14 = vpop.xlane.xlu1 %746  ;;  %v771_v16 = vrot.slane %v743_v12, %v2046_v13 }
 0x18b   : > { %v779_v19 = vrot.slane %v747_v14, %v2046_v13 }
 0x18d   : > { %v745_v15 = vpop.xlane.xlu0 %744 }
 0x18e   : > { %v775_v17 = vrot.slane %v745_v15, %v2046_v13  ;;  %v749_v18 = vpop.xlane.xlu1 %748 }
 0x18f   : > { %v783_v20 = vrot.slane %v749_v18, %v2046_v13 }
 0x190   : > { %v801_v21 = vsel %vm800_vm1, %v775_v17, %v771_v16 }
 0x191   : > { %v803_v22 = vsel %vm802_vm2, %v779_v19, %v801_v21  ;;  %v751_v24 = vpop.xlane.xlu0 %750 }
 0x192   : > { %v805_v25 = vsel %vm804_vm3, %v783_v20, %v803_v22  ;;  %v787_v26 = vrot.slane %v751_v24, %v2046_v13  ;;  %v753_v27 = vpop.xlane.xlu1 %752 }
 0x193   : > { %v791_v28 = vrot.slane %v753_v27, %v2046_v13 }
 0x194   : > { %v807_v30 = vsel %vm806_vm4, %v787_v26, %v805_v25 }
 0x195   : > { %v755_v31 = vpop.xlane.xlu0 %754  ;;  %v809_v32 = vsel %vm808_vm5, %v791_v28, %v807_v30 }
 0x196   : > { %v795_v33 = vrot.slane %v755_v31, %v2046_v13  ;;  %v757_v34 = vpop.xlane.xlu1 %756 }
 0x197   : > { %v799_v35 = vrot.slane %v757_v34, %v2046_v13 }
 0x198   : > { %v811_v36 = vsel %vm810_vm6, %v795_v33, %v809_v32 }
 0x199   : > { %v813_v37 = vsel %vm812_vm7, %v799_v35, %v811_v36 }
 0x19a   : > { %v816_v38 = vsel %vm815_vm8, %v813_v37, -inf }
 0x19b   : > { %817 = vmax.xlane.f32.xlu0 %v816_v38 }
 0x224   : > { %v818_v43 = vpop.xlane.xlu0 %817 }
 0x225   : > { %v823_v44 = vrot.slane %v818_v43, %v2008_v29  ;;  %v827_v45 = vrot.slane %v818_v43, %v2065_v40  ;;  %v831_v46 = vrot.slane %v818_v43, %v2068_v41  ;;  %v835_v48 = vrot.slane %v818_v43, %v834_v42 }
 0x226   : > { %v839_v55 = vrot.slane %v818_v43, %v838_v47  ;;  %v843_v59 = vrot.slane %v818_v43, %v842_v54  ;;  %v847_v63 = vrot.slane %v818_v43, %v846_v58  ;;  %v851_v3 = vrot.slane %v818_v43, %v850_v62 }
 0x227   : > { %v860_v49 = vsub.f32 %v743_v12, %v823_v44  ;;  %v861_v50 = vsub.f32 %v745_v15, %v827_v45  ;;  %v862_v51 = vsub.f32 %v747_v14, %v831_v46  ;;  %v863_v56 = vsub.f32 %v749_v18, %v835_v48 }
 0x228   : > { %v864_v60 = vsub.f32 %v751_v24, %v839_v55  ;;  %v865_v0 = vsub.f32 %v753_v27, %v843_v59  ;;  %v866_v4 = vsub.f32 %v755_v31, %v847_v63  ;;  %v867_v8 = vsub.f32 %v757_v34, %v851_v3 }
 0x229   : > { %v868_v52 = vmul.f32 1.442695, %v860_v49  ;;  %v870_v53 = vmul.f32 1.442695, %v861_v50  ;;  %v872_v57 = vmul.f32 1.442695, %v862_v51 }
 0x22a   : > { %v874_v61 = vmul.f32 1.442695, %v863_v56  ;;  %v876_v1 = vmul.f32 1.442695, %v864_v60  ;;  %v878_v5 = vmul.f32 1.442695, %v865_v0 }
 0x22b   : > { %1792 = vpow2.f32 %v868_v52  ;;  %v880_v9 = vmul.f32 1.442695, %v866_v4  ;;  %v882_v11 = vmul.f32 1.442695, %v867_v8  ;;  %v469_v8 = vld [vmem:[%s2613_s6 + $0x138] sm:$0xff] }
 0x22c   : > { %1794 = vpow2.f32 %v870_v53 }
 0x22d   : > { %1796 = vpow2.f32 %v872_v57 }
 0x22e   : > { %1798 = vpow2.f32 %v874_v61 }
 0x22f   : > { %1800 = vpow2.f32 %v876_v1 }
 0x230   : > { %1802 = vpow2.f32 %v878_v5  ;;  %v472_v5 = vld [vmem:[%s2613_s6 + $0x150] sm:$0xff] }
 0x231   : > { %1804 = vpow2.f32 %v880_v9 }
 0x232   : > { %1806 = vpow2.f32 %v882_v11  ;;  %v471_v11 = vld [vmem:[%s2613_s6 + $0x148] sm:$0xff] }
 0x238   : > { %v1793_v6 = vpop.eup %1792 }
 0x239   : > { %v1795_v7 = vpop.eup %1794  ;;  %893 = vperm.xlu1 %1790, %v1793_v6  }
 0x23a   : > { %896 = vperm.xlu0 %1791, %v1795_v7   ;;  %v1797_v10 = vpop.eup %1796 }
 0x23b   : > { %v1799_v12 = vpop.eup %1798 }
 0x23c   : > { %v2088_v14 = vpop.eup %1800 }
 0x23d   : > { %899 = vperm.xlu1 %1790, %v1797_v10   ;;  %v2091_v15 = vpop.eup %1802 }
 0x23e   : > { %v2094_v16 = vpop.eup %1804 }
 0x23f   : > { %v2097_v17 = vpop.eup %1806 }
 0x241   : > { %902 = vperm.xlu1 %1790, %v1799_v12  }
 0x245   : > { %905 = vperm.xlu1 %1790, %v2088_v14  }
 0x249   : > { %908 = vperm.xlu1 %1790, %v2091_v15  }
 0x24d   : > { %911 = vperm.xlu1 %1790, %v2094_v16  }
 0x251   : > { %914 = vperm.xlu1 %1790, %v2097_v17  }
 0x2b4   : > { %v894_v18 = vpop.permute.xlu1 %893 }
 0x2b5   : > { %v897_v22 = vpop.permute.xlu0 %896  ;;  %v919_v26 = vrot.slane %v894_v18, %v2046_v13  ;;  %v468_v18 = vld [vmem:[%s2613_s6 + $0x130] sm:$0xff] }
 0x2b6   : > { %v923_v25 = vrot.slane %v897_v22, %v2046_v13  ;;  %v465_v22 = vld [vmem:[%s2613_s6 + $0x118] sm:$0xff] }
 0x2b8   : > { %v900_v19 = vpop.permute.xlu1 %899  ;;  %v948_v32 = vsel %vm800_vm1, %v923_v25, %v919_v26  ;;  %v460_v25 = vld [vmem:[%s2613_s6 + $0xf0] sm:$0xff]  ;;  %v462_v26 = vld [vmem:[%s2613_s6 + $0x100] sm:$0xff] }
 0x2b9   : > { %v927_v27 = vrot.slane %v900_v19, %v2046_v13  ;;  %v463_v19 = vld [vmem:[%s2613_s6 + $0x108] sm:$0xff] }
 0x2bb   : > { %v949_v34 = vsel %vm802_vm2, %v927_v27, %v948_v32  ;;  %v457_v27 = vld [vmem:[%s2613_s6 + $0xd8] sm:$0xff]  ;;  %v454_v32 = vld [vmem:[%s2613_s6 + $0xc0] sm:$0xff] }
 0x2bc   : > { %v903_v20 = vpop.permute.xlu1 %902 }
 0x2bd   : > { %v931_v28 = vrot.slane %v903_v20, %v2046_v13 }
 0x2bf   : > { %v950_v36 = vsel %vm804_vm3, %v931_v28, %v949_v34  ;;  %v451_v34 = vld [vmem:[%s2613_s6 + $0xa8] sm:$0xff] }
 0x2c0   : > { %v906_v21 = vpop.permute.xlu1 %905 }
 0x2c1   : > { %v935_v30 = vrot.slane %v906_v21, %v2046_v13  ;;  %v461_v21 = vld [vmem:[%s2613_s6 + $0xf8] sm:$0xff] }
 0x2c3   : > { %v951_v37 = vsel %vm806_vm4, %v935_v30, %v950_v36  ;;  %v455_v30 = vld [vmem:[%s2613_s6 + $0xc8] sm:$0xff]  ;;  %v453_v36 = vld [vmem:[%s2613_s6 + $0xb8] sm:$0xff] }
 0x2c4   : > { %v909_v24 = vpop.permute.xlu1 %908 }
 0x2c5   : > { %v939_v33 = vrot.slane %v909_v24, %v2046_v13 }
 0x2c7   : > { %v952_v39 = vsel %vm808_vm5, %v939_v33, %v951_v37  ;;  %v456_v33 = vld [vmem:[%s2613_s6 + $0xd0] sm:$0xff] }
 0x2c8   : > { %v912_v31 = vpop.permute.xlu1 %911  ;;  %v448_v37 = vld [vmem:[%s2613_s6 + $0x90] sm:$0xff] }
 0x2c9   : > { %v943_v35 = vrot.slane %v912_v31, %v2046_v13  ;;  %v459_v31 = vld [vmem:[%s2613_s6 + $0xe8] sm:$0xff] }
 0x2cb   : > { %v953_v44 = vsel %vm810_vm6, %v943_v35, %v952_v39  ;;  %v449_v35 = vld [vmem:[%s2613_s6 + $0x98] sm:$0xff]  ;;  %v450_v39 = vld [vmem:[%s2613_s6 + $0xa0] sm:$0xff] }
 0x2cc   : > { %v915_v38 = vpop.permute.xlu1 %914 }
 0x2cd   : > { %v947_v43 = vrot.slane %v915_v38, %v2046_v13  ;;  %v446_v38 = vld [vmem:[%s2613_s6 + $0x80] sm:$0xff] }
 0x2cf   : > { %v954_v45 = vsel %vm812_vm7, %v947_v43, %v953_v44  ;;  %v445_v43 = vld [vmem:[%s2613_s6 + $0x78] sm:$0xff]  ;;  %v443_v44 = vld [vmem:[%s2613_s6 + $0x68] sm:$0xff] }
 0x2d0   : > { %v956_v46 = vsel %vm815_vm8, %v954_v45, 0.0  ;;  %v447_v45 = vld [vmem:[%s2613_s6 + $0x88] sm:$0xff] }
 0x2d1   : > { %957 = vadd.xlane.f32.xlu1 %v956_v46  ;;  %v442_v46 = vld [vmem:[%s2613_s6 + $0x60] sm:$0xff] }
 0x35a   : > { %v958_v48 = vpop.xlane.xlu1 %957 }
 0x35b   : > { %v963_v49 = vrot.slane %v958_v48, %v2008_v29  ;;  %v967_v50 = vrot.slane %v958_v48, %v2065_v40  ;;  %v971_v51 = vrot.slane %v958_v48, %v2068_v41  ;;  %v975_v13 = vrot.slane %v958_v48, %v834_v42 }
 0x35c   : > { %v979_v52 = vrot.slane %v958_v48, %v838_v47  ;;  %v983_v56 = vrot.slane %v958_v48, %v842_v54  ;;  %v987_v60 = vrot.slane %v958_v48, %v846_v58  ;;  %v991_v47 = vrot.slane %v958_v48, %v850_v62  ;;  %v476_v54 = vld [vmem:[%s2613_s6 + $0x170] sm:$0xff]  ;;  %v475_v58 = vld [vmem:[%s2613_s6 + $0x168] sm:$0xff]  ;;  %v477_v62 = vld [vmem:[%s2613_s6 + $0x178] sm:$0xff] }
 0x35d   : > { %1808 = vrcp.f32 %v963_v49  ;;  %1128 = vmatprep.subr.mxu1 %v476_v54  ;;  %1708 = vmatpush3.msra.mxu0 %v477_v62  ;;  %v440_v48 = vld [vmem:[%s2613_s6 + $0x50] sm:$0xff]  ;;  %v397_v54 = vld [vmem:[%s2609_s2] sm:$0xff]  ;;  %v400_v62 = vld [vmem:[%s2609_s2 + $0x18] sm:$0xff] }
 0x35e   : > { %1810 = vrcp.f32 %v967_v50  ;;  %1129 = vmatpush1.msra.mxu1 %v475_v58  ;;  %1709 = vmatprep.subr.mxu0 %v1849_v2  ;;  %v444_v49 = vld [vmem:[%s2613_s6 + $0x70] sm:$0xff]  ;;  %v439_v50 = vld [vmem:[%s2613_s6 + $0x48] sm:$0xff] }
 0x35f   : > { %1812 = vrcp.f32 %v971_v51  ;;  %1130 = vmatprep.subr.mxu1 %v473_v23  ;;  %v437_v51 = vld [vmem:[%s2613_s6 + $0x38] sm:$0xff] }
 0x360   : > { %1814 = vrcp.f32 %v975_v13  ;;  %1131 = vmatpush1.msra.mxu1 %v472_v5  ;;  %v441_v13 = vld [vmem:[%s2613_s6 + $0x58] sm:$0xff] }
 0x361   : > { %1816 = vrcp.f32 %v979_v52  ;;  %v436_v52 = vld [vmem:[%s2613_s6 + $0x30] sm:$0xff] }
 0x362   : > { %1818 = vrcp.f32 %v983_v56  ;;  %v433_v56 = vld [vmem:[%s2613_s6 + $0x18] sm:$0xff] }
 0x363   : > { %1820 = vrcp.f32 %v987_v60  ;;  %v430_v60 = vld [vmem:[%s2613_s6] sm:$0xff] }
 0x364   : > { %1822 = vrcp.f32 %v991_v47 }
 0x36a   : > { %v1809_v53 = vpop.eup %1808 }
 0x36b   : > { %v1001_v55 = vmul.f32 %v1809_v53, %v1793_v6  ;;  %v1811_v57 = vpop.eup %1810  ;;  %v470_v6 = vld [vmem:[%s2613_s6 + $0x140] sm:$0xff] }
 0x36c   : > { %v1003_v59 = vmul.f32 %v1811_v57, %v1795_v7  ;;  %v1813_v61 = vpop.eup %1812  ;;  %v474_v7 = vld [vmem:[%s2613_s6 + $0x160] sm:$0xff]  ;;  %1132 = vmatprep.subr.mxu1 %v470_v6  ;;  %v431_v57 = vld [vmem:[%s2613_s6 + $0x8] sm:$0xff] }
 0x36d   : > { %1018 = vperm.xlu0 %1791, %v1001_v55   ;;  %v1005_v42 = vmul.f32 %v1813_v61, %v1797_v10  ;;  %v1815_v63 = vpop.eup %1814  ;;  %1710 = vmatpush3.msra.mxu0 %v474_v7  ;;  %v467_v10 = vld [vmem:[%s2613_s6 + $0x128] sm:$0xff]  ;;  %v434_v53 = vld [vmem:[%s2613_s6 + $0x20] sm:$0xff]  ;;  %v432_v61 = vld [vmem:[%s2613_s6 + $0x10] sm:$0xff] }
 0x36e   : > { %v1007_v0 = vmul.f32 %v1815_v63, %v1799_v12  ;;  %v1817_v1 = vpop.eup %1816  ;;  %1133 = vmatpush1.msra.mxu1 %v469_v8  ;;  %1711 = vmatprep.subr.mxu0 %v1849_v2  ;;  %v438_v55 = vld [vmem:[%s2613_s6 + $0x40] sm:$0xff] }
 0x36f   : > { %v1009_v3 = vmul.f32 %v1817_v1, %v2088_v14  ;;  %v1819_v4 = vpop.eup %1818  ;;  %1134 = vmatprep.subr.mxu1 %v467_v10  ;;  %v466_v14 = vld [vmem:[%s2613_s6 + $0x120] sm:$0xff]  ;;  %1712 = vmatpush3.msra.mxu0 %v471_v11  ;;  %v399_v1 = vld [vmem:[%s2609_s2 + $0x10] sm:$0xff] }
 0x370   : > { %v1011_v9 = vmul.f32 %v1819_v4, %v2091_v15  ;;  %v1821_v12 = vpop.eup %1820  ;;  %v464_v15 = vld [vmem:[%s2613_s6 + $0x110] sm:$0xff]  ;;  %1135 = vmatpush1.msra.mxu1 %v466_v14  ;;  %1713 = vmatprep.subr.mxu0 %v1849_v2 }
 0x371   : > { %1023 = vperm.xlu0 %1791, %v1003_v59   ;;  %v1013_v20 = vmul.f32 %v1821_v12, %v2094_v16  ;;  %1136 = vmatprep.subr.mxu1 %v464_v15  ;;  %v1823_v24 = vpop.eup %1822  ;;  %v458_v16 = vld [vmem:[%s2613_s6 + $0xe0] sm:$0xff]  ;;  %v435_v59 = vld [vmem:[%s2613_s6 + $0x28] sm:$0xff] }
 0x372   : > { %1714 = vmatpush3.msra.mxu0 %v468_v18  ;;  %1137 = vmatpush1.msra.mxu1 %v463_v19  ;;  %v1015_v28 = vmul.f32 %v1823_v24, %v2097_v17  ;;  %v452_v17 = vld [vmem:[%s2613_s6 + $0xb0] sm:$0xff]  ;;  %v402_v19 = vld [vmem:[%s2609_s2 + $0x28] sm:$0xff] }
 0x373   : > { %1715 = vmatprep.subr.mxu0 %v1849_v2  ;;  %1138 = vmatprep.subr.mxu1 %v461_v21 }
 0x374   : > { %1716 = vmatpush3.msra.mxu0 %v465_v22  ;;  %1139 = vmatpush1.msra.mxu1 %v460_v25 }
 0x375   : > { %1028 = vperm.xlu0 %1791, %v1005_v42   ;;  %1717 = vmatprep.subr.mxu0 %v1849_v2  ;;  %v524_v42 = vld [vmem:[%s2614_s7 + $0x170] sm:$0xff] }
 0x376   : > { %1140 = vmatprep.subr.mxu1 %v458_v16  ;;  %1718 = vmatpush3.msra.mxu0 %v462_v26 }
 0x377   : > { %1141 = vmatpush1.msra.mxu1 %v457_v27  ;;  %1719 = vmatprep.subr.mxu0 %v1849_v2 }
 0x378   : > { %1142 = vmatprep.subr.mxu1 %v455_v30  ;;  %1720 = vmatpush3.msra.mxu0 %v459_v31 }
 0x379   : > { %1033 = vperm.xlu0 %1791, %v1007_v0   ;;  %1143 = vmatpush1.msra.mxu1 %v454_v32  ;;  %v398_v0 = vld [vmem:[%s2609_s2 + $0x8] sm:$0xff] }
 0x37a   : > { %1721 = vmatprep.subr.mxu0 %v1849_v2  ;;  %1144 = vmatprep.subr.mxu1 %v452_v17 }
 0x37b   : > { %1722 = vmatpush3.msra.mxu0 %v456_v33  ;;  %1145 = vmatpush1.msra.mxu1 %v451_v34 }
 0x37c   : > { %1723 = vmatprep.subr.mxu0 %v1849_v2  ;;  %1146 = vmatprep.subr.mxu1 %v449_v35 }
 0x37d   : > { %1038 = vperm.xlu0 %1791, %v1009_v3   ;;  %1724 = vmatpush3.msra.mxu0 %v453_v36 }
 0x37e   : > { %1147 = vmatpush1.msra.mxu1 %v448_v37  ;;  %1725 = vmatprep.subr.mxu0 %v1849_v2 }
 0x37f   : > { %1148 = vmatprep.subr.mxu1 %v446_v38  ;;  %1726 = vmatpush3.msra.mxu0 %v450_v39  ;;  %v404_v38 = vld [vmem:[%s2609_s2 + $0x38] sm:$0xff] }
 0x380   : > { %1149 = vmatpush1.msra.mxu1 %v445_v43  ;;  %1727 = vmatprep.subr.mxu0 %v1849_v2 }
 0x381   : > { %1043 = vperm.xlu0 %1791, %v1011_v9   ;;  %1150 = vmatprep.subr.mxu1 %v443_v44  ;;  %v401_v9 = vld [vmem:[%s2609_s2 + $0x20] sm:$0xff] }
 0x382   : > { %1728 = vmatpush3.msra.mxu0 %v447_v45  ;;  %1151 = vmatpush1.msra.mxu1 %v442_v46 }
 0x383   : > { %1729 = vmatprep.subr.mxu0 %v1849_v2  ;;  %1152 = vmatprep.subr.mxu1 %v440_v48 }
 0x384   : > { %1730 = vmatpush3.msra.mxu0 %v444_v49  ;;  %1153 = vmatpush1.msra.mxu1 %v439_v50 }
 0x385   : > { %1048 = vperm.xlu0 %1791, %v1013_v20   ;;  %1731 = vmatprep.subr.mxu0 %v1849_v2 }
 0x386   : > { %1154 = vmatprep.subr.mxu1 %v437_v51  ;;  %1732 = vmatpush3.msra.mxu0 %v441_v13 }
 0x387   : > { %1155 = vmatpush1.msra.mxu1 %v436_v52  ;;  %1733 = vmatprep.subr.mxu0 %v1849_v2 }
 0x388   : > { %1156 = vmatprep.subr.mxu1 %v434_v53  ;;  %1734 = vmatpush3.msra.mxu0 %v438_v55 }
 0x389   : > { %1053 = vperm.xlu0 %1791, %v1015_v28   ;;  %1157 = vmatpush1.msra.mxu1 %v433_v56  ;;  %v403_v28 = vld [vmem:[%s2609_s2 + $0x30] sm:$0xff] }
 0x38a   : > { %1735 = vmatprep.subr.mxu0 %v1849_v2  ;;  %1158 = vmatprep.subr.mxu1 %v431_v57 }
 0x38b   : > { %1736 = vmatpush3.msra.mxu0 %v435_v59  ;;  %1159 = vmatpush1.msra.mxu1 %v430_v60 }
 0x38c   : > { %1737 = vmatprep.subr.mxu0 %v1849_v2  ;;  %1288 = vmatprep.subr.mxu1 %v524_v42 }
 0x38d   : > { %1738 = vmatpush3.msra.mxu0 %v432_v61 }
 0x38e   : > { %1742 = vmatprep.subr.mxu0 %v1849_v2 }
 0x3e8   : > { %v1019_v47 = vpop.permute.xlu0 %1018 }
 0x3e9   : > { %v1056_v4 = vmul.f32 %v1019_v47, %v397_v54 }
 0x3eb   : > { %v1064_v10 = vrot.slane %v1056_v4, 4 }
 0x3ec   : > { %v1024_v63 = vpop.permute.xlu0 %1023 }
 0x3ed   : > { %v1057_v3 = vmul.f32 %v1024_v63, %v398_v0  ;;  %v1065_v20 = vadd.f32 %v1064_v10, %v1056_v4 }
 0x3ef   : > { %v1070_v6 = vrot.slane %v1057_v3, 4  ;;  %v1066_v30 = vrot.slane %v1065_v20, 2 }
 0x3f0   : > { %v1029_v58 = vpop.permute.xlu0 %1028 }
 0x3f1   : > { %v1058_v23 = vmul.f32 %v1029_v58, %v399_v1  ;;  %v1071_v14 = vadd.f32 %v1070_v6, %v1057_v3  ;;  %v1067_v39 = vadd.f32 %v1066_v30, %v1065_v20  ;;  %v520_v20 = vld [vmem:[%s2614_s7 + $0x150] sm:$0xff]  ;;  %v511_v30 = vld [vmem:[%s2614_s7 + $0x108] sm:$0xff] }
 0x3f3   : > { %v1076_v8 = vrot.slane %v1058_v23, 4  ;;  %v1072_v25 = vrot.slane %v1071_v14, 2  ;;  %v1068_v53 = vrot.slane %v1067_v39, 1 }
 0x3f4   : > { %v1034_v5 = vpop.permute.xlu0 %1033 }
 0x3f5   : > { %v1059_v7 = vmul.f32 %v1034_v5, %v400_v62  ;;  %v1077_v18 = vadd.f32 %v1076_v8, %v1058_v23  ;;  %v1073_v34 = vadd.f32 %v1072_v25, %v1071_v14  ;;  %v1069_v0 = vadd.f32 %v1068_v53, %v1067_v39  ;;  %v523_v14 = vld [vmem:[%s2614_s7 + $0x168] sm:$0xff]  ;;  %v500_v39 = vld [vmem:[%s2614_s7 + $0xb0] sm:$0xff]  ;;  %v490_v53 = vld [vmem:[%s2614_s7 + $0x60] sm:$0xff] }
 0x3f6   : > { %v515_v25 = vld [vmem:[%s2614_s7 + $0x128] sm:$0xff] }
 0x3f7   : > { %v1082_v11 = vrot.slane %v1059_v7, 4  ;;  %v1078_v27 = vrot.slane %v1077_v18, 2  ;;  %v1074_v49 = vrot.slane %v1073_v34, 1 }
 0x3f8   : > { %v1039_v12 = vpop.permute.xlu0 %1038 }
 0x3f9   : > { %v1060_v15 = vmul.f32 %v1039_v12, %v401_v9  ;;  %v1083_v21 = vadd.f32 %v1082_v11, %v1059_v7  ;;  %v1079_v37 = vadd.f32 %v1078_v27, %v1077_v18  ;;  %v1075_v60 = vadd.f32 %v1074_v49, %v1073_v34  ;;  %v521_v18 = vld [vmem:[%s2614_s7 + $0x158] sm:$0xff]  ;;  %v512_v27 = vld [vmem:[%s2614_s7 + $0x110] sm:$0xff]  ;;  %v510_v34 = vld [vmem:[%s2614_s7 + $0x100] sm:$0xff] }
 0x3fa   : > { %v494_v49 = vld [vmem:[%s2614_s7 + $0x80] sm:$0xff] }
 0x3fb   : > { %v1088_v22 = vrot.slane %v1060_v15, 4  ;;  %v1084_v31 = vrot.slane %v1083_v21, 2  ;;  %v1080_v52 = vrot.slane %v1079_v37, 1  ;;  %v1120_v23 = vsel %vm800_vm1, %v1075_v60, %v1069_v0  ;;  %v489_v60 = vld [vmem:[%s2614_s7 + $0x58] sm:$0xff]  ;;  %v479_v0 = vld [vmem:[%s2614_s7 + $0x8] sm:$0xff] }
 0x3fc   : > { %v1044_v24 = vpop.permute.xlu0 %1043 }
 0x3fd   : > { %v1089_v16 = vadd.f32 %v1088_v22, %v1060_v15  ;;  %v1061_v26 = vmul.f32 %v1044_v24, %v402_v19  ;;  %v1085_v43 = vadd.f32 %v1084_v31, %v1083_v21  ;;  %v1081_v63 = vadd.f32 %v1080_v52, %v1079_v37  ;;  %v525_v19 = vld [vmem:[%s2614_s7 + $0x178] sm:$0xff]  ;;  %v518_v21 = vld [vmem:[%s2614_s7 + $0x140] sm:$0xff]  ;;  %v507_v37 = vld [vmem:[%s2614_s7 + $0xe8] sm:$0xff] }
 0x3fe   : > { %v522_v22 = vld [vmem:[%s2614_s7 + $0x160] sm:$0xff]  ;;  %v517_v24 = vld [vmem:[%s2614_s7 + $0x138] sm:$0xff]  ;;  %v495_v52 = vld [vmem:[%s2614_s7 + $0x88] sm:$0xff] }
 0x3ff   : > { %v1094_v32 = vrot.slane %v1061_v26, 4  ;;  %v1090_v17 = vrot.slane %v1089_v16, 2  ;;  %v1086_v55 = vrot.slane %v1085_v43, 1  ;;  %v1121_v5 = vsel %vm802_vm2, %v1081_v63, %v1120_v23  ;;  %v509_v31 = vld [vmem:[%s2614_s7 + $0xf8] sm:$0xff] }
 0x400   : > { %v1049_v33 = vpop.permute.xlu0 %1048  ;;  %v481_v63 = vld [vmem:[%s2614_s7 + $0x18] sm:$0xff] }
 0x401   : > { %v1095_v35 = vadd.f32 %v1094_v32, %v1061_v26  ;;  %v1062_v36 = vmul.f32 %v1049_v33, %v403_v28  ;;  %v1091_v46 = vadd.f32 %v1090_v17, %v1089_v16  ;;  %v1087_v1 = vadd.f32 %v1086_v55, %v1085_v43  ;;  %v519_v16 = vld [vmem:[%s2614_s7 + $0x148] sm:$0xff]  ;;  %v514_v26 = vld [vmem:[%s2614_s7 + $0x120] sm:$0xff]  ;;  %v516_v28 = vld [vmem:[%s2614_s7 + $0x130] sm:$0xff] }
 0x402   : > { %v513_v32 = vld [vmem:[%s2614_s7 + $0x118] sm:$0xff]  ;;  %v508_v17 = vld [vmem:[%s2614_s7 + $0xf0] sm:$0xff]  ;;  %v506_v33 = vld [vmem:[%s2614_s7 + $0xe0] sm:$0xff] }
 0x403   : > { %v1096_v44 = vrot.slane %v1095_v35, 2  ;;  %v1100_v45 = vrot.slane %v1062_v36, 4  ;;  %v1092_v59 = vrot.slane %v1091_v46, 1  ;;  %v1122_v8 = vsel %vm804_vm3, %v1087_v1, %v1121_v5  ;;  %v504_v43 = vld [vmem:[%s2614_s7 + $0xd0] sm:$0xff]  ;;  %v483_v1 = vld [vmem:[%s2614_s7 + $0x28] sm:$0xff]  ;;  %v558_v23 = vld [vmem:[%s2616_s9 + $0xf8] sm:$0xff] }
 0x404   : > { %v1054_v48 = vpop.permute.xlu0 %1053  ;;  %v488_v55 = vld [vmem:[%s2614_s7 + $0x50] sm:$0xff]  ;;  %v555_v5 = vld [vmem:[%s2616_s9 + $0xe0] sm:$0xff] }
 0x405   : > { %v1097_v50 = vadd.f32 %v1096_v44, %v1095_v35  ;;  %v1101_v51 = vadd.f32 %v1100_v45, %v1062_v36  ;;  %v1063_v13 = vmul.f32 %v1054_v48, %v404_v38  ;;  %v1093_v3 = vadd.f32 %v1092_v59, %v1091_v46  ;;  %v505_v35 = vld [vmem:[%s2614_s7 + $0xd8] sm:$0xff]  ;;  %v503_v36 = vld [vmem:[%s2614_s7 + $0xc8] sm:$0xff]  ;;  %v502_v38 = vld [vmem:[%s2614_s7 + $0xc0] sm:$0xff] }
 0x406   : > { %v499_v44 = vld [vmem:[%s2614_s7 + $0xa8] sm:$0xff]  ;;  %v497_v45 = vld [vmem:[%s2614_s7 + $0x98] sm:$0xff]  ;;  %v496_v48 = vld [vmem:[%s2614_s7 + $0x90] sm:$0xff] }
 0x407   : > { %v1102_v56 = vrot.slane %v1101_v51, 2  ;;  %v1106_v57 = vrot.slane %v1063_v13, 4  ;;  %v1098_v61 = vrot.slane %v1097_v50, 1  ;;  %v1123_v9 = vsel %vm806_vm4, %v1093_v3, %v1122_v8  ;;  %v501_v46 = vld [vmem:[%s2614_s7 + $0xb8] sm:$0xff]  ;;  %v2484_v3 = vld [vmem:[#allocation2] sm:$0xff] }
 0x408   : > { %v485_v59 = vld [vmem:[%s2614_s7 + $0x38] sm:$0xff]  ;;  %v551_v8 = vld [vmem:[%s2616_s9 + $0xc0] sm:$0xff] }
 0x409   : > { %v1103_v42 = vadd.f32 %v1102_v56, %v1101_v51  ;;  %v1107_v47 = vadd.f32 %v1106_v57, %v1063_v13  ;;  %v1099_v62 = vadd.f32 %v1098_v61, %v1097_v50  ;;  %v498_v50 = vld [vmem:[%s2614_s7 + $0xa0] sm:$0xff]  ;;  %v493_v51 = vld [vmem:[%s2614_s7 + $0x78] sm:$0xff]  ;;  %v491_v13 = vld [vmem:[%s2614_s7 + $0x68] sm:$0xff] }
 0x40a   : > { %v492_v56 = vld [vmem:[%s2614_s7 + $0x70] sm:$0xff]  ;;  %v487_v57 = vld [vmem:[%s2614_s7 + $0x48] sm:$0xff] }
 0x40b   : > { %v1104_v54 = vrot.slane %v1103_v42, 1  ;;  %v1108_v58 = vrot.slane %v1107_v47, 2  ;;  %v1124_v11 = vsel %vm808_vm5, %v1099_v62, %v1123_v9  ;;  %v484_v61 = vld [vmem:[%s2614_s7 + $0x30] sm:$0xff]  ;;  %v550_v9 = vld [vmem:[%s2616_s9 + $0xb8] sm:$0xff] }
 0x40c   : > { %v557_v62 = vld [vmem:[%s2616_s9 + $0xf0] sm:$0xff] }
 0x40d   : > { %v1109_v4 = vadd.f32 %v1108_v58, %v1107_v47  ;;  %v1105_v6 = vadd.f32 %v1104_v54, %v1103_v42  ;;  %v482_v42 = vld [vmem:[%s2614_s7 + $0x20] sm:$0xff]  ;;  %v480_v58 = vld [vmem:[%s2614_s7 + $0x10] sm:$0xff] }
 0x40e   : > { %v486_v47 = vld [vmem:[%s2614_s7 + $0x40] sm:$0xff] }
 0x40f   : > { %v1110_v7 = vrot.slane %v1109_v4, 1  ;;  %v1125_v12 = vsel %vm810_vm6, %v1105_v6, %v1124_v11  ;;  %v478_v54 = vld [vmem:[%s2614_s7] sm:$0xff]  ;;  %v553_v6 = vld [vmem:[%s2616_s9 + $0xd0] sm:$0xff]  ;;  %v548_v11 = vld [vmem:[%s2616_s9 + $0xa8] sm:$0xff] }
 0x411   : > { %v1111_v10 = vadd.f32 %v1110_v7, %v1109_v4  ;;  %v556_v4 = vld [vmem:[%s2616_s9 + $0xe8] sm:$0xff] }
 0x412   : > { %v552_v7 = vld [vmem:[%s2616_s9 + $0xc8] sm:$0xff] }
 0x413   : > { %v1126_v15 = vsel %vm812_vm7, %v1111_v10, %v1125_v12  ;;  %v549_v10 = vld [vmem:[%s2616_s9 + $0xb0] sm:$0xff]  ;;  %v547_v12 = vld [vmem:[%s2616_s9 + $0xa0] sm:$0xff] }
 0x414   : > { %1193 = vmatmul.mubr.f32.vlgmr.msra.gmra.mxu1 %v1126_v15  ;;  %1740 = vmatmul.mubr.f32.vlgmr.msra.gmra.mxu0 %v1126_v15  ;;  %v545_v15 = vld [vmem:[%s2616_s9 + $0x90] sm:$0xff] }
 0x415   : > { %1289 = vmatpush1.msra.mxu1 %v523_v14  ;;  %1352 = vmatprep.mubr.f32.mxu1 %v1849_v2  ;;  %v546_v14 = vld [vmem:[%s2616_s9 + $0x98] sm:$0xff] }
 0x416   : > { %1290 = vmatprep.subr.mxu1 %v521_v18  ;;  %1743 = vmatpush3.msra.mxu0 %v525_v19  ;;  %v544_v18 = vld [vmem:[%s2616_s9 + $0x88] sm:$0xff]  ;;  %v543_v19 = vld [vmem:[%s2616_s9 + $0x80] sm:$0xff] }
 0x417   : > { %1291 = vmatpush1.msra.mxu1 %v520_v20  ;;  %1744 = vmatprep.subr.mxu0 %v1849_v2  ;;  %v542_v20 = vld [vmem:[%s2616_s9 + $0x78] sm:$0xff] }
 0x418   : > { %1292 = vmatprep.subr.mxu1 %v518_v21  ;;  %1745 = vmatpush3.msra.mxu0 %v522_v22  ;;  %v541_v21 = vld [vmem:[%s2616_s9 + $0x70] sm:$0xff]  ;;  %v540_v22 = vld [vmem:[%s2616_s9 + $0x68] sm:$0xff] }
 0x419   : > { %1293 = vmatpush1.msra.mxu1 %v517_v24  ;;  %1746 = vmatprep.subr.mxu0 %v1849_v2  ;;  %v539_v24 = vld [vmem:[%s2616_s9 + $0x60] sm:$0xff] }
 0x41a   : > { %1294 = vmatprep.subr.mxu1 %v515_v25  ;;  %1747 = vmatpush3.msra.mxu0 %v519_v16  ;;  %v538_v25 = vld [vmem:[%s2616_s9 + $0x58] sm:$0xff]  ;;  %v537_v16 = vld [vmem:[%s2616_s9 + $0x50] sm:$0xff] }
 0x41b   : > { %1295 = vmatpush1.msra.mxu1 %v514_v26  ;;  %1748 = vmatprep.subr.mxu0 %v1849_v2  ;;  %v536_v26 = vld [vmem:[%s2616_s9 + $0x48] sm:$0xff] }
 0x41c   : > { %1296 = vmatprep.subr.mxu1 %v512_v27  ;;  %1749 = vmatpush3.msra.mxu0 %v516_v28  ;;  %v535_v27 = vld [vmem:[%s2616_s9 + $0x40] sm:$0xff]  ;;  %v534_v28 = vld [vmem:[%s2616_s9 + $0x38] sm:$0xff] }
 0x41d   : > { %1297 = vmatpush1.msra.mxu1 %v511_v30  ;;  %1750 = vmatprep.subr.mxu0 %v1849_v2  ;;  %v533_v30 = vld [vmem:[%s2616_s9 + $0x30] sm:$0xff] }
 0x41e   : > { %1298 = vmatprep.subr.mxu1 %v509_v31  ;;  %1751 = vmatpush3.msra.mxu0 %v513_v32  ;;  %v532_v31 = vld [vmem:[%s2616_s9 + $0x28] sm:$0xff]  ;;  %v531_v32 = vld [vmem:[%s2616_s9 + $0x20] sm:$0xff] }
 0x41f   : > { %1299 = vmatpush1.msra.mxu1 %v508_v17  ;;  %1752 = vmatprep.subr.mxu0 %v1849_v2  ;;  %v530_v17 = vld [vmem:[%s2616_s9 + $0x18] sm:$0xff] }
 0x420   : > { %1300 = vmatprep.subr.mxu1 %v506_v33  ;;  %1753 = vmatpush3.msra.mxu0 %v510_v34  ;;  %v529_v33 = vld [vmem:[%s2616_s9 + $0x10] sm:$0xff]  ;;  %v528_v34 = vld [vmem:[%s2616_s9 + $0x8] sm:$0xff] }
 0x421   : > { %1301 = vmatpush1.msra.mxu1 %v505_v35  ;;  %1754 = vmatprep.subr.mxu0 %v1849_v2  ;;  %v527_v35 = vld [vmem:[%s2616_s9] sm:$0xff] }
 0x422   : > { %1302 = vmatprep.subr.mxu1 %v503_v36  ;;  %1755 = vmatpush3.msra.mxu0 %v507_v37 }
 0x423   : > { %1303 = vmatpush1.msra.mxu1 %v502_v38  ;;  %1756 = vmatprep.subr.mxu0 %v1849_v2 }
 0x424   : > { %1304 = vmatprep.subr.mxu1 %v500_v39  ;;  %1757 = vmatpush3.msra.mxu0 %v504_v43  ;;  %v526_v39 = vld [vmem:[%s2615_s8] sm:$0x7] }
 0x425   : > { %1305 = vmatpush1.msra.mxu1 %v499_v44  ;;  %1758 = vmatprep.subr.mxu0 %v1849_v2  ;;  %v1276_v43 = vrot.slane %v526_v39, %v2008_v29  ;;  %v394_v44 = vld [vmem:[%s1929_s27] sm:$0xff] }
 0x426   : > { %1306 = vmatprep.subr.mxu1 %v497_v45  ;;  %1759 = vmatpush3.msra.mxu0 %v501_v46 }
 0x427   : > { %1307 = vmatpush1.msra.mxu1 %v496_v48  ;;  %1760 = vmatprep.subr.mxu0 %v1849_v2 }
 0x428   : > { %1308 = vmatprep.subr.mxu1 %v494_v49  ;;  %1761 = vmatpush3.msra.mxu0 %v498_v50  ;;  %v1280_v50 = vrot.slane %v526_v39, %v2065_v40 }
 0x429   : > { %1309 = vmatpush1.msra.mxu1 %v493_v51  ;;  %1762 = vmatprep.subr.mxu0 %v1849_v2 }
 0x42a   : > { %1310 = vmatprep.subr.mxu1 %v491_v13  ;;  %1763 = vmatpush3.msra.mxu0 %v495_v52 }
 0x42b   : > { %1311 = vmatpush1.msra.mxu1 %v490_v53  ;;  %1764 = vmatprep.subr.mxu0 %v1849_v2  ;;  %v395_v53 = vld [vmem:[%s1929_s27 + $0x8] sm:$0xff] }
 0x42c   : > { %1312 = vmatprep.subr.mxu1 %v488_v55  ;;  %1765 = vmatpush3.msra.mxu0 %v492_v56 }
 0x42d   : > { %1313 = vmatpush1.msra.mxu1 %v487_v57  ;;  %1766 = vmatprep.subr.mxu0 %v1849_v2 }
 0x42e   : > { %1314 = vmatprep.subr.mxu1 %v485_v59  ;;  %1767 = vmatpush3.msra.mxu0 %v489_v60 }
 0x42f   : > { %1315 = vmatpush1.msra.mxu1 %v484_v61  ;;  %1768 = vmatprep.subr.mxu0 %v1849_v2 }
 0x430   : > { %1316 = vmatprep.subr.mxu1 %v482_v42  ;;  %1769 = vmatpush3.msra.mxu0 %v486_v47 }
 0x431   : > { %1317 = vmatpush1.msra.mxu1 %v481_v63  ;;  %1770 = vmatprep.subr.mxu0 %v1849_v2  ;;  %v1284_v63 = vrot.slane %v526_v39, %v2068_v41  ;;  %v559_v41 = vld [vmem:[%s2617_s10] sm:$0x3] }
 0x432   : > { %1318 = vmatprep.subr.mxu1 %v479_v0  ;;  %1771 = vmatpush3.msra.mxu0 %v483_v1 }
 0x433   : > { %1319 = vmatpush1.msra.mxu1 %v478_v54  ;;  %1772 = vmatprep.subr.mxu0 %v1849_v2 }
 0x434   : > { %1353 = vmatmul.mubr.f32.vlgmr.msra.gmra.mxu1 %v2484_v3  ;;  %1773 = vmatpush3.msra.mxu0 %v480_v58  ;;  %v396_v58 = vld [vmem:[%s1929_s27 + $0x10] sm:$0xff] }
 0x435   : > { %1774 = vmatprep.mubr.msk.f32.mxu0 %vm1850_vm0, %v1849_v2  ;;  %1525 = vmatprep.mubr.f32.mxu1 %v1849_v2  ;;  %v554_v2 = vld [vmem:[%s2616_s9 + $0xd8] sm:$0xff] }
 0x436   : > { %1775 = vmatmul.mubr.f32.vlgmr.msra.gmra.mxu0 %v2484_v3  ;;  %1461 = vmatprep.subr.mxu1 %v558_v23 }
 0x437   : > { %1462 = vmatpush1.msra.mxu1 %v557_v62 }
 0x438   : > { %1463 = vmatprep.subr.mxu1 %v556_v4 }
 0x439   : > { %1464 = vmatpush1.msra.mxu1 %v555_v5 }
 0x43a   : > { %1465 = vmatprep.subr.mxu1 %v554_v2 }
 0x43b   : > { %1466 = vmatpush1.msra.mxu1 %v553_v6 }
 0x43c   : > { %1467 = vmatprep.subr.mxu1 %v552_v7 }
 0x43d   : > { %1468 = vmatpush1.msra.mxu1 %v551_v8 }
 0x43e   : > { %1469 = vmatprep.subr.mxu1 %v550_v9 }
 0x43f   : > { %1470 = vmatpush1.msra.mxu1 %v549_v10 }
 0x440   : > { %1471 = vmatprep.subr.mxu1 %v548_v11  ;;  %v1454_v11 = vrot.slane %v559_v41, %v2008_v29 }
 0x441   : > { %1472 = vmatpush1.msra.mxu1 %v547_v12  ;;  %v1458_v12 = vrot.slane %v559_v41, %v2065_v40 }
 0x442   : > { %1473 = vmatprep.subr.mxu1 %v546_v14 }
 0x443   : > { %1474 = vmatpush1.msra.mxu1 %v545_v15 }
 0x444   : > { %1475 = vmatprep.subr.mxu1 %v544_v18 }
 0x445   : > { %1476 = vmatpush1.msra.mxu1 %v543_v19 }
 0x446   : > { %1477 = vmatprep.subr.mxu1 %v542_v20 }
 0x447   : > { %1478 = vmatpush1.msra.mxu1 %v541_v21 }
 0x448   : > { %1479 = vmatprep.subr.mxu1 %v540_v22 }
 0x449   : > { %1480 = vmatpush1.msra.mxu1 %v539_v24 }
 0x44a   : > { %1481 = vmatprep.subr.mxu1 %v538_v25 }
 0x44b   : > { %1482 = vmatpush1.msra.mxu1 %v537_v16 }
 0x44c   : > { %1483 = vmatprep.subr.mxu1 %v536_v26 }
 0x44d   : > { %1484 = vmatpush1.msra.mxu1 %v535_v27 }
 0x44e   : > { %1485 = vmatprep.subr.mxu1 %v534_v28 }
 0x44f   : > { %1486 = vmatpush1.msra.mxu1 %v533_v30 }
 0x450   : > { %1487 = vmatprep.subr.mxu1 %v532_v31 }
 0x451   : > { %1488 = vmatpush1.msra.mxu1 %v531_v32 }
 0x452   : > { %1489 = vmatprep.subr.mxu1 %v530_v17 }
 0x453   : > { %1490 = vmatpush1.msra.mxu1 %v529_v33 }
 0x454   : > { %1491 = vmatprep.subr.mxu1 %v528_v34 }
 0x455   : > { %1492 = vmatpush1.msra.mxu1 %v527_v35 }
 0x4d4   : > { %v1265_v36 = vpop.f32.mrf.mxu0  ;;  %v1194_v38 = vpop.f32.mrf.mxu1 }
 0x4d5   : > { %v1269_v48 = vadd.f32 %v1194_v38, %v394_v44  ;;  %v1271_v62 = vadd.f32 %v1265_v36, %v396_v58 }
 0x4d6   : > { %v1741_v37 = vpop.f32.mrf.mxu0  ;;  %v1196_v45 = vpop.f32.mrf.mxu1 }
 0x4d7   : > { %v1270_v59 = vadd.f32 %v1196_v45, %v395_v53 }
 0x4f4   : > { %v1354_v46 = vpop.f32.mrf.mxu1 }
 0x4f5   : > { %v1355_v49 = vadd.f32 %v1354_v46, %v1276_v43 }
 0x4f6   : > { %v1356_v51 = vpop.f32.mrf.mxu1  ;;  %v1425_v13 = vpop.f32.mrf.mxu0 }
 0x4f7   : > { %v1429_v52 = vadd.f32 %v1355_v49, %v1269_v48  ;;  %v1357_v57 = vadd.f32 %v1356_v51, %v1280_v50  ;;  %v1426_v54 = vadd.f32 %v1425_v13, %v1284_v63 }
 0x4f8   : > { %v1776_v55 = vpop.f32.mrf.mxu0 }
 0x4f9   : > { %v1616_v56 = vmul.f32 -1.442695, %v1429_v52  ;;  %v1436_v60 = vadd.f32 %v1357_v57, %v1270_v59 }
 0x4fb   : > { %1824 = vpow2.f32 %v1616_v56  ;;  %v1617_v61 = vmul.f32 -1.442695, %v1436_v60 }
 0x4fd   : > { %1826 = vpow2.f32 %v1617_v61 }
 0x508   : > { %v1825_v42 = vpop.eup %1824 }
 0x509   : > { %v1433_v47 = vadd.f32 1.0, %v1825_v42 }
 0x50a   : > { %v1827_v0 = vpop.eup %1826 }
 0x50b   : > { %1828 = vrcp.f32 %v1433_v47  ;;  %v1440_v1 = vadd.f32 1.0, %v1827_v0 }
 0x50d   : > { %1830 = vrcp.f32 %v1440_v1 }
 0x518   : > { %v1829_v23 = vpop.eup %1828 }
 0x519   : > { %v1443_v4 = vmul.f32 %v1829_v23, %v1426_v54 }
 0x51a   : > { %v1831_v2 = vpop.eup %1830 }
 0x51b   : > { %v1444_v5 = vadd.f32 %v1443_v4, %v1271_v62  ;;  %v1446_v6 = vsub.f32 1.0, %v1831_v2  ;;  %v1448_v9 = vmul.f32 %v2484_v3, %v1831_v2 }
 0x51d   : > { %1832 = vtanh.f32 %v1444_v5 }
 0x52a   : > { %v1833_v7 = vpop.eup %1832 }
 0x52b   : > { %v1447_v8 = vmul.f32 %v1833_v7, %v1446_v6 }
 0x52d   : > { %v1449_v10 = vadd.f32 %v1448_v9, %v1447_v8 }
 0x52f   : > { %1526 = vmatmul.mubr.f32.vlgmr.msra.gmra.mxu1 %v1449_v10  ;;  %1548 = vst [vmem:[#allocation2] sm:$0xff] %v1449_v10 }
 0x5ef   : > { %v1527_v14 = vpop.f32.mrf.mxu1 }
 0x5f0   : > { %v1528_v18 = vadd.f32 %v1527_v14, %v1454_v11 }
 0x5f1   : > { %v1529_v15 = vpop.f32.mrf.mxu1 }
 0x5f2   : > { %v1530_v19 = vadd.f32 %v1529_v15, %v1458_v12 }
 0x5f4   : > { %v1532_v20 = vmax.f32 %v1528_v18, %v1530_v19 }
 0x5f6   : > { %1533 = vmax.xlane.f32.xlu1 %v1532_v20 }
 0x67f   : > { %v1534_v21 = vpop.xlane.xlu1 %1533 }
 0x680   : > { %v1535_v22 = vsub.f32 %v1528_v18, %v1534_v21  ;;  %v1536_v3 = vsub.f32 %v1530_v19, %v1534_v21 }
 0x682   : > { %v1537_v24 = vmul.f32 1.442695, %v1535_v22  ;;  %v1539_v25 = vmul.f32 1.442695, %v1536_v3 }
 0x684   : > { %1834 = vpow2.f32 %v1537_v24 }
 0x685   : > { %1836 = vpow2.f32 %v1539_v25 }
 0x691   : > { %v1835_v16 = vpop.eup %1834 }
 0x692   : > { %v1837_v26 = vpop.eup %1836 }
 0x693   : > { %v1541_v29 = vadd.f32 %v1837_v26, %v1835_v16 }
 0x695   : > { %1542 = vadd.xlane.f32.xlu0 %v1541_v29 }
 0x71e   : > { %v1543_v40 = vpop.xlane.xlu0 %1542 }
 0x71f   : > { %1838 = vlog2.f32 %v1543_v40 }
 0x72c   : > { %v1839_v27 = vpop.eup %1838 }
 0x72d   : > { %v1545_v28 = vmul.f32 0.6931472, %v1839_v27 }
 0x72f   : > { %v1546_v30 = vsub.f32 %v1535_v22, %v1545_v28  ;;  %v1547_v31 = vsub.f32 %v1536_v3, %v1545_v28 }
 0x731   : > { %1549 = vst [vmem:[%s1924_s24] sm:$0xff] %v1546_v30  ;;  %1550 = vst [vmem:[%s1924_s24 + $0x8] sm:$0xff] %v1547_v31 }
 0x732 PF: > { %s21_s17 = sadd.s32 1, %s1847_s17  }
 0x733   : > { %p18_p5 = scmp.ge.s32.totalorder %s21_s17, 7  }
 0x735   :  { %20 = sbr.rel (!%p18_p5) target bundleno = 1 (0x1), region = 98 }

</bundles_post_ra>
